<compile_context>
chip_gen: v7x
topology: tpu7x:2x2x1
jax: 0.10.0
libtpu: 0.0.40
codegen_flags: <defaults>
</compile_context>

<pallas_src>
import numpy as np
import jax
import jax.numpy as jnp
from jax import lax
from jax.experimental import pallas as pl
from jax.experimental.pallas import tpu as pltpu

# ---------------------------------------------------------------- config
EMB_DIM = 32          # embedding_dim (kept small)
HIDDEN = EMB_DIM      # LSTM hidden == embedding_dim so the CLIP dims match
VOCAB = 100
BOTTLENECK = 64       # ResidualAdapter bottleneck_dim default
SIG_LEN = 256
SEQ_LEN = 8
BN_EPS = 1e-5         # nn.BatchNorm1d default
NORM_EPS = 1e-12      # F.normalize default

# MXU operand dtype.  f32 keeps exact parity with the PyTorch reference at
# these tiny shapes; set to jnp.bfloat16 on v6e/v7x when batch/length are
# scaled up (accumulation stays f32 via preferred_element_type).
MXU_DTYPE = jnp.float32


def _mm(a, b):
    return jnp.dot(a.astype(MXU_DTYPE), b.astype(MXU_DTYPE),
                   preferred_element_type=jnp.float32)


def _fs(shape):
    """Full-array BlockSpec for a grid=(1,) kernel."""
    n = len(shape)
    return pl.BlockSpec(shape, lambda i, _n=n: (0,) * _n)


_ARB = pltpu.CompilerParams(dimension_semantics=("arbitrary",))


# --------------------------------------------------------------------------
# Kernel 1/2: fused conv(as matmul) + bias + ReLU + BatchNorm + MaxPool(2)
# --------------------------------------------------------------------------

def _conv_bn_pool_kernel(pe_ref, po_ref, w_ref, b_ref, g_ref, beta_ref, o_ref):
    # pe/po: im2col patches of the even / odd conv output positions, so the
    # MaxPool1d(2, 2) that follows BN is just an elementwise max of the halves.
    w = w_ref[...]
    b = b_ref[...]
    ye = jnp.maximum(_mm(pe_ref[...], w) + b, 0.0)
    yo = jnp.maximum(_mm(po_ref[...], w) + b, 0.0)
    n = 2.0 * ye.shape[0]                          # rows of the full conv output
    mean = (jnp.sum(ye, axis=0, keepdims=True)
            + jnp.sum(yo, axis=0, keepdims=True)) / n
    ex2 = (jnp.sum(ye * ye, axis=0, keepdims=True)
           + jnp.sum(yo * yo, axis=0, keepdims=True)) / n
    var = ex2 - mean * mean                        # biased -> training-mode BN
    scale = lax.rsqrt(var + BN_EPS) * g_ref[...]
    shift = beta_ref[...] - mean * scale
    o_ref[...] = jnp.maximum(ye * scale + shift, yo * scale + shift)


def conv_bn_pool(pe, po, w2d, b, gamma, beta):
    R, KC = pe.shape
    C = w2d.shape[1]
    return pl.pallas_call(
        _conv_bn_pool_kernel,
        out_shape=jax.ShapeDtypeStruct((R, C), jnp.float32),
        grid=(1,),
        in_specs=[_fs((R, KC)), _fs((R, KC)), _fs((KC, C)),
                  _fs((1, C)), _fs((1, C)), _fs((1, C))],
        out_specs=_fs((R, C)),
        compiler_params=_ARB,
    )(pe, po, w2d, b.reshape(1, C), gamma.reshape(1, C), beta.reshape(1, C))


# --------------------------------------------------------------------------
# Kernel 3: conv3+ReLU+BN+avgpool+fc+adapter+l2norm AND the whole text branch
# --------------------------------------------------------------------------

def _head_and_text_kernel(p3_ref, w3_ref, b3_ref, g3_ref, be3_ref, pool_ref,
                          fcw_ref, fcb_ref, a1w_ref, a1b_ref, a2w_ref, a2b_ref,
                          oh_ref, emb_ref, wih_ref, bih_ref, whh_ref,
                          vib_ref, txt_ref):
    # ---- vibration head -----------------------------------------------------
    y = jnp.maximum(_mm(p3_ref[...], w3_ref[...]) + b3_ref[...], 0.0)  # (B*L3, 64)
    n = float(y.shape[0])
    mean = jnp.sum(y, axis=0, keepdims=True) / n
    var = jnp.sum(y * y, axis=0, keepdims=True) / n - mean * mean
    y = (y - mean) * lax.rsqrt(var + BN_EPS) * g3_ref[...] + be3_ref[...]
    pooled = _mm(pool_ref[...], y)                                     # AdaptiveAvgPool1d(1)
    feat = _mm(pooled, fcw_ref[...]) + fcb_ref[...]                    # fc: (B, 32)
    mid = jnp.maximum(_mm(feat, a1w_ref[...]) + a1b_ref[...], 0.0)     # adapter
    feat = feat + _mm(mid, a2w_ref[...]) + a2b_ref[...]                # residual
    vn = jnp.sqrt(jnp.sum(feat * feat, axis=-1, keepdims=True))
    vib_ref[...] = feat / jnp.maximum(vn, NORM_EPS)                    # F.normalize

    # ---- text branch: one-hot embedding matmul + LSTM + l2norm --------------
    table = emb_ref[...]
    wih = wih_ref[...]
    bias = bih_ref[...]
    whh = whh_ref[...]
    B = txt_ref.shape[0]
    H = HIDDEN
    h = jnp.zeros((B, H), jnp.float32)
    c = jnp.zeros((B, H), jnp.float32)
    # Time loop fully unrolled inside one grid step (SEQ_LEN is small, static).
    for t in range(oh_ref.shape[0]):
        x_t = _mm(oh_ref[t], table)                  # embedding lookup as matmul
        gates = _mm(x_t, wih) + bias + _mm(h, whh)   # (B, 4H); PyTorch order i,f,g,o
        i_g = jax.nn.sigmoid(gates[:, 0:H])
        f_g = jax.nn.sigmoid(gates[:, H:2 * H])
        g_g = jnp.tanh(gates[:, 2 * H:3 * H])
        o_g = jax.nn.sigmoid(gates[:, 3 * H:4 * H])
        c = f_g * c + i_g * g_g
        h = o_g * jnp.tanh(c)
    tn = jnp.sqrt(jnp.sum(h * h, axis=-1, keepdims=True))
    txt_ref[...] = h / jnp.maximum(tn, NORM_EPS)


def head_and_text(p3, w3, b3, g3, be3, poolmat, fcw, fcb, a1w, a1b, a2w, a2b,
                  oh, emb, wih, bih, whh):
    R3, KC3 = p3.shape
    C3 = w3.shape[1]
    B = poolmat.shape[0]
    T, _, V = oh.shape
    return pl.pallas_call(
        _head_and_text_kernel,
        out_shape=(jax.ShapeDtypeStruct((B, EMB_DIM), jnp.float32),
                   jax.ShapeDtypeStruct((B, HIDDEN), jnp.float32)),
        grid=(1,),
        in_specs=[_fs((R3, KC3)), _fs((KC3, C3)), _fs((1, C3)), _fs((1, C3)),
                  _fs((1, C3)), _fs((B, R3)),
                  _fs((C3, EMB_DIM)), _fs((1, EMB_DIM)),
                  _fs((EMB_DIM, BOTTLENECK)), _fs((1, BOTTLENECK)),
                  _fs((BOTTLENECK, EMB_DIM)), _fs((1, EMB_DIM)),
                  _fs((T, B, V)), _fs((V, EMB_DIM)),
                  _fs((EMB_DIM, 4 * HIDDEN)), _fs((1, 4 * HIDDEN)),
                  _fs((HIDDEN, 4 * HIDDEN))],
        out_specs=(_fs((B, EMB_DIM)), _fs((B, HIDDEN))),
        compiler_params=_ARB,
    )(p3, w3, b3.reshape(1, C3), g3.reshape(1, C3), be3.reshape(1, C3), poolmat,
      fcw, fcb.reshape(1, EMB_DIM), a1w, a1b.reshape(1, BOTTLENECK),
      a2w, a2b.reshape(1, EMB_DIM),
      oh, emb, wih, bih.reshape(1, 4 * HIDDEN), whh)


# --------------------------------------------------------------------------
# JAX glue: tiny im2col gathers between stages (fused by XLA under jit)
# --------------------------------------------------------------------------

def _im2col_pooled(x_blc, K, stride, pad):
    """im2col split by even/odd conv output position (for the fused MaxPool)."""
    B, L, C = x_blc.shape
    xp = jnp.pad(x_blc, ((0, 0), (pad, pad), (0, 0)))
    Lout = (L + 2 * pad - K) // stride + 1
    Lp = Lout // 2                     # MaxPool1d(2,2) length (floor, as PyTorch)
    taps = jnp.arange(K)[None, :]
    base = (jnp.arange(Lp) * 2 * stride)[:, None]
    pe = xp[:, base + taps, :].reshape(B * Lp, K * C)
    po = xp[:, base + stride + taps, :].reshape(B * Lp, K * C)
    return pe, po, Lp


def _im2col(x_blc, K, stride, pad):
    B, L, C = x_blc.shape
    xp = jnp.pad(x_blc, ((0, 0), (pad, pad), (0, 0)))
    Lout = (L + 2 * pad - K) // stride + 1
    idx = (jnp.arange(Lout) * stride)[:, None] + jnp.arange(K)[None, :]
    return xp[:, idx, :].reshape(B * Lout, K * C), Lout


# --------------------------------------------------------------------------
# Model
# --------------------------------------------------------------------------

def init_params(key):
    ks = jax.random.split(key, 16)

    def nrm(k, shape, scale=0.05):
        return (scale * jax.random.normal(k, shape)).astype(jnp.float32)

    p = {}
    # VibrationEncoder — conv weights stored pre-flattened as (K*Cin, Cout)
    # (== transpose(w_pt, (2, 1, 0)).reshape(K*Cin, Cout) of PyTorch (Cout,Cin,K)).
    p["conv1_w"] = nrm(ks[0], (64 * 1, 16));    p["conv1_b"] = nrm(ks[1], (16,))
    p["bn1_g"] = jnp.ones((16,), jnp.float32);  p["bn1_b"] = jnp.zeros((16,), jnp.float32)
    p["conv2_w"] = nrm(ks[2], (32 * 16, 32));   p["conv2_b"] = nrm(ks[3], (32,))
    p["bn2_g"] = jnp.ones((32,), jnp.float32);  p["bn2_b"] = jnp.zeros((32,), jnp.float32)
    p["conv3_w"] = nrm(ks[4], (16 * 32, 64));   p["conv3_b"] = nrm(ks[5], (64,))
    p["bn3_g"] = jnp.ones((64,), jnp.float32);  p["bn3_b"] = jnp.zeros((64,), jnp.float32)
    p["fc_w"] = nrm(ks[6], (64, EMB_DIM));      p["fc_b"] = nrm(ks[7], (EMB_DIM,))
    # SimpleTextEncoder (embedding + 1-layer LSTM); weights stored transposed.
    p["embed"] = nrm(ks[8], (VOCAB, EMB_DIM))
    p["w_ih_t"] = nrm(ks[9], (EMB_DIM, 4 * HIDDEN))   # W_ih^T
    p["w_hh_t"] = nrm(ks[10], (HIDDEN, 4 * HIDDEN))   # W_hh^T
    p["b_ih"] = nrm(ks[11], (4 * HIDDEN,))
    p["b_hh"] = nrm(ks[12], (4 * HIDDEN,))
    # ResidualAdapter
    p["ad_w1"] = nrm(ks[13], (EMB_DIM, BOTTLENECK))
    p["ad_b1"] = jnp.zeros((BOTTLENECK,), jnp.float32)
    p["ad_w2"] = nrm(ks[14], (BOTTLENECK, EMB_DIM))
    p["ad_b2"] = jnp.zeros((EMB_DIM,), jnp.float32)
    # logit scale (reference forward applies .exp() with no clamp)
    p["logit_scale"] = jnp.asarray(np.log(1.0 / 0.07), jnp.float32)
    return p


def bearing_clip_forward(p, vibration_data, input_ids):
    B = vibration_data.shape[0]
    x = jnp.transpose(vibration_data, (0, 2, 1))                       # (B, L, 1)

    # ---- vibration encoder: two fused conv+ReLU+BN+pool kernels -------------
    pe, po, L1 = _im2col_pooled(x, K=64, stride=2, pad=31)
    h1 = conv_bn_pool(pe, po, p["conv1_w"], p["conv1_b"], p["bn1_g"], p["bn1_b"])

    pe, po, L2 = _im2col_pooled(h1.reshape(B, L1, 16), K=32, stride=2, pad=15)
    h2 = conv_bn_pool(pe, po, p["conv2_w"], p["conv2_b"], p["bn2_g"], p["bn2_b"])

    p3, L3 = _im2col(h2.reshape(B, L2, 32), K=16, stride=2, pad=7)     # (B*8, 512)
    poolmat = jnp.repeat(jnp.eye(B, dtype=jnp.float32), L3, axis=1) / L3

    # ---- text branch prep: ids -> one-hot so the embedding lookup is a matmul
    # TODO(synk): HF tokenizer has no Pallas equivalent; ids are pre-tokenized.
    oh = jax.nn.one_hot(input_ids, VOCAB, dtype=jnp.float32).transpose(1, 0, 2)

    # ---- fused final kernel: conv3 head + adapter + l2norm  +  text LSTM ----
    vib_f, txt_f = head_and_text(
        p3, p["conv3_w"], p["conv3_b"], p["bn3_g"], p["bn3_b"], poolmat,
        p["fc_w"], p["fc_b"], p["ad_w1"], p["ad_b1"], p["ad_w2"], p["ad_b2"],
        oh, p["embed"], p["w_ih_t"], p["b_ih"] + p["b_hh"], p["w_hh_t"])

    return vib_f, txt_f, jnp.exp(p["logit_scale"])


# --------------------------------------------------------------------------

if __name__ == "__main__":
    key = jax.random.PRNGKey(0)
    k_params, k_vib, k_txt = jax.random.split(key, 3)

    params = init_params(k_params)
    vibration_data = jax.random.normal(k_vib, (2, 1, SIG_LEN), dtype=jnp.float32)
    input_ids = jax.random.randint(k_txt, (2, SEQ_LEN), 0, VOCAB)

    fwd = jax.jit(bearing_clip_forward)
    vib_f, txt_f, scale = fwd(params, vibration_data, input_ids)
    jax.block_until_ready((vib_f, txt_f, scale))

    assert vib_f.shape == (2, EMB_DIM) and txt_f.shape == (2, EMB_DIM)
    print("KERNEL_OK")
</pallas_src>

<mosaic_0001>
module attributes {stable_mosaic.version = 11 : i64} {
  func.func @_conv_bn_pool_kernel(%arg0: i32, %arg1: memref<128x64xf32, #tpu.memory_space<vmem>>, %arg2: memref<128x64xf32, #tpu.memory_space<vmem>>, %arg3: memref<64x16xf32, #tpu.memory_space<vmem>>, %arg4: memref<1x16xf32, #tpu.memory_space<vmem>>, %arg5: memref<1x16xf32, #tpu.memory_space<vmem>>, %arg6: memref<1x16xf32, #tpu.memory_space<vmem>>, %arg7: memref<128x16xf32, #tpu.memory_space<vmem>>) attributes {dimension_semantics = [#tpu.dimension_semantics<arbitrary>], iteration_bounds = array<i64: 1>, scalar_prefetch = 0 : i64, scratch_operands = 0 : i64, tpu.core_type = #tpu.core_type<tc>, window_params = [{pipeline_mode = #tpu.pipeline_mode<synchronous>, transform_indices = @transform_0, window_bounds = array<i64: 128, 64>}, {pipeline_mode = #tpu.pipeline_mode<synchronous>, transform_indices = @transform_1, window_bounds = array<i64: 128, 64>}, {pipeline_mode = #tpu.pipeline_mode<synchronous>, transform_indices = @transform_2, window_bounds = array<i64: 64, 16>}, {pipeline_mode = #tpu.pipeline_mode<synchronous>, transform_indices = @transform_3, window_bounds = array<i64: 1, 16>}, {pipeline_mode = #tpu.pipeline_mode<synchronous>, transform_indices = @transform_4, window_bounds = array<i64: 1, 16>}, {pipeline_mode = #tpu.pipeline_mode<synchronous>, transform_indices = @transform_5, window_bounds = array<i64: 1, 16>}, {pipeline_mode = #tpu.pipeline_mode<synchronous>, transform_indices = @transform_6, window_bounds = array<i64: 128, 16>}]} {
    %c0 = arith.constant 0 : index
    %c0_0 = arith.constant 0 : index
    %0 = vector.load %arg3[%c0, %c0_0] : memref<64x16xf32, #tpu.memory_space<vmem>>, vector<64x16xf32>
    %c0_1 = arith.constant 0 : index
    %c0_2 = arith.constant 0 : index
    %1 = vector.load %arg4[%c0_1, %c0_2] : memref<1x16xf32, #tpu.memory_space<vmem>>, vector<1x16xf32>
    %c0_3 = arith.constant 0 : index
    %c0_4 = arith.constant 0 : index
    %2 = vector.load %arg1[%c0_3, %c0_4] : memref<128x64xf32, #tpu.memory_space<vmem>>, vector<128x64xf32>
    %cst = arith.constant dense<0.000000e+00> : vector<128x16xf32>
    %3 = tpu.matmul %2, %0, %cst {dimension_numbers = #tpu.dot_dimension_numbers<[1], [0], [0], [1], [0, 0, 1, 1], [], []>} : vector<128x64xf32>, vector<64x16xf32>, vector<128x16xf32> -> vector<128x16xf32>
    %4 = vector.broadcast %1 : vector<1x16xf32> to vector<128x16xf32>
    %5 = arith.addf %3, %4 : vector<128x16xf32>
    %cst_5 = arith.constant 0.000000e+00 : f32
    %6 = vector.broadcast %cst_5 : f32 to vector<128x16xf32>
    %7 = arith.maximumf %5, %6 : vector<128x16xf32>
    %c0_6 = arith.constant 0 : index
    %c0_7 = arith.constant 0 : index
    %8 = vector.load %arg2[%c0_6, %c0_7] : memref<128x64xf32, #tpu.memory_space<vmem>>, vector<128x64xf32>
    %cst_8 = arith.constant dense<0.000000e+00> : vector<128x16xf32>
    %9 = tpu.matmul %8, %0, %cst_8 {dimension_numbers = #tpu.dot_dimension_numbers<[1], [0], [0], [1], [0, 0, 1, 1], [], []>} : vector<128x64xf32>, vector<64x16xf32>, vector<128x16xf32> -> vector<128x16xf32>
    %10 = vector.broadcast %1 : vector<1x16xf32> to vector<128x16xf32>
    %11 = arith.addf %9, %10 : vector<128x16xf32>
    %cst_9 = arith.constant 0.000000e+00 : f32
    %12 = vector.broadcast %cst_9 : f32 to vector<128x16xf32>
    %13 = arith.maximumf %11, %12 : vector<128x16xf32>
    %cst_10 = arith.constant dense<0.000000e+00> : vector<16xf32>
    %14 = vector.multi_reduction <add>, %7, %cst_10 [0] : vector<128x16xf32> to vector<16xf32>
    %15 = vector.shape_cast %14 : vector<16xf32> to vector<1x16xf32>
    %cst_11 = arith.constant dense<0.000000e+00> : vector<16xf32>
    %16 = vector.multi_reduction <add>, %13, %cst_11 [0] : vector<128x16xf32> to vector<16xf32>
    %17 = vector.shape_cast %16 : vector<16xf32> to vector<1x16xf32>
    %18 = arith.addf %15, %17 : vector<1x16xf32>
    %cst_12 = arith.constant 2.560000e+02 : f32
    %19 = vector.broadcast %cst_12 : f32 to vector<1x16xf32>
    %20 = arith.divf %18, %19 : vector<1x16xf32>
    %21 = arith.mulf %7, %7 : vector<128x16xf32>
    %cst_13 = arith.constant dense<0.000000e+00> : vector<16xf32>
    %22 = vector.multi_reduction <add>, %21, %cst_13 [0] : vector<128x16xf32> to vector<16xf32>
    %23 = vector.shape_cast %22 : vector<16xf32> to vector<1x16xf32>
    %24 = arith.mulf %13, %13 : vector<128x16xf32>
    %cst_14 = arith.constant dense<0.000000e+00> : vector<16xf32>
    %25 = vector.multi_reduction <add>, %24, %cst_14 [0] : vector<128x16xf32> to vector<16xf32>
    %26 = vector.shape_cast %25 : vector<16xf32> to vector<1x16xf32>
    %27 = arith.addf %23, %26 : vector<1x16xf32>
    %cst_15 = arith.constant 2.560000e+02 : f32
    %28 = vector.broadcast %cst_15 : f32 to vector<1x16xf32>
    %29 = arith.divf %27, %28 : vector<1x16xf32>
    %30 = arith.mulf %20, %20 : vector<1x16xf32>
    %31 = arith.subf %29, %30 : vector<1x16xf32>
    %cst_16 = arith.constant 9.99999974E-6 : f32
    %32 = vector.broadcast %cst_16 : f32 to vector<1x16xf32>
    %33 = arith.addf %31, %32 : vector<1x16xf32>
    %34 = math.rsqrt %33 : vector<1x16xf32>
    %c0_17 = arith.constant 0 : index
    %c0_18 = arith.constant 0 : index
    %35 = vector.load %arg5[%c0_17, %c0_18] : memref<1x16xf32, #tpu.memory_space<vmem>>, vector<1x16xf32>
    %36 = arith.mulf %34, %35 : vector<1x16xf32>
    %c0_19 = arith.constant 0 : index
    %c0_20 = arith.constant 0 : index
    %37 = vector.load %arg6[%c0_19, %c0_20] : memref<1x16xf32, #tpu.memory_space<vmem>>, vector<1x16xf32>
    %38 = arith.mulf %20, %36 : vector<1x16xf32>
    %39 = arith.subf %37, %38 : vector<1x16xf32>
    %40 = vector.broadcast %36 : vector<1x16xf32> to vector<128x16xf32>
    %41 = arith.mulf %7, %40 : vector<128x16xf32>
    %42 = vector.broadcast %39 : vector<1x16xf32> to vector<128x16xf32>
    %43 = arith.addf %41, %42 : vector<128x16xf32>
    %44 = vector.broadcast %36 : vector<1x16xf32> to vector<128x16xf32>
    %45 = arith.mulf %13, %44 : vector<128x16xf32>
    %46 = vector.broadcast %39 : vector<1x16xf32> to vector<128x16xf32>
    %47 = arith.addf %45, %46 : vector<128x16xf32>
    %48 = arith.maximumf %43, %47 : vector<128x16xf32>
    %c0_21 = arith.constant 0 : index
    %c0_22 = arith.constant 0 : index
    %49 = vector.load %arg7[%c0_21, %c0_22] : memref<128x16xf32, #tpu.memory_space<vmem>>, vector<128x16xf32>
    tpu.vector_store %arg7[%c0_21, %c0_22], %48 {strides = array<i32>} : memref<128x16xf32, #tpu.memory_space<vmem>>, vector<128x16xf32>,
    return
  }
  func.func @transform_0(%arg0: i32) -> (i32, i32) {
    %c0_i32 = arith.constant 0 : i32
    %c0_i32_0 = arith.constant 0 : i32
    %c0_i32_1 = arith.constant 0 : i32
    return %c0_i32, %c0_i32_0 : i32, i32
  }
  func.func @transform_1(%arg0: i32) -> (i32, i32) {
    %c0_i32 = arith.constant 0 : i32
    %c0_i32_0 = arith.constant 0 : i32
    %c0_i32_1 = arith.constant 0 : i32
    return %c0_i32, %c0_i32_0 : i32, i32
  }
  func.func @transform_2(%arg0: i32) -> (i32, i32) {
    %c0_i32 = arith.constant 0 : i32
    %c0_i32_0 = arith.constant 0 : i32
    %c0_i32_1 = arith.constant 0 : i32
    return %c0_i32, %c0_i32_0 : i32, i32
  }
  func.func @transform_3(%arg0: i32) -> (i32, i32) {
    %c0_i32 = arith.constant 0 : i32
    %c0_i32_0 = arith.constant 0 : i32
    %c0_i32_1 = arith.constant 0 : i32
    return %c0_i32, %c0_i32_0 : i32, i32
  }
  func.func @transform_4(%arg0: i32) -> (i32, i32) {
    %c0_i32 = arith.constant 0 : i32
    %c0_i32_0 = arith.constant 0 : i32
    %c0_i32_1 = arith.constant 0 : i32
    return %c0_i32, %c0_i32_0 : i32, i32
  }
  func.func @transform_5(%arg0: i32) -> (i32, i32) {
    %c0_i32 = arith.constant 0 : i32
    %c0_i32_0 = arith.constant 0 : i32
    %c0_i32_1 = arith.constant 0 : i32
    return %c0_i32, %c0_i32_0 : i32, i32
  }
  func.func @transform_6(%arg0: i32) -> (i32, i32) {
    %c0_i32 = arith.constant 0 : i32
    %c0_i32_0 = arith.constant 0 : i32
    %c0_i32_1 = arith.constant 0 : i32
    return %c0_i32, %c0_i32_0 : i32, i32
  }
}

module attributes {stable_mosaic.version = 11 : i64} {
  func.func @_conv_bn_pool_kernel(%arg0: i32, %arg1: memref<32x512xf32, #tpu.memory_space<vmem>>, %arg2: memref<32x512xf32, #tpu.memory_space<vmem>>, %arg3: memref<512x32xf32, #tpu.memory_space<vmem>>, %arg4: memref<1x32xf32, #tpu.memory_space<vmem>>, %arg5: memref<1x32xf32, #tpu.memory_space<vmem>>, %arg6: memref<1x32xf32, #tpu.memory_space<vmem>>, %arg7: memref<32x32xf32, #tpu.memory_space<vmem>>) attributes {dimension_semantics = [#tpu.dimension_semantics<arbitrary>], iteration_bounds = array<i64: 1>, scalar_prefetch = 0 : i64, scratch_operands = 0 : i64, tpu.core_type = #tpu.core_type<tc>, window_params = [{pipeline_mode = #tpu.pipeline_mode<synchronous>, transform_indices = @transform_0, window_bounds = array<i64: 32, 512>}, {pipeline_mode = #tpu.pipeline_mode<synchronous>, transform_indices = @transform_1, window_bounds = array<i64: 32, 512>}, {pipeline_mode = #tpu.pipeline_mode<synchronous>, transform_indices = @transform_2, window_bounds = array<i64: 512, 32>}, {pipeline_mode = #tpu.pipeline_mode<synchronous>, transform_indices = @transform_3, window_bounds = array<i64: 1, 32>}, {pipeline_mode = #tpu.pipeline_mode<synchronous>, transform_indices = @transform_4, window_bounds = array<i64: 1, 32>}, {pipeline_mode = #tpu.pipeline_mode<synchronous>, transform_indices = @transform_5, window_bounds = array<i64: 1, 32>}, {pipeline_mode = #tpu.pipeline_mode<synchronous>, transform_indices = @transform_6, window_bounds = array<i64: 32, 32>}]} {
    %c0 = arith.constant 0 : index
    %c0_0 = arith.constant 0 : index
    %0 = vector.load %arg3[%c0, %c0_0] : memref<512x32xf32, #tpu.memory_space<vmem>>, vector<512x32xf32>
    %c0_1 = arith.constant 0 : index
    %c0_2 = arith.constant 0 : index
    %1 = vector.load %arg4[%c0_1, %c0_2] : memref<1x32xf32, #tpu.memory_space<vmem>>, vector<1x32xf32>
    %c0_3 = arith.constant 0 : index
    %c0_4 = arith.constant 0 : index
    %2 = vector.load %arg1[%c0_3, %c0_4] : memref<32x512xf32, #tpu.memory_space<vmem>>, vector<32x512xf32>
    %cst = arith.constant dense<0.000000e+00> : vector<32x32xf32>
    %3 = tpu.matmul %2, %0, %cst {dimension_numbers = #tpu.dot_dimension_numbers<[1], [0], [0], [1], [0, 0, 1, 1], [], []>} : vector<32x512xf32>, vector<512x32xf32>, vector<32x32xf32> -> vector<32x32xf32>
    %4 = vector.broadcast %1 : vector<1x32xf32> to vector<32x32xf32>
    %5 = arith.addf %3, %4 : vector<32x32xf32>
    %cst_5 = arith.constant 0.000000e+00 : f32
    %6 = vector.broadcast %cst_5 : f32 to vector<32x32xf32>
    %7 = arith.maximumf %5, %6 : vector<32x32xf32>
    %c0_6 = arith.constant 0 : index
    %c0_7 = arith.constant 0 : index
    %8 = vector.load %arg2[%c0_6, %c0_7] : memref<32x512xf32, #tpu.memory_space<vmem>>, vector<32x512xf32>
    %cst_8 = arith.constant dense<0.000000e+00> : vector<32x32xf32>
    %9 = tpu.matmul %8, %0, %cst_8 {dimension_numbers = #tpu.dot_dimension_numbers<[1], [0], [0], [1], [0, 0, 1, 1], [], []>} : vector<32x512xf32>, vector<512x32xf32>, vector<32x32xf32> -> vector<32x32xf32>
    %10 = vector.broadcast %1 : vector<1x32xf32> to vector<32x32xf32>
    %11 = arith.addf %9, %10 : vector<32x32xf32>
    %cst_9 = arith.constant 0.000000e+00 : f32
    %12 = vector.broadcast %cst_9 : f32 to vector<32x32xf32>
    %13 = arith.maximumf %11, %12 : vector<32x32xf32>
    %cst_10 = arith.constant dense<0.000000e+00> : vector<32xf32>
    %14 = vector.multi_reduction <add>, %7, %cst_10 [0] : vector<32x32xf32> to vector<32xf32>
    %15 = vector.shape_cast %14 : vector<32xf32> to vector<1x32xf32>
    %cst_11 = arith.constant dense<0.000000e+00> : vector<32xf32>
    %16 = vector.multi_reduction <add>, %13, %cst_11 [0] : vector<32x32xf32> to vector<32xf32>
    %17 = vector.shape_cast %16 : vector<32xf32> to vector<1x32xf32>
    %18 = arith.addf %15, %17 : vector<1x32xf32>
    %cst_12 = arith.constant 6.400000e+01 : f32
    %19 = vector.broadcast %cst_12 : f32 to vector<1x32xf32>
    %20 = arith.divf %18, %19 : vector<1x32xf32>
    %21 = arith.mulf %7, %7 : vector<32x32xf32>
    %cst_13 = arith.constant dense<0.000000e+00> : vector<32xf32>
    %22 = vector.multi_reduction <add>, %21, %cst_13 [0] : vector<32x32xf32> to vector<32xf32>
    %23 = vector.shape_cast %22 : vector<32xf32> to vector<1x32xf32>
    %24 = arith.mulf %13, %13 : vector<32x32xf32>
    %cst_14 = arith.constant dense<0.000000e+00> : vector<32xf32>
    %25 = vector.multi_reduction <add>, %24, %cst_14 [0] : vector<32x32xf32> to vector<32xf32>
    %26 = vector.shape_cast %25 : vector<32xf32> to vector<1x32xf32>
    %27 = arith.addf %23, %26 : vector<1x32xf32>
    %cst_15 = arith.constant 6.400000e+01 : f32
    %28 = vector.broadcast %cst_15 : f32 to vector<1x32xf32>
    %29 = arith.divf %27, %28 : vector<1x32xf32>
    %30 = arith.mulf %20, %20 : vector<1x32xf32>
    %31 = arith.subf %29, %30 : vector<1x32xf32>
    %cst_16 = arith.constant 9.99999974E-6 : f32
    %32 = vector.broadcast %cst_16 : f32 to vector<1x32xf32>
    %33 = arith.addf %31, %32 : vector<1x32xf32>
    %34 = math.rsqrt %33 : vector<1x32xf32>
    %c0_17 = arith.constant 0 : index
    %c0_18 = arith.constant 0 : index
    %35 = vector.load %arg5[%c0_17, %c0_18] : memref<1x32xf32, #tpu.memory_space<vmem>>, vector<1x32xf32>
    %36 = arith.mulf %34, %35 : vector<1x32xf32>
    %c0_19 = arith.constant 0 : index
    %c0_20 = arith.constant 0 : index
    %37 = vector.load %arg6[%c0_19, %c0_20] : memref<1x32xf32, #tpu.memory_space<vmem>>, vector<1x32xf32>
    %38 = arith.mulf %20, %36 : vector<1x32xf32>
    %39 = arith.subf %37, %38 : vector<1x32xf32>
    %40 = vector.broadcast %36 : vector<1x32xf32> to vector<32x32xf32>
    %41 = arith.mulf %7, %40 : vector<32x32xf32>
    %42 = vector.broadcast %39 : vector<1x32xf32> to vector<32x32xf32>
    %43 = arith.addf %41, %42 : vector<32x32xf32>
    %44 = vector.broadcast %36 : vector<1x32xf32> to vector<32x32xf32>
    %45 = arith.mulf %13, %44 : vector<32x32xf32>
    %46 = vector.broadcast %39 : vector<1x32xf32> to vector<32x32xf32>
    %47 = arith.addf %45, %46 : vector<32x32xf32>
    %48 = arith.maximumf %43, %47 : vector<32x32xf32>
    %c0_21 = arith.constant 0 : index
    %c0_22 = arith.constant 0 : index
    %49 = vector.load %arg7[%c0_21, %c0_22] : memref<32x32xf32, #tpu.memory_space<vmem>>, vector<32x32xf32>
    tpu.vector_store %arg7[%c0_21, %c0_22], %48 {strides = array<i32>} : memref<32x32xf32, #tpu.memory_space<vmem>>, vector<32x32xf32>,
    return
  }
  func.func @transform_0(%arg0: i32) -> (i32, i32) {
    %c0_i32 = arith.constant 0 : i32
    %c0_i32_0 = arith.constant 0 : i32
    %c0_i32_1 = arith.constant 0 : i32
    return %c0_i32, %c0_i32_0 : i32, i32
  }
  func.func @transform_1(%arg0: i32) -> (i32, i32) {
    %c0_i32 = arith.constant 0 : i32
    %c0_i32_0 = arith.constant 0 : i32
    %c0_i32_1 = arith.constant 0 : i32
    return %c0_i32, %c0_i32_0 : i32, i32
  }
  func.func @transform_2(%arg0: i32) -> (i32, i32) {
    %c0_i32 = arith.constant 0 : i32
    %c0_i32_0 = arith.constant 0 : i32
    %c0_i32_1 = arith.constant 0 : i32
    return %c0_i32, %c0_i32_0 : i32, i32
  }
  func.func @transform_3(%arg0: i32) -> (i32, i32) {
    %c0_i32 = arith.constant 0 : i32
    %c0_i32_0 = arith.constant 0 : i32
    %c0_i32_1 = arith.constant 0 : i32
    return %c0_i32, %c0_i32_0 : i32, i32
  }
  func.func @transform_4(%arg0: i32) -> (i32, i32) {
    %c0_i32 = arith.constant 0 : i32
    %c0_i32_0 = arith.constant 0 : i32
    %c0_i32_1 = arith.constant 0 : i32
    return %c0_i32, %c0_i32_0 : i32, i32
  }
  func.func @transform_5(%arg0: i32) -> (i32, i32) {
    %c0_i32 = arith.constant 0 : i32
    %c0_i32_0 = arith.constant 0 : i32
    %c0_i32_1 = arith.constant 0 : i32
    return %c0_i32, %c0_i32_0 : i32, i32
  }
  func.func @transform_6(%arg0: i32) -> (i32, i32) {
    %c0_i32 = arith.constant 0 : i32
    %c0_i32_0 = arith.constant 0 : i32
    %c0_i32_1 = arith.constant 0 : i32
    return %c0_i32, %c0_i32_0 : i32, i32
  }
}

module attributes {stable_mosaic.version = 11 : i64} {
  func.func @_head_and_text_kernel(%arg0: i32, %arg1: memref<16x512xf32, #tpu.memory_space<vmem>>, %arg2: memref<512x64xf32, #tpu.memory_space<vmem>>, %arg3: memref<1x64xf32, #tpu.memory_space<vmem>>, %arg4: memref<1x64xf32, #tpu.memory_space<vmem>>, %arg5: memref<1x64xf32, #tpu.memory_space<vmem>>, %arg6: memref<2x16xf32, #tpu.memory_space<vmem>>, %arg7: memref<64x32xf32, #tpu.memory_space<vmem>>, %arg8: memref<1x32xf32, #tpu.memory_space<vmem>>, %arg9: memref<32x64xf32, #tpu.memory_space<vmem>>, %arg10: memref<1x64xf32, #tpu.memory_space<vmem>>, %arg11: memref<64x32xf32, #tpu.memory_space<vmem>>, %arg12: memref<1x32xf32, #tpu.memory_space<vmem>>, %arg13: memref<8x2x100xf32, #tpu.memory_space<vmem>>, %arg14: memref<100x32xf32, #tpu.memory_space<vmem>>, %arg15: memref<32x128xf32, #tpu.memory_space<vmem>>, %arg16: memref<1x128xf32, #tpu.memory_space<vmem>>, %arg17: memref<32x128xf32, #tpu.memory_space<vmem>>, %arg18: memref<2x32xf32, #tpu.memory_space<vmem>>, %arg19: memref<2x32xf32, #tpu.memory_space<vmem>>) attributes {dimension_semantics = [#tpu.dimension_semantics<arbitrary>], iteration_bounds = array<i64: 1>, scalar_prefetch = 0 : i64, scratch_operands = 0 : i64, tpu.core_type = #tpu.core_type<tc>, window_params = [{pipeline_mode = #tpu.pipeline_mode<synchronous>, transform_indices = @transform_0, window_bounds = array<i64: 16, 512>}, {pipeline_mode = #tpu.pipeline_mode<synchronous>, transform_indices = @transform_1, window_bounds = array<i64: 512, 64>}, {pipeline_mode = #tpu.pipeline_mode<synchronous>, transform_indices = @transform_2, window_bounds = array<i64: 1, 64>}, {pipeline_mode = #tpu.pipeline_mode<synchronous>, transform_indices = @transform_3, window_bounds = array<i64: 1, 64>}, {pipeline_mode = #tpu.pipeline_mode<synchronous>, transform_indices = @transform_4, window_bounds = array<i64: 1, 64>}, {pipeline_mode = #tpu.pipeline_mode<synchronous>, transform_indices = @transform_5, window_bounds = array<i64: 2, 16>}, {pipeline_mode = #tpu.pipeline_mode<synchronous>, transform_indices = @transform_6, window_bounds = array<i64: 64, 32>}, {pipeline_mode = #tpu.pipeline_mode<synchronous>, transform_indices = @transform_7, window_bounds = array<i64: 1, 32>}, {pipeline_mode = #tpu.pipeline_mode<synchronous>, transform_indices = @transform_8, window_bounds = array<i64: 32, 64>}, {pipeline_mode = #tpu.pipeline_mode<synchronous>, transform_indices = @transform_9, window_bounds = array<i64: 1, 64>}, {pipeline_mode = #tpu.pipeline_mode<synchronous>, transform_indices = @transform_10, window_bounds = array<i64: 64, 32>}, {pipeline_mode = #tpu.pipeline_mode<synchronous>, transform_indices = @transform_11, window_bounds = array<i64: 1, 32>}, {pipeline_mode = #tpu.pipeline_mode<synchronous>, transform_indices = @transform_12, window_bounds = array<i64: 8, 2, 100>}, {pipeline_mode = #tpu.pipeline_mode<synchronous>, transform_indices = @transform_13, window_bounds = array<i64: 100, 32>}, {pipeline_mode = #tpu.pipeline_mode<synchronous>, transform_indices = @transform_14, window_bounds = array<i64: 32, 128>}, {pipeline_mode = #tpu.pipeline_mode<synchronous>, transform_indices = @transform_15, window_bounds = array<i64: 1, 128>}, {pipeline_mode = #tpu.pipeline_mode<synchronous>, transform_indices = @transform_16, window_bounds = array<i64: 32, 128>}, {pipeline_mode = #tpu.pipeline_mode<synchronous>, transform_indices = @transform_17, window_bounds = array<i64: 2, 32>}, {pipeline_mode = #tpu.pipeline_mode<synchronous>, transform_indices = @transform_18, window_bounds = array<i64: 2, 32>}]} {
    %c0 = arith.constant 0 : index
    %c0_0 = arith.constant 0 : index
    %0 = vector.load %arg1[%c0, %c0_0] : memref<16x512xf32, #tpu.memory_space<vmem>>, vector<16x512xf32>
    %c0_1 = arith.constant 0 : index
    %c0_2 = arith.constant 0 : index
    %1 = vector.load %arg2[%c0_1, %c0_2] : memref<512x64xf32, #tpu.memory_space<vmem>>, vector<512x64xf32>
    %cst = arith.constant dense<0.000000e+00> : vector<16x64xf32>
    %2 = tpu.matmul %0, %1, %cst {dimension_numbers = #tpu.dot_dimension_numbers<[1], [0], [0], [1], [0, 0, 1, 1], [], []>} : vector<16x512xf32>, vector<512x64xf32>, vector<16x64xf32> -> vector<16x64xf32>
    %c0_3 = arith.constant 0 : index
    %c0_4 = arith.constant 0 : index
    %3 = vector.load %arg3[%c0_3, %c0_4] : memref<1x64xf32, #tpu.memory_space<vmem>>, vector<1x64xf32>
    %4 = vector.broadcast %3 : vector<1x64xf32> to vector<16x64xf32>
    %5 = arith.addf %2, %4 : vector<16x64xf32>
    %cst_5 = arith.constant 0.000000e+00 : f32
    %6 = vector.broadcast %cst_5 : f32 to vector<16x64xf32>
    %7 = arith.maximumf %5, %6 : vector<16x64xf32>
    %cst_6 = arith.constant dense<0.000000e+00> : vector<64xf32>
    %8 = vector.multi_reduction <add>, %7, %cst_6 [0] : vector<16x64xf32> to vector<64xf32>
    %9 = vector.shape_cast %8 : vector<64xf32> to vector<1x64xf32>
    %cst_7 = arith.constant 1.600000e+01 : f32
    %10 = vector.broadcast %cst_7 : f32 to vector<1x64xf32>
    %11 = arith.divf %9, %10 : vector<1x64xf32>
    %12 = arith.mulf %7, %7 : vector<16x64xf32>
    %cst_8 = arith.constant dense<0.000000e+00> : vector<64xf32>
    %13 = vector.multi_reduction <add>, %12, %cst_8 [0] : vector<16x64xf32> to vector<64xf32>
    %14 = vector.shape_cast %13 : vector<64xf32> to vector<1x64xf32>
    %cst_9 = arith.constant 1.600000e+01 : f32
    %15 = vector.broadcast %cst_9 : f32 to vector<1x64xf32>
    %16 = arith.divf %14, %15 : vector<1x64xf32>
    %17 = arith.mulf %11, %11 : vector<1x64xf32>
    %18 = arith.subf %16, %17 : vector<1x64xf32>
    %19 = vector.broadcast %11 : vector<1x64xf32> to vector<16x64xf32>
    %20 = arith.subf %7, %19 : vector<16x64xf32>
    %cst_10 = arith.constant 9.99999974E-6 : f32
    %21 = vector.broadcast %cst_10 : f32 to vector<1x64xf32>
    %22 = arith.addf %18, %21 : vector<1x64xf32>
    %23 = math.rsqrt %22 : vector<1x64xf32>
    %24 = vector.broadcast %23 : vector<1x64xf32> to vector<16x64xf32>
    %25 = arith.mulf %20, %24 : vector<16x64xf32>
    %c0_11 = arith.constant 0 : index
    %c0_12 = arith.constant 0 : index
    %26 = vector.load %arg4[%c0_11, %c0_12] : memref<1x64xf32, #tpu.memory_space<vmem>>, vector<1x64xf32>
    %27 = vector.broadcast %26 : vector<1x64xf32> to vector<16x64xf32>
    %28 = arith.mulf %25, %27 : vector<16x64xf32>
    %c0_13 = arith.constant 0 : index
    %c0_14 = arith.constant 0 : index
    %29 = vector.load %arg5[%c0_13, %c0_14] : memref<1x64xf32, #tpu.memory_space<vmem>>, vector<1x64xf32>
    %30 = vector.broadcast %29 : vector<1x64xf32> to vector<16x64xf32>
    %31 = arith.addf %28, %30 : vector<16x64xf32>
    %c0_15 = arith.constant 0 : index
    %c0_16 = arith.constant 0 : index
    %32 = vector.load %arg6[%c0_15, %c0_16] : memref<2x16xf32, #tpu.memory_space<vmem>>, vector<2x16xf32>
    %cst_17 = arith.constant dense<0.000000e+00> : vector<2x64xf32>
    %33 = tpu.matmul %32, %31, %cst_17 {dimension_numbers = #tpu.dot_dimension_numbers<[1], [0], [0], [1], [0, 0, 1, 1], [], []>} : vector<2x16xf32>, vector<16x64xf32>, vector<2x64xf32> -> vector<2x64xf32>
    %c0_18 = arith.constant 0 : index
    %c0_19 = arith.constant 0 : index
    %34 = vector.load %arg7[%c0_18, %c0_19] : memref<64x32xf32, #tpu.memory_space<vmem>>, vector<64x32xf32>
    %cst_20 = arith.constant dense<0.000000e+00> : vector<2x32xf32>
    %35 = tpu.matmul %33, %34, %cst_20 {dimension_numbers = #tpu.dot_dimension_numbers<[1], [0], [0], [1], [0, 0, 1, 1], [], []>} : vector<2x64xf32>, vector<64x32xf32>, vector<2x32xf32> -> vector<2x32xf32>
    %c0_21 = arith.constant 0 : index
    %c0_22 = arith.constant 0 : index
    %36 = vector.load %arg8[%c0_21, %c0_22] : memref<1x32xf32, #tpu.memory_space<vmem>>, vector<1x32xf32>
    %37 = vector.broadcast %36 : vector<1x32xf32> to vector<2x32xf32>
    %38 = arith.addf %35, %37 : vector<2x32xf32>
    %c0_23 = arith.constant 0 : index
    %c0_24 = arith.constant 0 : index
    %39 = vector.load %arg9[%c0_23, %c0_24] : memref<32x64xf32, #tpu.memory_space<vmem>>, vector<32x64xf32>
    %cst_25 = arith.constant dense<0.000000e+00> : vector<2x64xf32>
    %40 = tpu.matmul %38, %39, %cst_25 {dimension_numbers = #tpu.dot_dimension_numbers<[1], [0], [0], [1], [0, 0, 1, 1], [], []>} : vector<2x32xf32>, vector<32x64xf32>, vector<2x64xf32> -> vector<2x64xf32>
    %c0_26 = arith.constant 0 : index
    %c0_27 = arith.constant 0 : index
    %41 = vector.load %arg10[%c0_26, %c0_27] : memref<1x64xf32, #tpu.memory_space<vmem>>, vector<1x64xf32>
    %42 = vector.broadcast %41 : vector<1x64xf32> to vector<2x64xf32>
    %43 = arith.addf %40, %42 : vector<2x64xf32>
    %cst_28 = arith.constant 0.000000e+00 : f32
    %44 = vector.broadcast %cst_28 : f32 to vector<2x64xf32>
    %45 = arith.maximumf %43, %44 : vector<2x64xf32>
    %c0_29 = arith.constant 0 : index
    %c0_30 = arith.constant 0 : index
    %46 = vector.load %arg11[%c0_29, %c0_30] : memref<64x32xf32, #tpu.memory_space<vmem>>, vector<64x32xf32>
    %cst_31 = arith.constant dense<0.000000e+00> : vector<2x32xf32>
    %47 = tpu.matmul %45, %46, %cst_31 {dimension_numbers = #tpu.dot_dimension_numbers<[1], [0], [0], [1], [0, 0, 1, 1], [], []>} : vector<2x64xf32>, vector<64x32xf32>, vector<2x32xf32> -> vector<2x32xf32>
    %48 = arith.addf %38, %47 : vector<2x32xf32>
    %c0_32 = arith.constant 0 : index
    %c0_33 = arith.constant 0 : index
    %49 = vector.load %arg12[%c0_32, %c0_33] : memref<1x32xf32, #tpu.memory_space<vmem>>, vector<1x32xf32>
    %50 = vector.broadcast %49 : vector<1x32xf32> to vector<2x32xf32>
    %51 = arith.addf %48, %50 : vector<2x32xf32>
    %52 = arith.mulf %51, %51 : vector<2x32xf32>
    %cst_34 = arith.constant dense<0.000000e+00> : vector<2xf32>
    %53 = vector.multi_reduction <add>, %52, %cst_34 [1] : vector<2x32xf32> to vector<2xf32>
    %54 = vector.shape_cast %53 : vector<2xf32> to vector<2x1xf32>
    %55 = math.sqrt %54 : vector<2x1xf32>
    %cst_35 = arith.constant 9.99999996E-13 : f32
    %56 = vector.broadcast %cst_35 : f32 to vector<2x1xf32>
    %57 = arith.maximumf %55, %56 : vector<2x1xf32>
    %58 = vector.broadcast %57 : vector<2x1xf32> to vector<2x32xf32>
    %59 = arith.divf %51, %58 : vector<2x32xf32>
    %c0_36 = arith.constant 0 : index
    %c0_37 = arith.constant 0 : index
    %60 = vector.load %arg18[%c0_36, %c0_37] : memref<2x32xf32, #tpu.memory_space<vmem>>, vector<2x32xf32>
    tpu.vector_store %arg18[%c0_36, %c0_37], %59 {strides = array<i32>} : memref<2x32xf32, #tpu.memory_space<vmem>>, vector<2x32xf32>,
    %c0_38 = arith.constant 0 : index
    %c0_39 = arith.constant 0 : index
    %61 = vector.load %arg14[%c0_38, %c0_39] : memref<100x32xf32, #tpu.memory_space<vmem>>, vector<100x32xf32>
    %c0_40 = arith.constant 0 : index
    %c0_41 = arith.constant 0 : index
    %62 = vector.load %arg15[%c0_40, %c0_41] : memref<32x128xf32, #tpu.memory_space<vmem>>, vector<32x128xf32>
    %c0_42 = arith.constant 0 : index
    %c0_43 = arith.constant 0 : index
    %63 = vector.load %arg16[%c0_42, %c0_43] : memref<1x128xf32, #tpu.memory_space<vmem>>, vector<1x128xf32>
    %c0_44 = arith.constant 0 : index
    %c0_45 = arith.constant 0 : index
    %64 = vector.load %arg17[%c0_44, %c0_45] : memref<32x128xf32, #tpu.memory_space<vmem>>, vector<32x128xf32>
    %cst_46 = arith.constant 0.000000e+00 : f32
    %65 = vector.broadcast %cst_46 : f32 to vector<2x32xf32>
    %cst_47 = arith.constant 0.000000e+00 : f32
    %66 = vector.broadcast %cst_47 : f32 to vector<2x32xf32>
    %c0_48 = arith.constant 0 : index
    %c0_49 = arith.constant 0 : index
    %c0_50 = arith.constant 0 : index
    %67 = vector.load %arg13[%c0_48, %c0_49, %c0_50] : memref<8x2x100xf32, #tpu.memory_space<vmem>>, vector<1x2x100xf32>
    %68 = vector.shape_cast %67 : vector<1x2x100xf32> to vector<2x100xf32>
    %cst_51 = arith.constant dense<0.000000e+00> : vector<2x32xf32>
    %69 = tpu.matmul %68, %61, %cst_51 {dimension_numbers = #tpu.dot_dimension_numbers<[1], [0], [0], [1], [0, 0, 1, 1], [], []>} : vector<2x100xf32>, vector<100x32xf32>, vector<2x32xf32> -> vector<2x32xf32>
    %cst_52 = arith.constant dense<0.000000e+00> : vector<2x128xf32>
    %70 = tpu.matmul %69, %62, %cst_52 {dimension_numbers = #tpu.dot_dimension_numbers<[1], [0], [0], [1], [0, 0, 1, 1], [], []>} : vector<2x32xf32>, vector<32x128xf32>, vector<2x128xf32> -> vector<2x128xf32>
    %71 = vector.broadcast %63 : vector<1x128xf32> to vector<2x128xf32>
    %72 = arith.addf %70, %71 : vector<2x128xf32>
    %cst_53 = arith.constant dense<0.000000e+00> : vector<2x128xf32>
    %73 = tpu.matmul %65, %64, %cst_53 {dimension_numbers = #tpu.dot_dimension_numbers<[1], [0], [0], [1], [0, 0, 1, 1], [], []>} : vector<2x32xf32>, vector<32x128xf32>, vector<2x128xf32> -> vector<2x128xf32>
    %74 = arith.addf %72, %73 : vector<2x128xf32>
    %75 = vector.extract_strided_slice %74 {offsets = [0, 0], sizes = [2, 32], strides = [1, 1]} : vector<2x128xf32> to vector<2x32xf32>
    %76 = arith.negf %75 : vector<2x32xf32>
    %77 = math.exp %76 : vector<2x32xf32>
    %cst_54 = arith.constant 1.000000e+00 : f32
    %78 = vector.broadcast %cst_54 : f32 to vector<2x32xf32>
    %79 = arith.addf %78, %77 : vector<2x32xf32>
    %80 = arith.divf %78, %79 : vector<2x32xf32>
    %81 = vector.extract_strided_slice %74 {offsets = [0, 32], sizes = [2, 32], strides = [1, 1]} : vector<2x128xf32> to vector<2x32xf32>
    %82 = arith.negf %81 : vector<2x32xf32>
    %83 = math.exp %82 : vector<2x32xf32>
    %cst_55 = arith.constant 1.000000e+00 : f32
    %84 = vector.broadcast %cst_55 : f32 to vector<2x32xf32>
    %85 = arith.addf %84, %83 : vector<2x32xf32>
    %86 = arith.divf %84, %85 : vector<2x32xf32>
    %87 = vector.extract_strided_slice %74 {offsets = [0, 64], sizes = [2, 32], strides = [1, 1]} : vector<2x128xf32> to vector<2x32xf32>
    %88 = math.tanh %87 : vector<2x32xf32>
    %89 = vector.extract_strided_slice %74 {offsets = [0, 96], sizes = [2, 32], strides = [1, 1]} : vector<2x128xf32> to vector<2x32xf32>
    %90 = arith.negf %89 : vector<2x32xf32>
    %91 = math.exp %90 : vector<2x32xf32>
    %cst_56 = arith.constant 1.000000e+00 : f32
    %92 = vector.broadcast %cst_56 : f32 to vector<2x32xf32>
    %93 = arith.addf %92, %91 : vector<2x32xf32>
    %94 = arith.divf %92, %93 : vector<2x32xf32>
    %95 = arith.mulf %86, %66 : vector<2x32xf32>
    %96 = arith.mulf %80, %88 : vector<2x32xf32>
    %97 = arith.addf %95, %96 : vector<2x32xf32>
    %98 = math.tanh %97 : vector<2x32xf32>
    %99 = arith.mulf %94, %98 : vector<2x32xf32>
    %c1 = arith.constant 1 : index
    %c0_57 = arith.constant 0 : index
    %c0_58 = arith.constant 0 : index
    %100 = vector.load %arg13[%c1, %c0_57, %c0_58] : memref<8x2x100xf32, #tpu.memory_space<vmem>>, vector<1x2x100xf32>
    %101 = vector.shape_cast %100 : vector<1x2x100xf32> to vector<2x100xf32>
    %cst_59 = arith.constant dense<0.000000e+00> : vector<2x32xf32>
    %102 = tpu.matmul %101, %61, %cst_59 {dimension_numbers = #tpu.dot_dimension_numbers<[1], [0], [0], [1], [0, 0, 1, 1], [], []>} : vector<2x100xf32>, vector<100x32xf32>, vector<2x32xf32> -> vector<2x32xf32>
    %cst_60 = arith.constant dense<0.000000e+00> : vector<2x128xf32>
    %103 = tpu.matmul %102, %62, %cst_60 {dimension_numbers = #tpu.dot_dimension_numbers<[1], [0], [0], [1], [0, 0, 1, 1], [], []>} : vector<2x32xf32>, vector<32x128xf32>, vector<2x128xf32> -> vector<2x128xf32>
    %104 = vector.broadcast %63 : vector<1x128xf32> to vector<2x128xf32>
    %105 = arith.addf %103, %104 : vector<2x128xf32>
    %cst_61 = arith.constant dense<0.000000e+00> : vector<2x128xf32>
    %106 = tpu.matmul %99, %64, %cst_61 {dimension_numbers = #tpu.dot_dimension_numbers<[1], [0], [0], [1], [0, 0, 1, 1], [], []>} : vector<2x32xf32>, vector<32x128xf32>, vector<2x128xf32> -> vector<2x128xf32>
    %107 = arith.addf %105, %106 : vector<2x128xf32>
    %108 = vector.extract_strided_slice %107 {offsets = [0, 0], sizes = [2, 32], strides = [1, 1]} : vector<2x128xf32> to vector<2x32xf32>
    %109 = arith.negf %108 : vector<2x32xf32>
    %110 = math.exp %109 : vector<2x32xf32>
    %cst_62 = arith.constant 1.000000e+00 : f32
    %111 = vector.broadcast %cst_62 : f32 to vector<2x32xf32>
    %112 = arith.addf %111, %110 : vector<2x32xf32>
    %113 = arith.divf %111, %112 : vector<2x32xf32>
    %114 = vector.extract_strided_slice %107 {offsets = [0, 32], sizes = [2, 32], strides = [1, 1]} : vector<2x128xf32> to vector<2x32xf32>
    %115 = arith.negf %114 : vector<2x32xf32>
    %116 = math.exp %115 : vector<2x32xf32>
    %cst_63 = arith.constant 1.000000e+00 : f32
    %117 = vector.broadcast %cst_63 : f32 to vector<2x32xf32>
    %118 = arith.addf %117, %116 : vector<2x32xf32>
    %119 = arith.divf %117, %118 : vector<2x32xf32>
    %120 = vector.extract_strided_slice %107 {offsets = [0, 64], sizes = [2, 32], strides = [1, 1]} : vector<2x128xf32> to vector<2x32xf32>
    %121 = math.tanh %120 : vector<2x32xf32>
    %122 = vector.extract_strided_slice %107 {offsets = [0, 96], sizes = [2, 32], strides = [1, 1]} : vector<2x128xf32> to vector<2x32xf32>
    %123 = arith.negf %122 : vector<2x32xf32>
    %124 = math.exp %123 : vector<2x32xf32>
    %cst_64 = arith.constant 1.000000e+00 : f32
    %125 = vector.broadcast %cst_64 : f32 to vector<2x32xf32>
    %126 = arith.addf %125, %124 : vector<2x32xf32>
    %127 = arith.divf %125, %126 : vector<2x32xf32>
    %128 = arith.mulf %119, %97 : vector<2x32xf32>
    %129 = arith.mulf %113, %121 : vector<2x32xf32>
    %130 = arith.addf %128, %129 : vector<2x32xf32>
    %131 = math.tanh %130 : vector<2x32xf32>
    %132 = arith.mulf %127, %131 : vector<2x32xf32>
    %c2 = arith.constant 2 : index
    %c0_65 = arith.constant 0 : index
    %c0_66 = arith.constant 0 : index
    %133 = vector.load %arg13[%c2, %c0_65, %c0_66] : memref<8x2x100xf32, #tpu.memory_space<vmem>>, vector<1x2x100xf32>
    %134 = vector.shape_cast %133 : vector<1x2x100xf32> to vector<2x100xf32>
    %cst_67 = arith.constant dense<0.000000e+00> : vector<2x32xf32>
    %135 = tpu.matmul %134, %61, %cst_67 {dimension_numbers = #tpu.dot_dimension_numbers<[1], [0], [0], [1], [0, 0, 1, 1], [], []>} : vector<2x100xf32>, vector<100x32xf32>, vector<2x32xf32> -> vector<2x32xf32>
    %cst_68 = arith.constant dense<0.000000e+00> : vector<2x128xf32>
    %136 = tpu.matmul %135, %62, %cst_68 {dimension_numbers = #tpu.dot_dimension_numbers<[1], [0], [0], [1], [0, 0, 1, 1], [], []>} : vector<2x32xf32>, vector<32x128xf32>, vector<2x128xf32> -> vector<2x128xf32>
    %137 = vector.broadcast %63 : vector<1x128xf32> to vector<2x128xf32>
    %138 = arith.addf %136, %137 : vector<2x128xf32>
    %cst_69 = arith.constant dense<0.000000e+00> : vector<2x128xf32>
    %139 = tpu.matmul %132, %64, %cst_69 {dimension_numbers = #tpu.dot_dimension_numbers<[1], [0], [0], [1], [0, 0, 1, 1], [], []>} : vector<2x32xf32>, vector<32x128xf32>, vector<2x128xf32> -> vector<2x128xf32>
    %140 = arith.addf %138, %139 : vector<2x128xf32>
    %141 = vector.extract_strided_slice %140 {offsets = [0, 0], sizes = [2, 32], strides = [1, 1]} : vector<2x128xf32> to vector<2x32xf32>
    %142 = arith.negf %141 : vector<2x32xf32>
    %143 = math.exp %142 : vector<2x32xf32>
    %cst_70 = arith.constant 1.000000e+00 : f32
    %144 = vector.broadcast %cst_70 : f32 to vector<2x32xf32>
    %145 = arith.addf %144, %143 : vector<2x32xf32>
    %146 = arith.divf %144, %145 : vector<2x32xf32>
    %147 = vector.extract_strided_slice %140 {offsets = [0, 32], sizes = [2, 32], strides = [1, 1]} : vector<2x128xf32> to vector<2x32xf32>
    %148 = arith.negf %147 : vector<2x32xf32>
    %149 = math.exp %148 : vector<2x32xf32>
    %cst_71 = arith.constant 1.000000e+00 : f32
    %150 = vector.broadcast %cst_71 : f32 to vector<2x32xf32>
    %151 = arith.addf %150, %149 : vector<2x32xf32>
    %152 = arith.divf %150, %151 : vector<2x32xf32>
    %153 = vector.extract_strided_slice %140 {offsets = [0, 64], sizes = [2, 32], strides = [1, 1]} : vector<2x128xf32> to vector<2x32xf32>
    %154 = math.tanh %153 : vector<2x32xf32>
    %155 = vector.extract_strided_slice %140 {offsets = [0, 96], sizes = [2, 32], strides = [1, 1]} : vector<2x128xf32> to vector<2x32xf32>
    %156 = arith.negf %155 : vector<2x32xf32>
    %157 = math.exp %156 : vector<2x32xf32>
    %cst_72 = arith.constant 1.000000e+00 : f32
    %158 = vector.broadcast %cst_72 : f32 to vector<2x32xf32>
    %159 = arith.addf %158, %157 : vector<2x32xf32>
    %160 = arith.divf %158, %159 : vector<2x32xf32>
    %161 = arith.mulf %152, %130 : vector<2x32xf32>
    %162 = arith.mulf %146, %154 : vector<2x32xf32>
    %163 = arith.addf %161, %162 : vector<2x32xf32>
    %164 = math.tanh %163 : vector<2x32xf32>
    %165 = arith.mulf %160, %164 : vector<2x32xf32>
    %c3 = arith.constant 3 : index
    %c0_73 = arith.constant 0 : index
    %c0_74 = arith.constant 0 : index
    %166 = vector.load %arg13[%c3, %c0_73, %c0_74] : memref<8x2x100xf32, #tpu.memory_space<vmem>>, vector<1x2x100xf32>
    %167 = vector.shape_cast %166 : vector<1x2x100xf32> to vector<2x100xf32>
    %cst_75 = arith.constant dense<0.000000e+00> : vector<2x32xf32>
    %168 = tpu.matmul %167, %61, %cst_75 {dimension_numbers = #tpu.dot_dimension_numbers<[1], [0], [0], [1], [0, 0, 1, 1], [], []>} : vector<2x100xf32>, vector<100x32xf32>, vector<2x32xf32> -> vector<2x32xf32>
    %cst_76 = arith.constant dense<0.000000e+00> : vector<2x128xf32>
    %169 = tpu.matmul %168, %62, %cst_76 {dimension_numbers = #tpu.dot_dimension_numbers<[1], [0], [0], [1], [0, 0, 1, 1], [], []>} : vector<2x32xf32>, vector<32x128xf32>, vector<2x128xf32> -> vector<2x128xf32>
    %170 = vector.broadcast %63 : vector<1x128xf32> to vector<2x128xf32>
    %171 = arith.addf %169, %170 : vector<2x128xf32>
    %cst_77 = arith.constant dense<0.000000e+00> : vector<2x128xf32>
    %172 = tpu.matmul %165, %64, %cst_77 {dimension_numbers = #tpu.dot_dimension_numbers<[1], [0], [0], [1], [0, 0, 1, 1], [], []>} : vector<2x32xf32>, vector<32x128xf32>, vector<2x128xf32> -> vector<2x128xf32>
    %173 = arith.addf %171, %172 : vector<2x128xf32>
    %174 = vector.extract_strided_slice %173 {offsets = [0, 0], sizes = [2, 32], strides = [1, 1]} : vector<2x128xf32> to vector<2x32xf32>
    %175 = arith.negf %174 : vector<2x32xf32>
    %176 = math.exp %175 : vector<2x32xf32>
    %cst_78 = arith.constant 1.000000e+00 : f32
    %177 = vector.broadcast %cst_78 : f32 to vector<2x32xf32>
    %178 = arith.addf %177, %176 : vector<2x32xf32>
    %179 = arith.divf %177, %178 : vector<2x32xf32>
    %180 = vector.extract_strided_slice %173 {offsets = [0, 32], sizes = [2, 32], strides = [1, 1]} : vector<2x128xf32> to vector<2x32xf32>
    %181 = arith.negf %180 : vector<2x32xf32>
    %182 = math.exp %181 : vector<2x32xf32>
    %cst_79 = arith.constant 1.000000e+00 : f32
    %183 = vector.broadcast %cst_79 : f32 to vector<2x32xf32>
    %184 = arith.addf %183, %182 : vector<2x32xf32>
    %185 = arith.divf %183, %184 : vector<2x32xf32>
    %186 = vector.extract_strided_slice %173 {offsets = [0, 64], sizes = [2, 32], strides = [1, 1]} : vector<2x128xf32> to vector<2x32xf32>
    %187 = math.tanh %186 : vector<2x32xf32>
    %188 = vector.extract_strided_slice %173 {offsets = [0, 96], sizes = [2, 32], strides = [1, 1]} : vector<2x128xf32> to vector<2x32xf32>
    %189 = arith.negf %188 : vector<2x32xf32>
    %190 = math.exp %189 : vector<2x32xf32>
    %cst_80 = arith.constant 1.000000e+00 : f32
    %191 = vector.broadcast %cst_80 : f32 to vector<2x32xf32>
    %192 = arith.addf %191, %190 : vector<2x32xf32>
    %193 = arith.divf %191, %192 : vector<2x32xf32>
    %194 = arith.mulf %185, %163 : vector<2x32xf32>
    %195 = arith.mulf %179, %187 : vector<2x32xf32>
    %196 = arith.addf %194, %195 : vector<2x32xf32>
    %197 = math.tanh %196 : vector<2x32xf32>
    %198 = arith.mulf %193, %197 : vector<2x32xf32>
    %c4 = arith.constant 4 : index
    %c0_81 = arith.constant 0 : index
    %c0_82 = arith.constant 0 : index
    %199 = vector.load %arg13[%c4, %c0_81, %c0_82] : memref<8x2x100xf32, #tpu.memory_space<vmem>>, vector<1x2x100xf32>
    %200 = vector.shape_cast %199 : vector<1x2x100xf32> to vector<2x100xf32>
    %cst_83 = arith.constant dense<0.000000e+00> : vector<2x32xf32>
    %201 = tpu.matmul %200, %61, %cst_83 {dimension_numbers = #tpu.dot_dimension_numbers<[1], [0], [0], [1], [0, 0, 1, 1], [], []>} : vector<2x100xf32>, vector<100x32xf32>, vector<2x32xf32> -> vector<2x32xf32>
    %cst_84 = arith.constant dense<0.000000e+00> : vector<2x128xf32>
    %202 = tpu.matmul %201, %62, %cst_84 {dimension_numbers = #tpu.dot_dimension_numbers<[1], [0], [0], [1], [0, 0, 1, 1], [], []>} : vector<2x32xf32>, vector<32x128xf32>, vector<2x128xf32> -> vector<2x128xf32>
    %203 = vector.broadcast %63 : vector<1x128xf32> to vector<2x128xf32>
    %204 = arith.addf %202, %203 : vector<2x128xf32>
    %cst_85 = arith.constant dense<0.000000e+00> : vector<2x128xf32>
    %205 = tpu.matmul %198, %64, %cst_85 {dimension_numbers = #tpu.dot_dimension_numbers<[1], [0], [0], [1], [0, 0, 1, 1], [], []>} : vector<2x32xf32>, vector<32x128xf32>, vector<2x128xf32> -> vector<2x128xf32>
    %206 = arith.addf %204, %205 : vector<2x128xf32>
    %207 = vector.extract_strided_slice %206 {offsets = [0, 0], sizes = [2, 32], strides = [1, 1]} : vector<2x128xf32> to vector<2x32xf32>
    %208 = arith.negf %207 : vector<2x32xf32>
    %209 = math.exp %208 : vector<2x32xf32>
    %cst_86 = arith.constant 1.000000e+00 : f32
    %210 = vector.broadcast %cst_86 : f32 to vector<2x32xf32>
    %211 = arith.addf %210, %209 : vector<2x32xf32>
    %212 = arith.divf %210, %211 : vector<2x32xf32>
    %213 = vector.extract_strided_slice %206 {offsets = [0, 32], sizes = [2, 32], strides = [1, 1]} : vector<2x128xf32> to vector<2x32xf32>
    %214 = arith.negf %213 : vector<2x32xf32>
    %215 = math.exp %214 : vector<2x32xf32>
    %cst_87 = arith.constant 1.000000e+00 : f32
    %216 = vector.broadcast %cst_87 : f32 to vector<2x32xf32>
    %217 = arith.addf %216, %215 : vector<2x32xf32>
    %218 = arith.divf %216, %217 : vector<2x32xf32>
    %219 = vector.extract_strided_slice %206 {offsets = [0, 64], sizes = [2, 32], strides = [1, 1]} : vector<2x128xf32> to vector<2x32xf32>
    %220 = math.tanh %219 : vector<2x32xf32>
    %221 = vector.extract_strided_slice %206 {offsets = [0, 96], sizes = [2, 32], strides = [1, 1]} : vector<2x128xf32> to vector<2x32xf32>
    %222 = arith.negf %221 : vector<2x32xf32>
    %223 = math.exp %222 : vector<2x32xf32>
    %cst_88 = arith.constant 1.000000e+00 : f32
    %224 = vector.broadcast %cst_88 : f32 to vector<2x32xf32>
    %225 = arith.addf %224, %223 : vector<2x32xf32>
    %226 = arith.divf %224, %225 : vector<2x32xf32>
    %227 = arith.mulf %218, %196 : vector<2x32xf32>
    %228 = arith.mulf %212, %220 : vector<2x32xf32>
    %229 = arith.addf %227, %228 : vector<2x32xf32>
    %230 = math.tanh %229 : vector<2x32xf32>
    %231 = arith.mulf %226, %230 : vector<2x32xf32>
    %c5 = arith.constant 5 : index
    %c0_89 = arith.constant 0 : index
    %c0_90 = arith.constant 0 : index
    %232 = vector.load %arg13[%c5, %c0_89, %c0_90] : memref<8x2x100xf32, #tpu.memory_space<vmem>>, vector<1x2x100xf32>
    %233 = vector.shape_cast %232 : vector<1x2x100xf32> to vector<2x100xf32>
    %cst_91 = arith.constant dense<0.000000e+00> : vector<2x32xf32>
    %234 = tpu.matmul %233, %61, %cst_91 {dimension_numbers = #tpu.dot_dimension_numbers<[1], [0], [0], [1], [0, 0, 1, 1], [], []>} : vector<2x100xf32>, vector<100x32xf32>, vector<2x32xf32> -> vector<2x32xf32>
    %cst_92 = arith.constant dense<0.000000e+00> : vector<2x128xf32>
    %235 = tpu.matmul %234, %62, %cst_92 {dimension_numbers = #tpu.dot_dimension_numbers<[1], [0], [0], [1], [0, 0, 1, 1], [], []>} : vector<2x32xf32>, vector<32x128xf32>, vector<2x128xf32> -> vector<2x128xf32>
    %236 = vector.broadcast %63 : vector<1x128xf32> to vector<2x128xf32>
    %237 = arith.addf %235, %236 : vector<2x128xf32>
    %cst_93 = arith.constant dense<0.000000e+00> : vector<2x128xf32>
    %238 = tpu.matmul %231, %64, %cst_93 {dimension_numbers = #tpu.dot_dimension_numbers<[1], [0], [0], [1], [0, 0, 1, 1], [], []>} : vector<2x32xf32>, vector<32x128xf32>, vector<2x128xf32> -> vector<2x128xf32>
    %239 = arith.addf %237, %238 : vector<2x128xf32>
    %240 = vector.extract_strided_slice %239 {offsets = [0, 0], sizes = [2, 32], strides = [1, 1]} : vector<2x128xf32> to vector<2x32xf32>
    %241 = arith.negf %240 : vector<2x32xf32>
    %242 = math.exp %241 : vector<2x32xf32>
    %cst_94 = arith.constant 1.000000e+00 : f32
    %243 = vector.broadcast %cst_94 : f32 to vector<2x32xf32>
    %244 = arith.addf %243, %242 : vector<2x32xf32>
    %245 = arith.divf %243, %244 : vector<2x32xf32>
    %246 = vector.extract_strided_slice %239 {offsets = [0, 32], sizes = [2, 32], strides = [1, 1]} : vector<2x128xf32> to vector<2x32xf32>
    %247 = arith.negf %246 : vector<2x32xf32>
    %248 = math.exp %247 : vector<2x32xf32>
    %cst_95 = arith.constant 1.000000e+00 : f32
    %249 = vector.broadcast %cst_95 : f32 to vector<2x32xf32>
    %250 = arith.addf %249, %248 : vector<2x32xf32>
    %251 = arith.divf %249, %250 : vector<2x32xf32>
    %252 = vector.extract_strided_slice %239 {offsets = [0, 64], sizes = [2, 32], strides = [1, 1]} : vector<2x128xf32> to vector<2x32xf32>
    %253 = math.tanh %252 : vector<2x32xf32>
    %254 = vector.extract_strided_slice %239 {offsets = [0, 96], sizes = [2, 32], strides = [1, 1]} : vector<2x128xf32> to vector<2x32xf32>
    %255 = arith.negf %254 : vector<2x32xf32>
    %256 = math.exp %255 : vector<2x32xf32>
    %cst_96 = arith.constant 1.000000e+00 : f32
    %257 = vector.broadcast %cst_96 : f32 to vector<2x32xf32>
    %258 = arith.addf %257, %256 : vector<2x32xf32>
    %259 = arith.divf %257, %258 : vector<2x32xf32>
    %260 = arith.mulf %251, %229 : vector<2x32xf32>
    %261 = arith.mulf %245, %253 : vector<2x32xf32>
    %262 = arith.addf %260, %261 : vector<2x32xf32>
    %263 = math.tanh %262 : vector<2x32xf32>
    %264 = arith.mulf %259, %263 : vector<2x32xf32>
    %c6 = arith.constant 6 : index
    %c0_97 = arith.constant 0 : index
    %c0_98 = arith.constant 0 : index
    %265 = vector.load %arg13[%c6, %c0_97, %c0_98] : memref<8x2x100xf32, #tpu.memory_space<vmem>>, vector<1x2x100xf32>
    %266 = vector.shape_cast %265 : vector<1x2x100xf32> to vector<2x100xf32>
    %cst_99 = arith.constant dense<0.000000e+00> : vector<2x32xf32>
    %267 = tpu.matmul %266, %61, %cst_99 {dimension_numbers = #tpu.dot_dimension_numbers<[1], [0], [0], [1], [0, 0, 1, 1], [], []>} : vector<2x100xf32>, vector<100x32xf32>, vector<2x32xf32> -> vector<2x32xf32>
    %cst_100 = arith.constant dense<0.000000e+00> : vector<2x128xf32>
    %268 = tpu.matmul %267, %62, %cst_100 {dimension_numbers = #tpu.dot_dimension_numbers<[1], [0], [0], [1], [0, 0, 1, 1], [], []>} : vector<2x32xf32>, vector<32x128xf32>, vector<2x128xf32> -> vector<2x128xf32>
    %269 = vector.broadcast %63 : vector<1x128xf32> to vector<2x128xf32>
    %270 = arith.addf %268, %269 : vector<2x128xf32>
    %cst_101 = arith.constant dense<0.000000e+00> : vector<2x128xf32>
    %271 = tpu.matmul %264, %64, %cst_101 {dimension_numbers = #tpu.dot_dimension_numbers<[1], [0], [0], [1], [0, 0, 1, 1], [], []>} : vector<2x32xf32>, vector<32x128xf32>, vector<2x128xf32> -> vector<2x128xf32>
    %272 = arith.addf %270, %271 : vector<2x128xf32>
    %273 = vector.extract_strided_slice %272 {offsets = [0, 0], sizes = [2, 32], strides = [1, 1]} : vector<2x128xf32> to vector<2x32xf32>
    %274 = arith.negf %273 : vector<2x32xf32>
    %275 = math.exp %274 : vector<2x32xf32>
    %cst_102 = arith.constant 1.000000e+00 : f32
    %276 = vector.broadcast %cst_102 : f32 to vector<2x32xf32>
    %277 = arith.addf %276, %275 : vector<2x32xf32>
    %278 = arith.divf %276, %277 : vector<2x32xf32>
    %279 = vector.extract_strided_slice %272 {offsets = [0, 32], sizes = [2, 32], strides = [1, 1]} : vector<2x128xf32> to vector<2x32xf32>
    %280 = arith.negf %279 : vector<2x32xf32>
    %281 = math.exp %280 : vector<2x32xf32>
    %cst_103 = arith.constant 1.000000e+00 : f32
    %282 = vector.broadcast %cst_103 : f32 to vector<2x32xf32>
    %283 = arith.addf %282, %281 : vector<2x32xf32>
    %284 = arith.divf %282, %283 : vector<2x32xf32>
    %285 = vector.extract_strided_slice %272 {offsets = [0, 64], sizes = [2, 32], strides = [1, 1]} : vector<2x128xf32> to vector<2x32xf32>
    %286 = math.tanh %285 : vector<2x32xf32>
    %287 = vector.extract_strided_slice %272 {offsets = [0, 96], sizes = [2, 32], strides = [1, 1]} : vector<2x128xf32> to vector<2x32xf32>
    %288 = arith.negf %287 : vector<2x32xf32>
    %289 = math.exp %288 : vector<2x32xf32>
    %cst_104 = arith.constant 1.000000e+00 : f32
    %290 = vector.broadcast %cst_104 : f32 to vector<2x32xf32>
    %291 = arith.addf %290, %289 : vector<2x32xf32>
    %292 = arith.divf %290, %291 : vector<2x32xf32>
    %293 = arith.mulf %284, %262 : vector<2x32xf32>
    %294 = arith.mulf %278, %286 : vector<2x32xf32>
    %295 = arith.addf %293, %294 : vector<2x32xf32>
    %296 = math.tanh %295 : vector<2x32xf32>
    %297 = arith.mulf %292, %296 : vector<2x32xf32>
    %c7 = arith.constant 7 : index
    %c0_105 = arith.constant 0 : index
    %c0_106 = arith.constant 0 : index
    %298 = vector.load %arg13[%c7, %c0_105, %c0_106] : memref<8x2x100xf32, #tpu.memory_space<vmem>>, vector<1x2x100xf32>
    %299 = vector.shape_cast %298 : vector<1x2x100xf32> to vector<2x100xf32>
    %cst_107 = arith.constant dense<0.000000e+00> : vector<2x32xf32>
    %300 = tpu.matmul %299, %61, %cst_107 {dimension_numbers = #tpu.dot_dimension_numbers<[1], [0], [0], [1], [0, 0, 1, 1], [], []>} : vector<2x100xf32>, vector<100x32xf32>, vector<2x32xf32> -> vector<2x32xf32>
    %cst_108 = arith.constant dense<0.000000e+00> : vector<2x128xf32>
    %301 = tpu.matmul %300, %62, %cst_108 {dimension_numbers = #tpu.dot_dimension_numbers<[1], [0], [0], [1], [0, 0, 1, 1], [], []>} : vector<2x32xf32>, vector<32x128xf32>, vector<2x128xf32> -> vector<2x128xf32>
    %302 = vector.broadcast %63 : vector<1x128xf32> to vector<2x128xf32>
    %303 = arith.addf %301, %302 : vector<2x128xf32>
    %cst_109 = arith.constant dense<0.000000e+00> : vector<2x128xf32>
    %304 = tpu.matmul %297, %64, %cst_109 {dimension_numbers = #tpu.dot_dimension_numbers<[1], [0], [0], [1], [0, 0, 1, 1], [], []>} : vector<2x32xf32>, vector<32x128xf32>, vector<2x128xf32> -> vector<2x128xf32>
    %305 = arith.addf %303, %304 : vector<2x128xf32>
    %306 = vector.extract_strided_slice %305 {offsets = [0, 0], sizes = [2, 32], strides = [1, 1]} : vector<2x128xf32> to vector<2x32xf32>
    %307 = arith.negf %306 : vector<2x32xf32>
    %308 = math.exp %307 : vector<2x32xf32>
    %cst_110 = arith.constant 1.000000e+00 : f32
    %309 = vector.broadcast %cst_110 : f32 to vector<2x32xf32>
    %310 = arith.addf %309, %308 : vector<2x32xf32>
    %311 = arith.divf %309, %310 : vector<2x32xf32>
    %312 = vector.extract_strided_slice %305 {offsets = [0, 32], sizes = [2, 32], strides = [1, 1]} : vector<2x128xf32> to vector<2x32xf32>
    %313 = arith.negf %312 : vector<2x32xf32>
    %314 = math.exp %313 : vector<2x32xf32>
    %cst_111 = arith.constant 1.000000e+00 : f32
    %315 = vector.broadcast %cst_111 : f32 to vector<2x32xf32>
    %316 = arith.addf %315, %314 : vector<2x32xf32>
    %317 = arith.divf %315, %316 : vector<2x32xf32>
    %318 = vector.extract_strided_slice %305 {offsets = [0, 64], sizes = [2, 32], strides = [1, 1]} : vector<2x128xf32> to vector<2x32xf32>
    %319 = math.tanh %318 : vector<2x32xf32>
    %320 = vector.extract_strided_slice %305 {offsets = [0, 96], sizes = [2, 32], strides = [1, 1]} : vector<2x128xf32> to vector<2x32xf32>
    %321 = arith.negf %320 : vector<2x32xf32>
    %322 = math.exp %321 : vector<2x32xf32>
    %cst_112 = arith.constant 1.000000e+00 : f32
    %323 = vector.broadcast %cst_112 : f32 to vector<2x32xf32>
    %324 = arith.addf %323, %322 : vector<2x32xf32>
    %325 = arith.divf %323, %324 : vector<2x32xf32>
    %326 = arith.mulf %317, %295 : vector<2x32xf32>
    %327 = arith.mulf %311, %319 : vector<2x32xf32>
    %328 = arith.addf %326, %327 : vector<2x32xf32>
    %329 = math.tanh %328 : vector<2x32xf32>
    %330 = arith.mulf %325, %329 : vector<2x32xf32>
    %331 = arith.mulf %330, %330 : vector<2x32xf32>
    %cst_113 = arith.constant dense<0.000000e+00> : vector<2xf32>
    %332 = vector.multi_reduction <add>, %331, %cst_113 [1] : vector<2x32xf32> to vector<2xf32>
    %333 = vector.shape_cast %332 : vector<2xf32> to vector<2x1xf32>
    %334 = math.sqrt %333 : vector<2x1xf32>
    %cst_114 = arith.constant 9.99999996E-13 : f32
    %335 = vector.broadcast %cst_114 : f32 to vector<2x1xf32>
    %336 = arith.maximumf %334, %335 : vector<2x1xf32>
    %337 = vector.broadcast %336 : vector<2x1xf32> to vector<2x32xf32>
    %338 = arith.divf %330, %337 : vector<2x32xf32>
    %c0_115 = arith.constant 0 : index
    %c0_116 = arith.constant 0 : index
    %339 = vector.load %arg19[%c0_115, %c0_116] : memref<2x32xf32, #tpu.memory_space<vmem>>, vector<2x32xf32>
    tpu.vector_store %arg19[%c0_115, %c0_116], %338 {strides = array<i32>} : memref<2x32xf32, #tpu.memory_space<vmem>>, vector<2x32xf32>,
    return
  }
  func.func @transform_0(%arg0: i32) -> (i32, i32) {
    %c0_i32 = arith.constant 0 : i32
    %c0_i32_0 = arith.constant 0 : i32
    %c0_i32_1 = arith.constant 0 : i32
    return %c0_i32, %c0_i32_0 : i32, i32
  }
  func.func @transform_1(%arg0: i32) -> (i32, i32) {
    %c0_i32 = arith.constant 0 : i32
    %c0_i32_0 = arith.constant 0 : i32
    %c0_i32_1 = arith.constant 0 : i32
    return %c0_i32, %c0_i32_0 : i32, i32
  }
  func.func @transform_2(%arg0: i32) -> (i32, i32) {
    %c0_i32 = arith.constant 0 : i32
    %c0_i32_0 = arith.constant 0 : i32
    %c0_i32_1 = arith.constant 0 : i32
    return %c0_i32, %c0_i32_0 : i32, i32
  }
  func.func @transform_3(%arg0: i32) -> (i32, i32) {
    %c0_i32 = arith.constant 0 : i32
    %c0_i32_0 = arith.constant 0 : i32
    %c0_i32_1 = arith.constant 0 : i32
    return %c0_i32, %c0_i32_0 : i32, i32
  }
  func.func @transform_4(%arg0: i32) -> (i32, i32) {
    %c0_i32 = arith.constant 0 : i32
    %c0_i32_0 = arith.constant 0 : i32
    %c0_i32_1 = arith.constant 0 : i32
    return %c0_i32, %c0_i32_0 : i32, i32
  }
  func.func @transform_5(%arg0: i32) -> (i32, i32) {
    %c0_i32 = arith.constant 0 : i32
    %c0_i32_0 = arith.constant 0 : i32
    %c0_i32_1 = arith.constant 0 : i32
    return %c0_i32, %c0_i32_0 : i32, i32
  }
  func.func @transform_6(%arg0: i32) -> (i32, i32) {
    %c0_i32 = arith.constant 0 : i32
    %c0_i32_0 = arith.constant 0 : i32
    %c0_i32_1 = arith.constant 0 : i32
    return %c0_i32, %c0_i32_0 : i32, i32
  }
  func.func @transform_7(%arg0: i32) -> (i32, i32) {
    %c0_i32 = arith.constant 0 : i32
    %c0_i32_0 = arith.constant 0 : i32
    %c0_i32_1 = arith.constant 0 : i32
    return %c0_i32, %c0_i32_0 : i32, i32
  }
  func.func @transform_8(%arg0: i32) -> (i32, i32) {
    %c0_i32 = arith.constant 0 : i32
    %c0_i32_0 = arith.constant 0 : i32
    %c0_i32_1 = arith.constant 0 : i32
    return %c0_i32, %c0_i32_0 : i32, i32
  }
  func.func @transform_9(%arg0: i32) -> (i32, i32) {
    %c0_i32 = arith.constant 0 : i32
    %c0_i32_0 = arith.constant 0 : i32
    %c0_i32_1 = arith.constant 0 : i32
    return %c0_i32, %c0_i32_0 : i32, i32
  }
  func.func @transform_10(%arg0: i32) -> (i32, i32) {
    %c0_i32 = arith.constant 0 : i32
    %c0_i32_0 = arith.constant 0 : i32
    %c0_i32_1 = arith.constant 0 : i32
    return %c0_i32, %c0_i32_0 : i32, i32
  }
  func.func @transform_11(%arg0: i32) -> (i32, i32) {
    %c0_i32 = arith.constant 0 : i32
    %c0_i32_0 = arith.constant 0 : i32
    %c0_i32_1 = arith.constant 0 : i32
    return %c0_i32, %c0_i32_0 : i32, i32
  }
  func.func @transform_12(%arg0: i32) -> (i32, i32, i32) {
    %c0_i32 = arith.constant 0 : i32
    %c0_i32_0 = arith.constant 0 : i32
    %c0_i32_1 = arith.constant 0 : i32
    %c0_i32_2 = arith.constant 0 : i32
    return %c0_i32, %c0_i32_0, %c0_i32_1 : i32, i32, i32
  }
  func.func @transform_13(%arg0: i32) -> (i32, i32) {
    %c0_i32 = arith.constant 0 : i32
    %c0_i32_0 = arith.constant 0 : i32
    %c0_i32_1 = arith.constant 0 : i32
    return %c0_i32, %c0_i32_0 : i32, i32
  }
  func.func @transform_14(%arg0: i32) -> (i32, i32) {
    %c0_i32 = arith.constant 0 : i32
    %c0_i32_0 = arith.constant 0 : i32
    %c0_i32_1 = arith.constant 0 : i32
    return %c0_i32, %c0_i32_0 : i32, i32
  }
  func.func @transform_15(%arg0: i32) -> (i32, i32) {
    %c0_i32 = arith.constant 0 : i32
    %c0_i32_0 = arith.constant 0 : i32
    %c0_i32_1 = arith.constant 0 : i32
    return %c0_i32, %c0_i32_0 : i32, i32
  }
  func.func @transform_16(%arg0: i32) -> (i32, i32) {
    %c0_i32 = arith.constant 0 : i32
    %c0_i32_0 = arith.constant 0 : i32
    %c0_i32_1 = arith.constant 0 : i32
    return %c0_i32, %c0_i32_0 : i32, i32
  }
  func.func @transform_17(%arg0: i32) -> (i32, i32) {
    %c0_i32 = arith.constant 0 : i32
    %c0_i32_0 = arith.constant 0 : i32
    %c0_i32_1 = arith.constant 0 : i32
    return %c0_i32, %c0_i32_0 : i32, i32
  }
  func.func @transform_18(%arg0: i32) -> (i32, i32) {
    %c0_i32 = arith.constant 0 : i32
    %c0_i32_0 = arith.constant 0 : i32
    %c0_i32_1 = arith.constant 0 : i32
    return %c0_i32, %c0_i32_0 : i32, i32
  }
}

</mosaic_0001>

<bundles_post_ra>
// kernel: bearing_clip_forward.3
= control target key start
LH: loop header
LB: loop body
LE: loop exit
PB: predicated region body
PF: predicated region fallthrough
CT: control target
= control target key end

     0   :  { %vm54_vm0 = vcmask 523264   ;;  %vm489_vm1 = vcmask 130048   ;;  %s1575_s2 = inlined_call_operand.vmem [shape: f32[64,16], index: 2, kind: input, shape index: {}]   ;;  %s1576_s0 = inlined_call_operand.vmem [shape: f32[128,64], index: 0, kind: input, shape index: {}]   ;;  %s1577_s1 = inlined_call_operand.vmem [shape: f32[128,64], index: 1, kind: input, shape index: {}]   ;;  %s1578_s3 = inlined_call_operand.vmem [shape: f32[1,16], index: 3, kind: input, shape index: {}]   ;;  %s1579_s4 = inlined_call_operand.vmem [shape: f32[1,16], index: 4, kind: input, shape index: {}]   ;;  %s1580_s5 = inlined_call_operand.vmem [shape: f32[1,16], index: 5, kind: input, shape index: {}]   ;;  %s1581_s6 = inlined_call_operand.vmem [shape: f32[128,16], index: 6, kind: output, shape index: {}]  }
   0x1   :  { %v23_v0 = vld [vmem:[%s1575_s2] sm:$0xff]  ;;  %v24_v1 = vld [vmem:[%s1575_s2 + $0x8] sm:$0xff]  ;;  %v25_v2 = vld [vmem:[%s1575_s2 + $0x10] sm:$0xff] }
   0x2   :  { %v955_v3 = vpack.c.bf16 %v24_v1, %v23_v0  ;;  %v26_v4 = vld [vmem:[%s1575_s2 + $0x18] sm:$0xff]  ;;  %v27_v6 = vld [vmem:[%s1575_s2 + $0x20] sm:$0xff]  ;;  %v28_v7 = vld [vmem:[%s1575_s2 + $0x28] sm:$0xff] }
   0x3   :  { %v959_v5 = vpack.c.bf16 %v26_v4, %v25_v2  ;;  %v32_v8 = vld [vmem:[%s1576_s0] sm:$0xff]  ;;  %v963_v10 = vpack.c.bf16 %v28_v7, %v27_v6  ;;  %v29_v11 = vld [vmem:[%s1575_s2 + $0x30] sm:$0xff]  ;;  %v30_v12 = vld [vmem:[%s1575_s2 + $0x38] sm:$0xff] }
   0x4   :  { %956 = vmatprep.subr.bf16.mxu0 %v955_v3  ;;  %972 = vmatprep.subr.bf16.mxu1 %v955_v3  ;;  %v264_v9 = vld [vmem:[%s1577_s1] sm:$0xff]  ;;  %v967_v13 = vpack.c.bf16 %v30_v12, %v29_v11  ;;  %v33_v14 = vld [vmem:[%s1576_s0 + $0x8] sm:$0xff]  ;;  %v34_v16 = vld [vmem:[%s1576_s0 + $0x10] sm:$0xff] }
   0x5   :  { %958 = vmatpush3.bf16.msra.mxu0 %v955_v3  ;;  %974 = vmatpush3.bf16.msra.mxu1 %v955_v3  ;;  %v265_v15 = vld [vmem:[%s1577_s1 + $0x8] sm:$0xff]  ;;  %v266_v17 = vld [vmem:[%s1577_s1 + $0x10] sm:$0xff]  ;;  %v35_v18 = vld [vmem:[%s1576_s0 + $0x18] sm:$0xff] }
   0x6   :  { %960 = vmatprep.subr.bf16.mxu0 %v959_v5  ;;  %976 = vmatprep.subr.bf16.mxu1 %v959_v5  ;;  %v267_v19 = vld [vmem:[%s1577_s1 + $0x18] sm:$0xff]  ;;  %v36_v20 = vld [vmem:[%s1576_s0 + $0x20] sm:$0xff]  ;;  %v37_v22 = vld [vmem:[%s1576_s0 + $0x28] sm:$0xff] }
   0x7   :  { %891 = vmatprep.mubr.msk.f32.mxu0 %vm54_vm0, %v32_v8  ;;  %931 = vmatprep.mubr.msk.f32.mxu1 %vm54_vm0, %v264_v9  ;;  %v268_v21 = vld [vmem:[%s1577_s1 + $0x20] sm:$0xff]  ;;  %v269_v23 = vld [vmem:[%s1577_s1 + $0x28] sm:$0xff]  ;;  %v38_v24 = vld [vmem:[%s1576_s0 + $0x30] sm:$0xff] }
   0x8   :  { %v270_v25 = vld [vmem:[%s1577_s1 + $0x30] sm:$0xff]  ;;  %v39_v26 = vld [vmem:[%s1576_s0 + $0x38] sm:$0xff]  ;;  %v40_v28 = vld [vmem:[%s1576_s0 + $0x40] sm:$0xff] }
   0x9   :  { %962 = vmatpush3.bf16.msra.mxu0 %v959_v5  ;;  %978 = vmatpush3.bf16.msra.mxu1 %v959_v5  ;;  %v271_v27 = vld [vmem:[%s1577_s1 + $0x38] sm:$0xff]  ;;  %v272_v29 = vld [vmem:[%s1577_s1 + $0x40] sm:$0xff]  ;;  %v41_v30 = vld [vmem:[%s1576_s0 + $0x48] sm:$0xff] }
   0xa   :  { %964 = vmatprep.subr.bf16.mxu0 %v963_v10  ;;  %980 = vmatprep.subr.bf16.mxu1 %v963_v10  ;;  %v273_v31 = vld [vmem:[%s1577_s1 + $0x48] sm:$0xff]  ;;  %v42_v32 = vld [vmem:[%s1576_s0 + $0x50] sm:$0xff]  ;;  %v43_v34 = vld [vmem:[%s1576_s0 + $0x58] sm:$0xff] }
   0xb   :  { %v274_v33 = vld [vmem:[%s1577_s1 + $0x50] sm:$0xff]  ;;  %v275_v35 = vld [vmem:[%s1577_s1 + $0x58] sm:$0xff]  ;;  %v44_v36 = vld [vmem:[%s1576_s0 + $0x60] sm:$0xff] }
   0xc   :  { %v276_v37 = vld [vmem:[%s1577_s1 + $0x60] sm:$0xff]  ;;  %v45_v38 = vld [vmem:[%s1576_s0 + $0x68] sm:$0xff]  ;;  %v46_v40 = vld [vmem:[%s1576_s0 + $0x70] sm:$0xff] }
   0xd   :  { %966 = vmatpush3.bf16.msra.mxu0 %v963_v10  ;;  %982 = vmatpush3.bf16.msra.mxu1 %v963_v10  ;;  %v277_v39 = vld [vmem:[%s1577_s1 + $0x68] sm:$0xff]  ;;  %v278_v41 = vld [vmem:[%s1577_s1 + $0x70] sm:$0xff]  ;;  %v47_v42 = vld [vmem:[%s1576_s0 + $0x78] sm:$0xff] }
   0xe   :  { %968 = vmatprep.subr.bf16.mxu0 %v967_v13  ;;  %984 = vmatprep.subr.bf16.mxu1 %v967_v13  ;;  %v279_v43 = vld [vmem:[%s1577_s1 + $0x78] sm:$0xff]  ;;  %v1179_v44 = vld [vmem:[%s1578_s3] ss:$0 sm:$0xff] }
  0x11   :  { %970 = vmatpush3.bf16.msra.mxu0 %v967_v13  ;;  %986 = vmatpush3.bf16.msra.mxu1 %v967_v13 }
  0x14   :  { %892 = vmatmul.mubr.msk.f32.vlgmr.msra.gmra.mrb[0].mxu0 %vm54_vm0, %v33_v14  ;;  %932 = vmatmul.mubr.msk.f32.vlgmr.msra.gmra.mrb[0].mxu1 %vm54_vm0, %v265_v15 }
  0x15   :  { %894 = vmatprep.mubr.msk.f32.mxu0 %vm54_vm0, %v34_v16  ;;  %934 = vmatprep.mubr.msk.f32.mxu1 %vm54_vm0, %v266_v17 }
  0x18   :  { %895 = vmatmul.mubr.msk.f32.gmra.mrb[2].mxu0 %vm54_vm0, %v35_v18  ;;  %935 = vmatmul.mubr.msk.f32.gmra.mrb[2].mxu1 %vm54_vm0, %v267_v19 }
  0x19   :  { %897 = vmatprep.mubr.msk.f32.mxu0 %vm54_vm0, %v36_v20  ;;  %937 = vmatprep.mubr.msk.f32.mxu1 %vm54_vm0, %v268_v21 }
  0x1c   :  { %898 = vmatmul.mubr.msk.f32.gmra.mrb[4].mxu0 %vm54_vm0, %v37_v22  ;;  %938 = vmatmul.mubr.msk.f32.gmra.mrb[4].mxu1 %vm54_vm0, %v269_v23 }
  0x1d   :  { %900 = vmatprep.mubr.msk.f32.mxu0 %vm54_vm0, %v38_v24  ;;  %940 = vmatprep.mubr.msk.f32.mxu1 %vm54_vm0, %v270_v25 }
  0x20   :  { %901 = vmatmul.mubr.msk.f32.gmra.mrb[6].mxu0 %vm54_vm0, %v39_v26  ;;  %941 = vmatmul.mubr.msk.f32.gmra.mrb[6].mxu1 %vm54_vm0, %v271_v27 }
  0x21   :  { %903 = vmatprep.mubr.msk.f32.mxu0 %vm54_vm0, %v40_v28  ;;  %943 = vmatprep.mubr.msk.f32.mxu1 %vm54_vm0, %v272_v29 }
  0x24   :  { %904 = vmatmul.mubr.msk.f32.gmra.mrb[8].mxu0 %vm54_vm0, %v41_v30  ;;  %944 = vmatmul.mubr.msk.f32.gmra.mrb[8].mxu1 %vm54_vm0, %v273_v31 }
  0x25   :  { %906 = vmatprep.mubr.msk.f32.mxu0 %vm54_vm0, %v42_v32  ;;  %946 = vmatprep.mubr.msk.f32.mxu1 %vm54_vm0, %v274_v33 }
  0x28   :  { %907 = vmatmul.mubr.msk.f32.gmra.mrb[10].mxu0 %vm54_vm0, %v43_v34  ;;  %947 = vmatmul.mubr.msk.f32.gmra.mrb[10].mxu1 %vm54_vm0, %v275_v35 }
  0x29   :  { %909 = vmatprep.mubr.msk.f32.mxu0 %vm54_vm0, %v44_v36  ;;  %949 = vmatprep.mubr.msk.f32.mxu1 %vm54_vm0, %v276_v37 }
  0x2c   :  { %910 = vmatmul.mubr.msk.f32.gmra.mrb[12].mxu0 %vm54_vm0, %v45_v38  ;;  %950 = vmatmul.mubr.msk.f32.gmra.mrb[12].mxu1 %vm54_vm0, %v277_v39 }
  0x2d   :  { %912 = vmatprep.mubr.msk.f32.mxu0 %vm54_vm0, %v46_v40  ;;  %952 = vmatprep.mubr.msk.f32.mxu1 %vm54_vm0, %v278_v41 }
  0x30   :  { %913 = vmatmul.mubr.msk.f32.gmra.mrb[14].mxu0 %vm54_vm0, %v47_v42  ;;  %953 = vmatmul.mubr.msk.f32.gmra.mrb[14].mxu1 %vm54_vm0, %v279_v43 }
  0xe7   :  { %v893_v45 = vpop.f32.mrb[0].mxu0  ;;  %v933_v46 = vpop.f32.mrb[0].mxu1 }
  0xe8   :  { %v175_v47 = vadd.f32 %v893_v45, %v1179_v44  ;;  %v400_v48 = vadd.f32 %v933_v46, %v1179_v44  ;;  %v169_v49 = vpop.f32.mrb[1].mxu0  ;;  %v394_v50 = vpop.f32.mrb[1].mxu1 }
  0xe9   :  { %v170_v51 = vadd.f32 %v1179_v44, %v169_v49  ;;  %v395_v52 = vadd.f32 %v1179_v44, %v394_v50 }
  0xea   :  { %v1185_v53 = vmax.f32 %v175_v47, 0.0  ;;  %v1187_v54 = vmax.f32 %v400_v48, 0.0 }
  0xeb   :  { %v1189_v55 = vmax.f32 %v170_v51, 0.0  ;;  %v1191_v56 = vmax.f32 %v395_v52, 0.0  ;;  %v896_v57 = vpop.f32.mrb[2].mxu0  ;;  %v936_v58 = vpop.f32.mrb[2].mxu1 }
  0xec   :  { %v491_v59 = vsel %vm489_vm1, %v1185_v53, 0.0  ;;  %v568_v60 = vmul.f32 %v1185_v53, %v1185_v53  ;;  %v528_v61 = vsel %vm489_vm1, %v1187_v54, 0.0  ;;  %v621_v62 = vmul.f32 %v1187_v54, %v1187_v54  ;;  %v179_v63 = vpop.f32.mrb[3].mxu0  ;;  %v404_v0 = vpop.f32.mrb[3].mxu1 }
  0xed   :  { %v490_v1 = vsel %vm489_vm1, %v1189_v55, 0.0  ;;  %v567_v2 = vmul.f32 %v1189_v55, %v1189_v55  ;;  %v527_v3 = vsel %vm489_vm1, %v1191_v56, 0.0  ;;  %v620_v4 = vmul.f32 %v1191_v56, %v1191_v56 }
  0xee   :  { %v584_v5 = vsel %vm489_vm1, %v568_v60, 0.0  ;;  %v637_v6 = vsel %vm489_vm1, %v621_v62, 0.0  ;;  %v492_v7 = vadd.f32 %v491_v59, %v490_v1  ;;  %v185_v10 = vadd.f32 %v896_v57, %v1179_v44 }
  0xef   :  { %v583_v8 = vsel %vm489_vm1, %v567_v2, 0.0  ;;  %v636_v9 = vsel %vm489_vm1, %v620_v4, 0.0  ;;  %v410_v11 = vadd.f32 %v936_v58, %v1179_v44  ;;  %v899_v12 = vpop.f32.mrb[4].mxu0  ;;  %v939_v13 = vpop.f32.mrb[4].mxu1  ;;  %v529_v15 = vadd.f32 %v528_v61, %v527_v3 }
  0xf0   :  { %v585_v14 = vadd.f32 %v584_v5, %v583_v8  ;;  %v180_v16 = vadd.f32 %v1179_v44, %v179_v63  ;;  %v405_v17 = vadd.f32 %v1179_v44, %v404_v0  ;;  %v189_v18 = vpop.f32.mrb[5].mxu0  ;;  %v414_v19 = vpop.f32.mrb[5].mxu1  ;;  %v638_v20 = vadd.f32 %v637_v6, %v636_v9 }
  0xf1   :  { %v1217_v21 = vmax.f32 %v185_v10, 0.0  ;;  %v1219_v22 = vmax.f32 %v410_v11, 0.0  ;;  %v195_v23 = vadd.f32 %v899_v12, %v1179_v44  ;;  %v420_v26 = vadd.f32 %v939_v13, %v1179_v44 }
  0xf2   :  { %v1222_v24 = vmax.f32 %v180_v16, 0.0  ;;  %v1224_v25 = vmax.f32 %v405_v17, 0.0  ;;  %v190_v27 = vadd.f32 %v1179_v44, %v189_v18  ;;  %v415_v31 = vadd.f32 %v1179_v44, %v414_v19 }
  0xf3   :  { %v495_v28 = vsel %vm489_vm1, %v1217_v21, 0.0  ;;  %v570_v29 = vmul.f32 %v1217_v21, %v1217_v21  ;;  %v623_v30 = vmul.f32 %v1219_v22, %v1219_v22  ;;  %v902_v32 = vpop.f32.mrb[6].mxu0  ;;  %v942_v33 = vpop.f32.mrb[6].mxu1  ;;  %v532_v41 = vsel %vm489_vm1, %v1219_v22, 0.0 }
  0xf4   :  { %v493_v34 = vsel %vm489_vm1, %v1222_v24, 0.0  ;;  %v569_v35 = vmul.f32 %v1222_v24, %v1222_v24  ;;  %v530_v36 = vsel %vm489_vm1, %v1224_v25, 0.0  ;;  %v622_v37 = vmul.f32 %v1224_v25, %v1224_v25  ;;  %v199_v38 = vpop.f32.mrb[7].mxu0  ;;  %v424_v39 = vpop.f32.mrb[7].mxu1 }
  0xf5   :  { %v588_v40 = vsel %vm489_vm1, %v570_v29, 0.0  ;;  %v494_v42 = vadd.f32 %v493_v34, %v492_v7  ;;  %v531_v43 = vadd.f32 %v530_v36, %v529_v15  ;;  %v1248_v47 = vmax.f32 %v195_v23, 0.0 }
  0xf6   :  { %v586_v45 = vsel %vm489_vm1, %v569_v35, 0.0  ;;  %v639_v46 = vsel %vm489_vm1, %v622_v37, 0.0  ;;  %v1250_v48 = vmax.f32 %v420_v26, 0.0  ;;  %v1252_v51 = vmax.f32 %v190_v27, 0.0 }
  0xf7   :  { %v587_v49 = vadd.f32 %v586_v45, %v585_v14  ;;  %v640_v50 = vadd.f32 %v639_v46, %v638_v20  ;;  %v496_v52 = vadd.f32 %v495_v28, %v494_v42  ;;  %v905_v57 = vpop.f32.mrb[8].mxu0  ;;  %v945_v58 = vpop.f32.mrb[8].mxu1  ;;  %v641_v59 = vsel %vm489_vm1, %v623_v30, 0.0 }
  0xf8   :  { %v499_v60 = vsel %vm489_vm1, %v1248_v47, 0.0  ;;  %v572_v61 = vmul.f32 %v1248_v47, %v1248_v47  ;;  %v625_v62 = vmul.f32 %v1250_v48, %v1250_v48  ;;  %v209_v63 = vpop.f32.mrb[9].mxu0  ;;  %v1261_v0 = vpop.f32.mrb[9].mxu1  ;;  %v497_v1 = vsel %vm489_vm1, %v1252_v51, 0.0 }
  0xf9   :  { %v571_v2 = vmul.f32 %v1252_v51, %v1252_v51  ;;  %v589_v3 = vadd.f32 %v588_v40, %v587_v49  ;;  %v1267_v4 = vmax.f32 %v415_v31, 0.0  ;;  %v536_v6 = vsel %vm489_vm1, %v1250_v48, 0.0 }
  0xfa   :  { %v592_v5 = vsel %vm489_vm1, %v572_v61, 0.0  ;;  %v498_v7 = vadd.f32 %v497_v1, %v496_v52  ;;  %v533_v8 = vadd.f32 %v532_v41, %v531_v43  ;;  %v642_v12 = vadd.f32 %v641_v59, %v640_v50 }
  0xfb   :  { %v590_v9 = vsel %vm489_vm1, %v571_v2, 0.0  ;;  %v534_v10 = vsel %vm489_vm1, %v1267_v4, 0.0  ;;  %v624_v11 = vmul.f32 %v1267_v4, %v1267_v4  ;;  %v908_v13 = vpop.f32.mrb[10].mxu0  ;;  %v1277_v14 = vpop.f32.mrb[10].mxu1  ;;  %v205_v17 = vadd.f32 %v902_v32, %v1179_v44 }
  0xfc   :  { %v591_v15 = vadd.f32 %v590_v9, %v589_v3  ;;  %v535_v16 = vadd.f32 %v534_v10, %v533_v8  ;;  %v430_v18 = vadd.f32 %v942_v33, %v1179_v44  ;;  %v1281_v19 = vpop.f32.mrb[11].mxu0  ;;  %v1283_v20 = vpop.f32.mrb[11].mxu1  ;;  %v645_v23 = vsel %vm489_vm1, %v625_v62, 0.0 }
  0xfd   :  { %v643_v26 = vsel %vm489_vm1, %v624_v11, 0.0  ;;  %v200_v27 = vadd.f32 %v1179_v44, %v199_v38  ;;  %v425_v28 = vadd.f32 %v1179_v44, %v424_v39  ;;  %v1289_v30 = vmax.f32 %v205_v17, 0.0 }
  0xfe   :  { %v644_v29 = vadd.f32 %v643_v26, %v642_v12  ;;  %v1291_v31 = vmax.f32 %v430_v18, 0.0  ;;  %v500_v32 = vadd.f32 %v499_v60, %v498_v7  ;;  %v537_v35 = vadd.f32 %v536_v6, %v535_v16 }
  0xff   :  { %v1293_v34 = vmax.f32 %v200_v27, 0.0  ;;  %v1295_v33 = vmax.f32 %v425_v28, 0.0  ;;  %v215_v36 = vadd.f32 %v905_v57, %v1179_v44  ;;  %v1298_v37 = vpop.f32.mrb[12].mxu0  ;;  %v1300_v40 = vpop.f32.mrb[12].mxu1  ;;  %v503_v38 = vsel %vm489_vm1, %v1289_v30, 0.0 }
 0x100   :  { %v574_v39 = vmul.f32 %v1289_v30, %v1289_v30  ;;  %v627_v41 = vmul.f32 %v1291_v31, %v1291_v31  ;;  %v593_v42 = vadd.f32 %v592_v5, %v591_v15  ;;  %v1308_v43 = vpop.f32.mrb[13].mxu0  ;;  %v1310_v45 = vpop.f32.mrb[13].mxu1  ;;  %v540_v59 = vsel %vm489_vm1, %v1291_v31, 0.0 }
 0x101   :  { %v501_v46 = vsel %vm489_vm1, %v1293_v34, 0.0  ;;  %v573_v49 = vmul.f32 %v1293_v34, %v1293_v34  ;;  %v538_v50 = vsel %vm489_vm1, %v1295_v33, 0.0  ;;  %v626_v52 = vmul.f32 %v1295_v33, %v1295_v33 }
 0x102   :  { %v596_v57 = vsel %vm489_vm1, %v574_v39, 0.0  ;;  %v502_v60 = vadd.f32 %v501_v46, %v500_v32  ;;  %v539_v61 = vadd.f32 %v538_v50, %v537_v35  ;;  %v646_v1 = vadd.f32 %v645_v23, %v644_v29 }
 0x103   :  { %v594_v62 = vsel %vm489_vm1, %v573_v49, 0.0  ;;  %v647_v2 = vsel %vm489_vm1, %v626_v52, 0.0  ;;  %v1325_v3 = vmax.f32 %v215_v36, 0.0  ;;  %v1327_v5 = vpop.f32.mrb[14].mxu0  ;;  %v1329_v6 = vpop.f32.mrb[14].mxu1  ;;  %v440_v8 = vadd.f32 %v945_v58, %v1179_v44 }
 0x104   :  { %v595_v7 = vadd.f32 %v594_v62, %v593_v42  ;;  %v210_v9 = vadd.f32 %v1179_v44, %v209_v63  ;;  %v504_v10 = vadd.f32 %v503_v38, %v502_v60  ;;  %v1333_v11 = vpop.f32.mrb[15].mxu0  ;;  %v1335_v12 = vpop.f32.mrb[15].mxu1  ;;  %v649_v15 = vsel %vm489_vm1, %v627_v41, 0.0 }
 0x105   :  { %v648_v16 = vadd.f32 %v647_v2, %v646_v1  ;;  %v576_v17 = vmul.f32 %v1325_v3, %v1325_v3  ;;  %v435_v18 = vadd.f32 %v1179_v44, %v1261_v0  ;;  %v1342_v23 = vmax.f32 %v440_v8, 0.0 }
 0x106   :  { %v1344_v26 = vmax.f32 %v210_v9, 0.0  ;;  %v597_v58 = vadd.f32 %v596_v57, %v595_v7  ;;  %v541_v63 = vadd.f32 %v540_v59, %v539_v61  ;;  %v225_v29 = vadd.f32 %v908_v13, %v1179_v44 }
 0x107   :  { %v1346_v27 = vmax.f32 %v435_v18, 0.0  ;;  %v650_v28 = vadd.f32 %v649_v15, %v648_v16  ;;  %v507_v32 = vsel %vm489_vm1, %v1325_v3, 0.0  ;;  %v629_v35 = vmul.f32 %v1342_v23, %v1342_v23 }
 0x108   :  { %v505_v0 = vsel %vm489_vm1, %v1344_v26, 0.0  ;;  %v575_v36 = vmul.f32 %v1344_v26, %v1344_v26  ;;  %v1361_v13 = vmax.f32 %v225_v29, 0.0  ;;  %v600_v42 = vsel %vm489_vm1, %v576_v17, 0.0 }
 0x109   :  { %v506_v38 = vadd.f32 %v505_v0, %v504_v10  ;;  %v542_v39 = vsel %vm489_vm1, %v1346_v27, 0.0  ;;  %v628_v41 = vmul.f32 %v1346_v27, %v1346_v27  ;;  %v450_v50 = vadd.f32 %v1277_v14, %v1179_v44 }
 0x10a   :  { %v598_v46 = vsel %vm489_vm1, %v575_v36, 0.0  ;;  %v543_v49 = vadd.f32 %v542_v39, %v541_v63  ;;  %v544_v52 = vsel %vm489_vm1, %v1342_v23, 0.0  ;;  %v578_v60 = vmul.f32 %v1361_v13, %v1361_v13 }
 0x10b   :  { %v599_v57 = vadd.f32 %v598_v46, %v597_v58  ;;  %v651_v59 = vsel %vm489_vm1, %v628_v41, 0.0  ;;  %v1372_v62 = vmax.f32 %v450_v50, 0.0  ;;  %v220_v1 = vadd.f32 %v1179_v44, %v1281_v19 }
 0x10c   :  { %v652_v61 = vadd.f32 %v651_v59, %v650_v28  ;;  %v508_v2 = vadd.f32 %v507_v32, %v506_v38  ;;  %v653_v7 = vsel %vm489_vm1, %v629_v35, 0.0  ;;  %v445_v14 = vadd.f32 %v1179_v44, %v1283_v20 }
 0x10d   :  { %v601_v8 = vadd.f32 %v600_v42, %v599_v57  ;;  %v545_v9 = vadd.f32 %v544_v52, %v543_v49  ;;  %v511_v10 = vsel %vm489_vm1, %v1361_v13, 0.0  ;;  %v604_v15 = vsel %vm489_vm1, %v578_v60, 0.0 }
 0x10e   :  { %v1382_v16 = vmax.f32 %v220_v1, 0.0  ;;  %v654_v17 = vadd.f32 %v653_v7, %v652_v61  ;;  %v1384_v18 = vmax.f32 %v445_v14, 0.0  ;;  %v235_v19 = vadd.f32 %v1298_v37, %v1179_v44 }
 0x10f   :  { %v460_v58 = vadd.f32 %v1300_v40, %v1179_v44  ;;  %v230_v20 = vadd.f32 %v1179_v44, %v1308_v43  ;;  %v631_v63 = vmul.f32 %v1372_v62, %v1372_v62  ;;  %v455_v32 = vadd.f32 %v1179_v44, %v1310_v45 }
 0x110   :  { %v509_v28 = vsel %vm489_vm1, %v1382_v16, 0.0  ;;  %v577_v29 = vmul.f32 %v1382_v16, %v1382_v16  ;;  %v546_v37 = vsel %vm489_vm1, %v1384_v18, 0.0  ;;  %v630_v40 = vmul.f32 %v1384_v18, %v1384_v18 }
 0x111   :  { %v510_v35 = vadd.f32 %v509_v28, %v508_v2  ;;  %v1404_v43 = vmax.f32 %v235_v19, 0.0  ;;  %v547_v36 = vadd.f32 %v546_v37, %v545_v9  ;;  %v1407_v38 = vmax.f32 %v460_v58, 0.0 }
 0x112   :  { %v602_v0 = vsel %vm489_vm1, %v577_v29, 0.0  ;;  %v1409_v39 = vmax.f32 %v230_v20, 0.0  ;;  %v548_v41 = vsel %vm489_vm1, %v1372_v62, 0.0  ;;  %v655_v42 = vsel %vm489_vm1, %v630_v40, 0.0 }
 0x113   :  { %v603_v45 = vadd.f32 %v602_v0, %v601_v8  ;;  %v580_v46 = vmul.f32 %v1404_v43, %v1404_v43  ;;  %v657_v49 = vsel %vm489_vm1, %v631_v63, 0.0  ;;  %v656_v50 = vadd.f32 %v655_v42, %v654_v17 }
 0x114   :  { %v515_v52 = vsel %vm489_vm1, %v1404_v43, 0.0  ;;  %v512_v57 = vadd.f32 %v511_v10, %v510_v35  ;;  %v633_v59 = vmul.f32 %v1407_v38, %v1407_v38  ;;  %v513_v60 = vsel %vm489_vm1, %v1409_v39, 0.0 }
 0x115   :  { %v579_v61 = vmul.f32 %v1409_v39, %v1409_v39  ;;  %v605_v1 = vadd.f32 %v604_v15, %v603_v45  ;;  %v608_v2 = vsel %vm489_vm1, %v580_v46, 0.0  ;;  %v1426_v8 = vmax.f32 %v455_v32, 0.0 }
 0x116   :  { %v514_v7 = vadd.f32 %v513_v60, %v512_v57  ;;  %v549_v14 = vadd.f32 %v548_v41, %v547_v36  ;;  %v658_v17 = vadd.f32 %v657_v49, %v656_v50  ;;  %v245_v10 = vadd.f32 %v1327_v5, %v1179_v44 }
 0x117   :  { %v606_v9 = vsel %vm489_vm1, %v579_v61, 0.0  ;;  %v470_v19 = vadd.f32 %v1329_v6, %v1179_v44  ;;  %v550_v20 = vsel %vm489_vm1, %v1426_v8, 0.0  ;;  %v632_v15 = vmul.f32 %v1426_v8, %v1426_v8 }
 0x118   :  { %v607_v58 = vadd.f32 %v606_v9, %v605_v1  ;;  %v240_v63 = vadd.f32 %v1179_v44, %v1333_v11  ;;  %v551_v28 = vadd.f32 %v550_v20, %v549_v14  ;;  %v1439_v29 = vmax.f32 %v245_v10, 0.0 }
 0x119   :  { %v1441_v32 = vmax.f32 %v470_v19, 0.0  ;;  %v516_v35 = vadd.f32 %v515_v52, %v514_v7  ;;  %v659_v5 = vsel %vm489_vm1, %v632_v15, 0.0  ;;  %v465_v40 = vadd.f32 %v1179_v44, %v1335_v12 }
 0x11a   :  { %v1444_v37 = vmax.f32 %v240_v63, 0.0  ;;  %v609_v6 = vadd.f32 %v608_v2, %v607_v58  ;;  %v552_v0 = vsel %vm489_vm1, %v1407_v38, 0.0  ;;  %v661_v36 = vsel %vm489_vm1, %v633_v59, 0.0 }
 0x11b   :  { %v660_v11 = vadd.f32 %v659_v5, %v658_v17  ;;  %v582_v41 = vmul.f32 %v1439_v29, %v1439_v29  ;;  %v1457_v46 = vmax.f32 %v465_v40, 0.0  ;;  %v519_v44 = vsel %vm489_vm1, %v1439_v29, 0.0 }
 0x11c   :  { %v517_v45 = vsel %vm489_vm1, %v1444_v37, 0.0  ;;  %v581_v42 = vmul.f32 %v1444_v37, %v1444_v37  ;;  %v553_v49 = vadd.f32 %v552_v0, %v551_v28  ;;  %v635_v52 = vmul.f32 %v1441_v32, %v1441_v32 }
 0x11d   :  { %v518_v12 = vadd.f32 %v517_v45, %v516_v35  ;;  %v662_v50 = vadd.f32 %v661_v36, %v660_v11  ;;  %v554_v59 = vsel %vm489_vm1, %v1457_v46, 0.0  ;;  %v634_v60 = vmul.f32 %v1457_v46, %v1457_v46 }
 0x11e   :  { %v610_v57 = vsel %vm489_vm1, %v581_v42, 0.0  ;;  %v555_v2 = vadd.f32 %v554_v59, %v553_v49  ;;  %v612_v7 = vsel %vm489_vm1, %v582_v41, 0.0  ;;  %v556_v14 = vsel %vm489_vm1, %v1441_v32, 0.0 }
 0x11f   :  { %v520_v61 = vadd.f32 %v519_v44, %v518_v12  ;;  %v611_v1 = vadd.f32 %v610_v57, %v609_v6  ;;  %v663_v9 = vsel %vm489_vm1, %v634_v60, 0.0  ;;  %v665_v20 = vsel %vm489_vm1, %v635_v52, 0.0 }
 0x120   :  { %v557_v19 = vadd.f32 %v556_v14, %v555_v2  ;;  %v664_v58 = vadd.f32 %v663_v9, %v662_v50 }
 0x121   :  { %v521_v17 = vrot.slane %v520_v61, 4  ;;  %v613_v10 = vadd.f32 %v612_v7, %v611_v1 }
 0x122   :  { %v558_v28 = vrot.slane %v557_v19, 4  ;;  %v666_v35 = vadd.f32 %v665_v20, %v664_v58  ;;  %v684_v20 = vlaneseq }
 0x123   :  { %v522_v15 = vadd.f32 %v521_v17, %v520_v61  ;;  %v614_v63 = vrot.slane %v613_v10, 4 }
 0x124   :  { %v559_v40 = vadd.f32 %v558_v28, %v557_v19  ;;  %v667_v0 = vrot.slane %v666_v35, 4 }
 0x125   :  { %v523_v5 = vrot.slane %v522_v15, 2  ;;  %v615_v6 = vadd.f32 %v614_v63, %v613_v10  ;;  %v679_v63 = vld [vmem:[%s1579_s4] sm:$0x1] }
 0x126   :  { %v560_v41 = vrot.slane %v559_v40, 2  ;;  %v668_v45 = vadd.f32 %v667_v0, %v666_v35 }
 0x127   :  { %v524_v36 = vadd.f32 %v523_v5, %v522_v15  ;;  %v616_v11 = vrot.slane %v615_v6, 2  ;;  %v685_v15 = vshrl.u32 %v684_v20, 7 }
 0x128   :  { %v561_v12 = vadd.f32 %v560_v41, %v559_v40  ;;  %v669_v49 = vrot.slane %v668_v45, 2 }
 0x129   :  { %v525_v42 = vrot.slane %v524_v36, 1  ;;  %v617_v44 = vadd.f32 %v616_v11, %v615_v6  ;;  %v686_v28 = vsub.s32 0, %v685_v15  ;;  %v681_v6 = vld [vmem:[%s1580_s5] sm:$0x1] }
 0x12a   :  { %v562_v59 = vrot.slane %v561_v12, 1  ;;  %v670_v52 = vadd.f32 %v669_v49, %v668_v45 }
 0x12b   :  { %v526_v57 = vadd.f32 %v525_v42, %v524_v36  ;;  %v618_v50 = vrot.slane %v617_v44, 1 }
 0x12c   :  { %v563_v61 = vadd.f32 %v562_v59, %v561_v12  ;;  %v671_v1 = vrot.slane %v670_v52, 1 }
 0x12d   :  { %v619_v60 = vadd.f32 %v618_v50, %v617_v44 }
 0x12e   :  { %v564_v2 = vadd.f32 %v563_v61, %v526_v57  ;;  %v672_v7 = vadd.f32 %v671_v1, %v670_v52 }
 0x130   :  { %v566_v14 = vmul.f32 0.00390625, %v564_v2  ;;  %v673_v9 = vadd.f32 %v672_v7, %v619_v60 }
 0x132   :  { %v674_v17 = vmul.f32 0.00390625, %v673_v9  ;;  %v675_v10 = vmul.f32 %v566_v14, %v566_v14 }
 0x134   :  { %v676_v19 = vsub.f32 %v674_v17, %v675_v10 }
 0x136   :  { %v677_v58 = vadd.f32 1e-05, %v676_v19 }
 0x138   :  { %987 = vrsqrt.f32 %v677_v58 }
 0x142   :  { %v988_v35 = vpop.eup %987 }
 0x143   :  { %v680_v5 = vmul.f32 %v988_v35, %v679_v63 }
 0x145   :  { %v682_v40 = vmul.f32 %v680_v5, %v566_v14  ;;  %v687_v0 = vrot.slane %v680_v5, %v686_v28 }
 0x147   :  { %v683_v36 = vsub.f32 %v681_v6, %v682_v40  ;;  %v688_v11 = vmul.f32 %v687_v0, %v1189_v55  ;;  %v689_v41 = vmul.f32 %v687_v0, %v1185_v53  ;;  %v690_v45 = vmul.f32 %v687_v0, %v1222_v24 }
 0x148   :  { %v691_v42 = vmul.f32 %v687_v0, %v1217_v21  ;;  %v692_v44 = vmul.f32 %v687_v0, %v1252_v51  ;;  %v693_v12 = vmul.f32 %v687_v0, %v1248_v47  ;;  %v694_v49 = vmul.f32 %v687_v0, %v1293_v34 }
 0x149   :  { %v695_v57 = vmul.f32 %v687_v0, %v1289_v30  ;;  %v696_v50 = vmul.f32 %v687_v0, %v1344_v26  ;;  %v697_v59 = vmul.f32 %v687_v0, %v1325_v3  ;;  %v698_v55 = vmul.f32 %v687_v0, %v1382_v16 }
 0x14a   :  { %v699_v53 = vmul.f32 %v687_v0, %v1361_v13  ;;  %v700_v24 = vmul.f32 %v687_v0, %v1409_v39  ;;  %v701_v21 = vmul.f32 %v687_v0, %v1404_v43  ;;  %v702_v51 = vmul.f32 %v687_v0, %v1444_v37 }
 0x14b   :  { %v703_v47 = vmul.f32 %v687_v0, %v1439_v29  ;;  %v708_v52 = vrot.slane %v683_v36, %v686_v28  ;;  %v726_v34 = vmul.f32 %v687_v0, %v1191_v56  ;;  %v727_v30 = vmul.f32 %v687_v0, %v1187_v54 }
 0x14c   :  { %v728_v26 = vmul.f32 %v687_v0, %v1224_v25  ;;  %v729_v3 = vmul.f32 %v687_v0, %v1219_v22  ;;  %v730_v16 = vmul.f32 %v687_v0, %v1267_v4  ;;  %v731_v13 = vmul.f32 %v687_v0, %v1250_v48 }
 0x14d   :  { %v710_v39 = vadd.f32 %v708_v52, %v688_v11  ;;  %v711_v60 = vadd.f32 %v708_v52, %v689_v41  ;;  %v712_v43 = vadd.f32 %v708_v52, %v690_v45  ;;  %v713_v61 = vadd.f32 %v708_v52, %v691_v42 }
 0x14e   :  { %v714_v37 = vadd.f32 %v708_v52, %v692_v44  ;;  %v715_v1 = vadd.f32 %v708_v52, %v693_v12  ;;  %v716_v29 = vadd.f32 %v708_v52, %v694_v49  ;;  %v717_v2 = vadd.f32 %v708_v52, %v695_v57 }
 0x14f   :  { %v718_v7 = vadd.f32 %v708_v52, %v696_v50  ;;  %v719_v56 = vadd.f32 %v708_v52, %v697_v59  ;;  %v720_v14 = vadd.f32 %v708_v52, %v698_v55  ;;  %v721_v54 = vadd.f32 %v708_v52, %v699_v53 }
 0x150   :  { %v722_v9 = vadd.f32 %v708_v52, %v700_v24  ;;  %v723_v25 = vadd.f32 %v708_v52, %v701_v21  ;;  %v724_v17 = vadd.f32 %v708_v52, %v702_v51  ;;  %v725_v22 = vadd.f32 %v708_v52, %v703_v47 }
 0x151   :  { %v732_v4 = vmul.f32 %v687_v0, %v1295_v33  ;;  %v733_v48 = vmul.f32 %v687_v0, %v1291_v31  ;;  %v734_v10 = vmul.f32 %v687_v0, %v1346_v27  ;;  %v735_v19 = vmul.f32 %v687_v0, %v1342_v23 }
 0x152   :  { %v736_v58 = vmul.f32 %v687_v0, %v1384_v18  ;;  %v737_v20 = vmul.f32 %v687_v0, %v1372_v62  ;;  %v738_v15 = vmul.f32 %v687_v0, %v1426_v8  ;;  %v739_v63 = vmul.f32 %v687_v0, %v1407_v38 }
 0x153   :  { %v740_v28 = vmul.f32 %v687_v0, %v1457_v46  ;;  %v741_v35 = vmul.f32 %v687_v0, %v1441_v32  ;;  %v742_v5 = vadd.f32 %v726_v34, %v708_v52  ;;  %v743_v33 = vadd.f32 %v727_v30, %v708_v52 }
 0x154   :  { %v744_v6 = vadd.f32 %v728_v26, %v708_v52  ;;  %v745_v31 = vadd.f32 %v729_v3, %v708_v52  ;;  %v746_v40 = vadd.f32 %v730_v16, %v708_v52  ;;  %v747_v27 = vadd.f32 %v731_v13, %v708_v52 }
 0x155   :  { %v748_v36 = vadd.f32 %v732_v4, %v708_v52  ;;  %v749_v23 = vadd.f32 %v733_v48, %v708_v52  ;;  %v750_v11 = vadd.f32 %v734_v10, %v708_v52  ;;  %v751_v18 = vadd.f32 %v735_v19, %v708_v52 }
 0x156   :  { %v752_v41 = vadd.f32 %v736_v58, %v708_v52  ;;  %v753_v62 = vadd.f32 %v737_v20, %v708_v52  ;;  %v754_v45 = vadd.f32 %v738_v15, %v708_v52  ;;  %v755_v8 = vadd.f32 %v739_v63, %v708_v52 }
 0x157   :  { %v756_v42 = vadd.f32 %v740_v28, %v708_v52  ;;  %v757_v38 = vadd.f32 %v741_v35, %v708_v52  ;;  %v758_v44 = vmax.f32 %v710_v39, %v742_v5  ;;  %v759_v46 = vmax.f32 %v711_v60, %v743_v33 }
 0x158   :  { %v760_v12 = vmax.f32 %v712_v43, %v744_v6  ;;  %v761_v32 = vmax.f32 %v713_v61, %v745_v31  ;;  %v762_v0 = vmax.f32 %v714_v37, %v746_v40  ;;  %v763_v49 = vmax.f32 %v715_v1, %v747_v27 }
 0x159   :  { %v764_v57 = vmax.f32 %v716_v29, %v748_v36  ;;  %v765_v50 = vmax.f32 %v717_v2, %v749_v23  ;;  %v766_v59 = vmax.f32 %v718_v7, %v750_v11  ;;  %v767_v55 = vmax.f32 %v719_v56, %v751_v18  ;;  %774 = vst.msk [vmem:[%s1581_s6] sm:$0xff] %vm489_vm1, %v758_v44 }
 0x15a   :  { %775 = vst.msk [vmem:[%s1581_s6 + $0x8] sm:$0xff] %vm489_vm1, %v759_v46  ;;  %v768_v53 = vmax.f32 %v720_v14, %v752_v41  ;;  %v769_v24 = vmax.f32 %v721_v54, %v753_v62  ;;  %v770_v21 = vmax.f32 %v722_v9, %v754_v45  ;;  %v771_v51 = vmax.f32 %v723_v25, %v755_v8 }
 0x15b   :  { %776 = vst.msk [vmem:[%s1581_s6 + $0x10] sm:$0xff] %vm489_vm1, %v760_v12  ;;  %777 = vst.msk [vmem:[%s1581_s6 + $0x18] sm:$0xff] %vm489_vm1, %v761_v32  ;;  %v772_v47 = vmax.f32 %v724_v17, %v756_v42  ;;  %v773_v52 = vmax.f32 %v725_v22, %v757_v38 }
 0x15c   :  { %778 = vst.msk [vmem:[%s1581_s6 + $0x20] sm:$0xff] %vm489_vm1, %v762_v0  ;;  %779 = vst.msk [vmem:[%s1581_s6 + $0x28] sm:$0xff] %vm489_vm1, %v763_v49 }
 0x15d   :  { %780 = vst.msk [vmem:[%s1581_s6 + $0x30] sm:$0xff] %vm489_vm1, %v764_v57  ;;  %781 = vst.msk [vmem:[%s1581_s6 + $0x38] sm:$0xff] %vm489_vm1, %v765_v50 }
 0x15e   :  { %782 = vst.msk [vmem:[%s1581_s6 + $0x40] sm:$0xff] %vm489_vm1, %v766_v59  ;;  %783 = vst.msk [vmem:[%s1581_s6 + $0x48] sm:$0xff] %vm489_vm1, %v767_v55 }
 0x15f   :  { %784 = vst.msk [vmem:[%s1581_s6 + $0x50] sm:$0xff] %vm489_vm1, %v768_v53  ;;  %785 = vst.msk [vmem:[%s1581_s6 + $0x58] sm:$0xff] %vm489_vm1, %v769_v24 }
 0x160   :  { %786 = vst.msk [vmem:[%s1581_s6 + $0x60] sm:$0xff] %vm489_vm1, %v770_v21  ;;  %787 = vst.msk [vmem:[%s1581_s6 + $0x68] sm:$0xff] %vm489_vm1, %v771_v51 }
 0x161   :  { %788 = vst.msk [vmem:[%s1581_s6 + $0x70] sm:$0xff] %vm489_vm1, %v772_v47  ;;  %789 = vst.msk [vmem:[%s1581_s6 + $0x78] sm:$0xff] %vm489_vm1, %v773_v52 }

// kernel: bearing_clip_forward.4
= control target key start
LH: loop header
LB: loop body
LE: loop exit
PB: predicated region body
PF: predicated region fallthrough
CT: control target
= control target key end

     0   :  { %vm474_vm0 = vcmask 261120   ;;  %s1438_s2 = inlined_call_operand.vmem [shape: f32[512,32], index: 2, kind: input, shape index: {}]   ;;  %s1439_s0 = inlined_call_operand.vmem [shape: f32[32,512], index: 0, kind: input, shape index: {}]   ;;  %s1440_s1 = inlined_call_operand.vmem [shape: f32[32,512], index: 1, kind: input, shape index: {}]   ;;  %s1441_s3 = inlined_call_operand.vmem [shape: f32[1,32], index: 3, kind: input, shape index: {}]   ;;  %s1442_s4 = inlined_call_operand.vmem [shape: f32[1,32], index: 4, kind: input, shape index: {}]   ;;  %s1443_s5 = inlined_call_operand.vmem [shape: f32[1,32], index: 5, kind: input, shape index: {}]   ;;  %s1444_s6 = inlined_call_operand.vmem [shape: f32[32,32], index: 6, kind: output, shape index: {}]  }
   0x1   :  { %v39_v0 = vld [vmem:[%s1438_s2 + $0x80] sm:$0xff]  ;;  %v40_v1 = vld [vmem:[%s1438_s2 + $0x88] sm:$0xff]  ;;  %v41_v11 = vld [vmem:[%s1438_s2 + $0x90] sm:$0xff] }
   0x2   :  { %v23_v2 = vld [vmem:[%s1438_s2] sm:$0xff]  ;;  %v938_v3 = vpack.c.bf16 %v40_v1, %v39_v0  ;;  %v24_v4 = vld [vmem:[%s1438_s2 + $0x8] sm:$0xff]  ;;  %v42_v13 = vld [vmem:[%s1438_s2 + $0x98] sm:$0xff] }
   0x3   :  { %v71_v5 = vld [vmem:[%s1438_s2 + $0x180] sm:$0xff]  ;;  %v72_v6 = vld [vmem:[%s1438_s2 + $0x188] sm:$0xff]  ;;  %v949_v7 = vpack.c.bf16 %v24_v4, %v23_v2  ;;  %v25_v14 = vld [vmem:[%s1438_s2 + $0x10] sm:$0xff]  ;;  %v976_v16 = vpack.c.bf16 %v42_v13, %v41_v11 }
   0x4   :  { %v951_v8 = vpack.c.bf16 %v72_v6, %v71_v5  ;;  %v55_v9 = vld [vmem:[%s1438_s2 + $0x100] sm:$0xff]  ;;  %v56_v10 = vld [vmem:[%s1438_s2 + $0x108] sm:$0xff]  ;;  %765 = vmatprep.subr.bf16.mxu0 %v938_v3  ;;  %v26_v15 = vld [vmem:[%s1438_s2 + $0x18] sm:$0xff] }
   0x5   :  { %v963_v12 = vpack.c.bf16 %v56_v10, %v55_v9  ;;  %767 = vmatpush3.bf16.msra.mxu0 %v949_v7  ;;  %v978_v17 = vpack.c.bf16 %v26_v15, %v25_v14  ;;  %v73_v18 = vld [vmem:[%s1438_s2 + $0x190] sm:$0xff]  ;;  %v74_v19 = vld [vmem:[%s1438_s2 + $0x198] sm:$0xff]  ;;  %v43_v23 = vld [vmem:[%s1438_s2 + $0xa0] sm:$0xff] }
   0x6   :  { %797 = vmatprep.subr.bf16.mxu1 %v951_v8  ;;  %v57_v20 = vld [vmem:[%s1438_s2 + $0x110] sm:$0xff]  ;;  %v990_v21 = vpack.c.bf16 %v74_v19, %v73_v18  ;;  %v58_v22 = vld [vmem:[%s1438_s2 + $0x118] sm:$0xff]  ;;  %v44_v24 = vld [vmem:[%s1438_s2 + $0xa8] sm:$0xff]  ;;  %769 = vmatprep.subr.bf16.mxu0 %v976_v16 }
   0x7   :  { %799 = vmatpush3.bf16.msra.mxu1 %v963_v12  ;;  %v1002_v25 = vpack.c.bf16 %v58_v22, %v57_v20  ;;  %v1004_v26 = vpack.c.bf16 %v44_v24, %v43_v23  ;;  %v27_v27 = vld [vmem:[%s1438_s2 + $0x20] sm:$0xff]  ;;  %v28_v28 = vld [vmem:[%s1438_s2 + $0x28] sm:$0xff]  ;;  %v45_v35 = vld [vmem:[%s1438_s2 + $0xb0] sm:$0xff] }
   0x8   :  { %v75_v29 = vld [vmem:[%s1438_s2 + $0x1a0] sm:$0xff]  ;;  %801 = vmatprep.subr.bf16.mxu1 %v990_v21  ;;  %v76_v30 = vld [vmem:[%s1438_s2 + $0x1a8] sm:$0xff]  ;;  %v1026_v33 = vpack.c.bf16 %v28_v28, %v27_v27  ;;  %v46_v36 = vld [vmem:[%s1438_s2 + $0xb8] sm:$0xff] }
   0x9   :  { %v59_v31 = vld [vmem:[%s1438_s2 + $0x120] sm:$0xff]  ;;  %v60_v32 = vld [vmem:[%s1438_s2 + $0x128] sm:$0xff]  ;;  %771 = vmatpush3.bf16.msra.mxu0 %v978_v17  ;;  %v1028_v34 = vpack.c.bf16 %v76_v30, %v75_v29  ;;  %v29_v37 = vld [vmem:[%s1438_s2 + $0x30] sm:$0xff]  ;;  %v1043_v39 = vpack.c.bf16 %v46_v36, %v45_v35 }
   0xa   :  { %773 = vmatprep.subr.bf16.mxu0 %v1004_v26  ;;  %v1041_v38 = vpack.c.bf16 %v60_v32, %v59_v31  ;;  %v30_v40 = vld [vmem:[%s1438_s2 + $0x38] sm:$0xff]  ;;  %v77_v41 = vld [vmem:[%s1438_s2 + $0x1b0] sm:$0xff]  ;;  %v47_v46 = vld [vmem:[%s1438_s2 + $0xc0] sm:$0xff] }
   0xb   :  { %803 = vmatpush3.bf16.msra.mxu1 %v1002_v25  ;;  %v78_v42 = vld [vmem:[%s1438_s2 + $0x1b8] sm:$0xff]  ;;  %v61_v44 = vld [vmem:[%s1438_s2 + $0x130] sm:$0xff]  ;;  %v48_v47 = vld [vmem:[%s1438_s2 + $0xc8] sm:$0xff]  ;;  %v1070_v48 = vpack.c.bf16 %v30_v40, %v29_v37 }
   0xc   :  { %805 = vmatprep.subr.bf16.mxu1 %v1028_v34  ;;  %v1055_v43 = vpack.c.bf16 %v78_v42, %v77_v41  ;;  %v62_v45 = vld [vmem:[%s1438_s2 + $0x138] sm:$0xff]  ;;  %v79_v49 = vld [vmem:[%s1438_s2 + $0x1c0] sm:$0xff]  ;;  %v80_v50 = vld [vmem:[%s1438_s2 + $0x1c8] sm:$0xff]  ;;  %v1082_v52 = vpack.c.bf16 %v48_v47, %v47_v46 }
   0xd   :  { %775 = vmatpush3.bf16.msra.mxu0 %v1026_v33  ;;  %v1080_v51 = vpack.c.bf16 %v62_v45, %v61_v44  ;;  %v31_v53 = vld [vmem:[%s1438_s2 + $0x40] sm:$0xff]  ;;  %v32_v54 = vld [vmem:[%s1438_s2 + $0x48] sm:$0xff]  ;;  %v1094_v56 = vpack.c.bf16 %v80_v50, %v79_v49  ;;  %v49_v58 = vld [vmem:[%s1438_s2 + $0xd0] sm:$0xff] }
   0xe   :  { %777 = vmatprep.subr.bf16.mxu0 %v1043_v39  ;;  %v63_v55 = vld [vmem:[%s1438_s2 + $0x140] sm:$0xff]  ;;  %v64_v57 = vld [vmem:[%s1438_s2 + $0x148] sm:$0xff]  ;;  %v50_v59 = vld [vmem:[%s1438_s2 + $0xd8] sm:$0xff]  ;;  %v1112_v62 = vpack.c.bf16 %v32_v54, %v31_v53 }
   0xf   :  { %807 = vmatpush3.bf16.msra.mxu1 %v1041_v38  ;;  %v81_v60 = vld [vmem:[%s1438_s2 + $0x1d0] sm:$0xff]  ;;  %v82_v61 = vld [vmem:[%s1438_s2 + $0x1d8] sm:$0xff]  ;;  %v1116_v63 = vpack.c.bf16 %v64_v57, %v63_v55  ;;  %v1118_v0 = vpack.c.bf16 %v50_v59, %v49_v58  ;;  %v51_v9 = vld [vmem:[%s1438_s2 + $0xe0] sm:$0xff] }
  0x10   :  { %809 = vmatprep.subr.bf16.mxu1 %v1055_v43  ;;  %v33_v1 = vld [vmem:[%s1438_s2 + $0x50] sm:$0xff]  ;;  %v34_v2 = vld [vmem:[%s1438_s2 + $0x58] sm:$0xff]  ;;  %v1130_v5 = vpack.c.bf16 %v82_v61, %v81_v60  ;;  %v52_v10 = vld [vmem:[%s1438_s2 + $0xe8] sm:$0xff] }
  0x11   :  { %779 = vmatpush3.bf16.msra.mxu0 %v1070_v48  ;;  %v65_v4 = vld [vmem:[%s1438_s2 + $0x150] sm:$0xff]  ;;  %v66_v6 = vld [vmem:[%s1438_s2 + $0x158] sm:$0xff]  ;;  %v83_v11 = vld [vmem:[%s1438_s2 + $0x1e0] sm:$0xff]  ;;  %v1148_v14 = vpack.c.bf16 %v34_v2, %v33_v1  ;;  %v1160_v20 = vpack.c.bf16 %v52_v10, %v51_v9 }
  0x12   :  { %781 = vmatprep.subr.bf16.mxu0 %v1082_v52  ;;  %v84_v13 = vld [vmem:[%s1438_s2 + $0x1e8] sm:$0xff]  ;;  %v35_v15 = vld [vmem:[%s1438_s2 + $0x60] sm:$0xff]  ;;  %v1158_v19 = vpack.c.bf16 %v66_v6, %v65_v4  ;;  %v53_v28 = vld [vmem:[%s1438_s2 + $0xf0] sm:$0xff] }
  0x13   :  { %811 = vmatpush3.bf16.msra.mxu1 %v1080_v51  ;;  %v36_v18 = vld [vmem:[%s1438_s2 + $0x68] sm:$0xff]  ;;  %v67_v22 = vld [vmem:[%s1438_s2 + $0x160] sm:$0xff]  ;;  %v1172_v27 = vpack.c.bf16 %v84_v13, %v83_v11  ;;  %v54_v29 = vld [vmem:[%s1438_s2 + $0xf8] sm:$0xff] }
  0x14   :  { %813 = vmatprep.subr.bf16.mxu1 %v1094_v56  ;;  %v68_v23 = vld [vmem:[%s1438_s2 + $0x168] sm:$0xff]  ;;  %v91_v30 = vld [vmem:[%s1439_s0 + $0x18] sm:$0xff]  ;;  %v85_v31 = vld [vmem:[%s1438_s2 + $0x1f0] sm:$0xff]  ;;  %v1190_v35 = vpack.c.bf16 %v36_v18, %v35_v15  ;;  %v1196_v37 = vpack.c.bf16 %v54_v29, %v53_v28 }
  0x15   :  { %783 = vmatpush3.bf16.msra.mxu0 %v1112_v62  ;;  %v89_v24 = vld [vmem:[%s1439_s0 + $0x8] sm:$0xff]  ;;  %v86_v32 = vld [vmem:[%s1438_s2 + $0x1f8] sm:$0xff]  ;;  %259 = vmatprep.mubr.f32.mxu1 %v91_v30  ;;  %v1194_v36 = vpack.c.bf16 %v68_v23, %v67_v22  ;;  %v37_v40 = vld [vmem:[%s1438_s2 + $0x70] sm:$0xff] }
  0x16   :  { %785 = vmatprep.subr.bf16.mxu0 %v1118_v0  ;;  %174 = vmatprep.mubr.f32.mxu0 %v89_v24  ;;  %v38_v41 = vld [vmem:[%s1438_s2 + $0x78] sm:$0xff]  ;;  %v1205_v42 = vpack.c.bf16 %v86_v32, %v85_v31  ;;  %v69_v44 = vld [vmem:[%s1438_s2 + $0x170] sm:$0xff]  ;;  %v88_v49 = vld [vmem:[%s1439_s0] sm:$0xff] }
  0x17   :  { %815 = vmatpush3.bf16.msra.mxu1 %v1116_v63  ;;  %v70_v45 = vld [vmem:[%s1438_s2 + $0x178] sm:$0xff]  ;;  %v1214_v46 = vpack.c.bf16 %v38_v41, %v37_v40  ;;  %v90_v50 = vld [vmem:[%s1439_s0 + $0x10] sm:$0xff]  ;;  %v93_v53 = vld [vmem:[%s1439_s0 + $0x28] sm:$0xff] }
  0x18   :  { %817 = vmatprep.subr.bf16.mxu1 %v1130_v5  ;;  %v1218_v47 = vpack.c.bf16 %v70_v45, %v69_v44  ;;  %v95_v54 = vld [vmem:[%s1439_s0 + $0x38] sm:$0xff]  ;;  %v97_v55 = vld [vmem:[%s1439_s0 + $0x48] sm:$0xff]  ;;  %v292_v58 = vld [vmem:[%s1440_s1 + $0x40] sm:$0xff] }
  0x19   :  { %787 = vmatpush3.bf16.msra.mxu0 %v1148_v14  ;;  %v295_v57 = vld [vmem:[%s1440_s1 + $0x58] sm:$0xff]  ;;  %v294_v59 = vld [vmem:[%s1440_s1 + $0x50] sm:$0xff]  ;;  %v297_v60 = vld [vmem:[%s1440_s1 + $0x68] sm:$0xff] }
  0x1a   :  { %789 = vmatprep.subr.bf16.mxu0 %v1160_v20  ;;  %v299_v61 = vld [vmem:[%s1440_s1 + $0x78] sm:$0xff]  ;;  %v1348_v1 = vld [vmem:[%s1441_s3] ss:$0 sm:$0xff] }
  0x1b   :  { %819 = vmatpush3.bf16.msra.mxu1 %v1158_v19 }
  0x1c   :  { %821 = vmatprep.subr.bf16.mxu1 %v1172_v27 }
  0x1d   :  { %791 = vmatpush3.bf16.msra.mxu0 %v1190_v35 }
  0x1e   :  { %793 = vmatprep.subr.bf16.mxu0 %v1196_v37 }
  0x1f   :  { %823 = vmatpush3.bf16.msra.mxu1 %v1194_v36 }
  0x20   :  { %825 = vmatprep.subr.bf16.mxu1 %v1205_v42 }
  0x21   :  { %795 = vmatpush3.bf16.msra.mxu0 %v1214_v46 }
  0x22   :  { %829 = vmatprep.subr.bf16.mxu0 %v938_v3  ;;  %v92_v3 = vld [vmem:[%s1439_s0 + $0x20] sm:$0xff] }
  0x23   :  { %827 = vmatpush3.bf16.msra.mxu1 %v1218_v47 }
  0x24   :  { %861 = vmatprep.subr.bf16.mxu1 %v951_v8  ;;  %175 = vmatmul.mubr.f32.vlgmr.msra.gmra.mrb[0].mxu0 %v88_v49  ;;  %v94_v8 = vld [vmem:[%s1439_s0 + $0x30] sm:$0xff] }
  0x25   :  { %831 = vmatpush3.bf16.msra.mxu0 %v949_v7  ;;  %179 = vmatprep.mubr.f32.mxu0 %v93_v53  ;;  %v99_v7 = vld [vmem:[%s1439_s0 + $0x58] sm:$0xff] }
  0x26   :  { %260 = vmatmul.mubr.f32.vlgmr.msra.gmra.mrb[0].mxu1 %v90_v50  ;;  %833 = vmatprep.subr.bf16.mxu0 %v976_v16  ;;  %v98_v16 = vld [vmem:[%s1439_s0 + $0x50] sm:$0xff] }
  0x27   :  { %863 = vmatpush3.bf16.msra.mxu1 %v963_v12  ;;  %264 = vmatprep.mubr.f32.mxu1 %v95_v54  ;;  %v96_v12 = vld [vmem:[%s1439_s0 + $0x40] sm:$0xff] }
  0x28   :  { %180 = vmatmul.mubr.f32.gmra.mrb[2].mxu0 %v92_v3  ;;  %865 = vmatprep.subr.bf16.mxu1 %v990_v21  ;;  %v101_v21 = vld [vmem:[%s1439_s0 + $0x68] sm:$0xff] }
  0x29   :  { %835 = vmatpush3.bf16.msra.mxu0 %v978_v17  ;;  %184 = vmatprep.mubr.f32.mxu0 %v97_v55  ;;  %v103_v17 = vld [vmem:[%s1439_s0 + $0x78] sm:$0xff] }
  0x2a   :  { %265 = vmatmul.mubr.f32.gmra.mrb[2].mxu1 %v94_v8  ;;  %837 = vmatprep.subr.bf16.mxu0 %v1004_v26  ;;  %v102_v26 = vld [vmem:[%s1439_s0 + $0x70] sm:$0xff] }
  0x2b   :  { %867 = vmatpush3.bf16.msra.mxu1 %v1002_v25  ;;  %269 = vmatprep.mubr.f32.mxu1 %v99_v7  ;;  %v100_v25 = vld [vmem:[%s1439_s0 + $0x60] sm:$0xff] }
  0x2c   :  { %185 = vmatmul.mubr.f32.gmra.mrb[4].mxu0 %v96_v12  ;;  %869 = vmatprep.subr.bf16.mxu1 %v1028_v34  ;;  %v287_v34 = vld [vmem:[%s1440_s1 + $0x18] sm:$0xff] }
  0x2d   :  { %839 = vmatpush3.bf16.msra.mxu0 %v1026_v33  ;;  %189 = vmatprep.mubr.f32.mxu0 %v101_v21  ;;  %v285_v33 = vld [vmem:[%s1440_s1 + $0x8] sm:$0xff] }
  0x2e   :  { %270 = vmatmul.mubr.f32.gmra.mrb[4].mxu1 %v98_v16  ;;  %841 = vmatprep.subr.bf16.mxu0 %v1043_v39  ;;  %v286_v39 = vld [vmem:[%s1440_s1 + $0x10] sm:$0xff] }
  0x2f   :  { %871 = vmatpush3.bf16.msra.mxu1 %v1041_v38  ;;  %274 = vmatprep.mubr.f32.mxu1 %v103_v17  ;;  %v284_v38 = vld [vmem:[%s1440_s1] sm:$0xff] }
  0x30   :  { %190 = vmatmul.mubr.f32.gmra.mrb[6].mxu0 %v100_v25  ;;  %873 = vmatprep.subr.bf16.mxu1 %v1055_v43  ;;  %v289_v43 = vld [vmem:[%s1440_s1 + $0x28] sm:$0xff] }
  0x31   :  { %843 = vmatpush3.bf16.msra.mxu0 %v1070_v48  ;;  %364 = vmatprep.mubr.f32.mxu0 %v285_v33  ;;  %v291_v48 = vld [vmem:[%s1440_s1 + $0x38] sm:$0xff] }
  0x32   :  { %275 = vmatmul.mubr.f32.gmra.mrb[6].mxu1 %v102_v26  ;;  %845 = vmatprep.subr.bf16.mxu0 %v1082_v52  ;;  %v290_v52 = vld [vmem:[%s1440_s1 + $0x30] sm:$0xff] }
  0x33   :  { %875 = vmatpush3.bf16.msra.mxu1 %v1080_v51  ;;  %449 = vmatprep.mubr.f32.mxu1 %v287_v34  ;;  %v288_v51 = vld [vmem:[%s1440_s1 + $0x20] sm:$0xff] }
  0x34   :  { %877 = vmatprep.subr.bf16.mxu1 %v1094_v56  ;;  %v293_v56 = vld [vmem:[%s1440_s1 + $0x48] sm:$0xff] }
  0x35   :  { %847 = vmatpush3.bf16.msra.mxu0 %v1112_v62  ;;  %v296_v62 = vld [vmem:[%s1440_s1 + $0x60] sm:$0xff] }
  0x36   :  { %849 = vmatprep.subr.bf16.mxu0 %v1118_v0 }
  0x37   :  { %879 = vmatpush3.bf16.msra.mxu1 %v1116_v63  ;;  %v298_v63 = vld [vmem:[%s1440_s1 + $0x70] sm:$0xff] }
  0x38   :  { %881 = vmatprep.subr.bf16.mxu1 %v1130_v5 }
  0x39   :  { %851 = vmatpush3.bf16.msra.mxu0 %v1148_v14 }
  0x3a   :  { %853 = vmatprep.subr.bf16.mxu0 %v1160_v20 }
  0x3b   :  { %883 = vmatpush3.bf16.msra.mxu1 %v1158_v19 }
  0x3c   :  { %885 = vmatprep.subr.bf16.mxu1 %v1172_v27 }
  0x3d   :  { %855 = vmatpush3.bf16.msra.mxu0 %v1190_v35 }
  0x3e   :  { %857 = vmatprep.subr.bf16.mxu0 %v1196_v37 }
  0x3f   :  { %887 = vmatpush3.bf16.msra.mxu1 %v1194_v36 }
  0x40   :  { %889 = vmatprep.subr.bf16.mxu1 %v1205_v42 }
  0x41   :  { %859 = vmatpush3.bf16.msra.mxu0 %v1214_v46 }
  0x43   :  { %891 = vmatpush3.bf16.msra.mxu1 %v1218_v47 }
  0x44   :  { %365 = vmatmul.mubr.f32.vlgmr.msra.gmra.mrb[8].mxu0 %v284_v38 }
  0x45   :  { %369 = vmatprep.mubr.f32.mxu0 %v289_v43 }
  0x46   :  { %450 = vmatmul.mubr.f32.vlgmr.msra.gmra.mrb[8].mxu1 %v286_v39 }
  0x47   :  { %454 = vmatprep.mubr.f32.mxu1 %v291_v48 }
  0x48   :  { %370 = vmatmul.mubr.f32.gmra.mrb[10].mxu0 %v288_v51 }
  0x49   :  { %374 = vmatprep.mubr.f32.mxu0 %v293_v56 }
  0x4a   :  { %455 = vmatmul.mubr.f32.gmra.mrb[10].mxu1 %v290_v52 }
  0x4b   :  { %459 = vmatprep.mubr.f32.mxu1 %v295_v57 }
  0x4c   :  { %375 = vmatmul.mubr.f32.gmra.mrb[12].mxu0 %v292_v58 }
  0x4d   :  { %379 = vmatprep.mubr.f32.mxu0 %v297_v60 }
  0x4e   :  { %460 = vmatmul.mubr.f32.gmra.mrb[12].mxu1 %v294_v59 }
  0x4f   :  { %464 = vmatprep.mubr.f32.mxu1 %v299_v61 }
  0x50   :  { %380 = vmatmul.mubr.f32.gmra.mrb[14].mxu0 %v296_v62 }
  0x52   :  { %465 = vmatmul.mubr.f32.gmra.mrb[14].mxu1 %v298_v63 }
  0xf7   :  { %v620_v0 = vpop.f32.mrb[0].mxu0 }
  0xf8   :  { %v621_v2 = vpop.f32.mrb[1].mxu0 }
  0xf9   :  { %v664_v4 = vpop.f32.mrb[0].mxu1  ;;  %v622_v5 = vadd.f32 %v621_v2, %v620_v0 }
  0xfa   :  { %v665_v6 = vpop.f32.mrb[1].mxu1 }
  0xfb   :  { %v666_v9 = vadd.f32 %v665_v6, %v664_v4  ;;  %v177_v10 = vadd.f32 %v622_v5, %v1348_v1  ;;  %v623_v11 = vpop.f32.mrb[2].mxu0 }
  0xfc   :  { %v624_v13 = vpop.f32.mrb[3].mxu0 }
  0xfd   :  { %v667_v14 = vpop.f32.mrb[2].mxu1  ;;  %v262_v15 = vadd.f32 %v666_v9, %v177_v10  ;;  %v625_v18 = vadd.f32 %v624_v13, %v623_v11 }
  0xfe   :  { %v668_v19 = vpop.f32.mrb[3].mxu1 }
  0xff   :  { %v669_v20 = vadd.f32 %v668_v19, %v667_v14  ;;  %v1351_v22 = vmax.f32 %v262_v15, 0.0  ;;  %v182_v23 = vadd.f32 %v625_v18, %v1348_v1  ;;  %v626_v24 = vpop.f32.mrb[4].mxu0 }
 0x100   :  { %v627_v27 = vpop.f32.mrb[5].mxu0 }
 0x101   :  { %v670_v28 = vpop.f32.mrb[4].mxu1  ;;  %v267_v29 = vadd.f32 %v669_v20, %v182_v23  ;;  %v628_v30 = vadd.f32 %v627_v27, %v626_v24  ;;  %v504_v35 = vmul.f32 %v1351_v22, %v1351_v22  ;;  %v475_v41 = vsel %vm474_vm0, %v1351_v22, 0.0 }
 0x102   :  { %v671_v31 = vpop.f32.mrb[5].mxu1 }
 0x103   :  { %v672_v32 = vadd.f32 %v671_v31, %v670_v28  ;;  %v1356_v36 = vmax.f32 %v267_v29, 0.0  ;;  %v187_v37 = vadd.f32 %v628_v30, %v1348_v1  ;;  %v629_v40 = vpop.f32.mrb[6].mxu0  ;;  %v508_v3 = vsel %vm474_vm0, %v504_v35, 0.0 }
 0x104   :  { %v630_v42 = vpop.f32.mrb[7].mxu0 }
 0x105   :  { %v673_v44 = vpop.f32.mrb[6].mxu1  ;;  %v476_v45 = vsel %vm474_vm0, %v1356_v36, 0.0  ;;  %v505_v46 = vmul.f32 %v1356_v36, %v1356_v36  ;;  %v272_v47 = vadd.f32 %v672_v32, %v187_v37  ;;  %v631_v49 = vadd.f32 %v630_v42, %v629_v40 }
 0x106   :  { %v674_v50 = vpop.f32.mrb[7].mxu1  ;;  %v477_v53 = vadd.f32 %v476_v45, %v475_v41 }
 0x107   :  { %v675_v54 = vadd.f32 %v674_v50, %v673_v44  ;;  %v509_v8 = vsel %vm474_vm0, %v505_v46, 0.0  ;;  %v1367_v55 = vmax.f32 %v272_v47, 0.0  ;;  %v192_v7 = vadd.f32 %v631_v49, %v1348_v1 }
 0x108   :  { %v510_v12 = vadd.f32 %v509_v8, %v508_v3 }
 0x109   :  { %v478_v16 = vsel %vm474_vm0, %v1367_v55, 0.0  ;;  %v506_v21 = vmul.f32 %v1367_v55, %v1367_v55  ;;  %v277_v17 = vadd.f32 %v675_v54, %v192_v7 }
 0x10a   :  { %v479_v25 = vadd.f32 %v478_v16, %v477_v53 }
 0x10b   :  { %v511_v26 = vsel %vm474_vm0, %v506_v21, 0.0  ;;  %v1375_v33 = vmax.f32 %v277_v17, 0.0 }
 0x10c   :  { %v512_v34 = vadd.f32 %v511_v26, %v510_v12 }
 0x10d   :  { %v480_v38 = vsel %vm474_vm0, %v1375_v33, 0.0  ;;  %v507_v39 = vmul.f32 %v1375_v33, %v1375_v33 }
 0x10e   :  { %v481_v43 = vadd.f32 %v480_v38, %v479_v25 }
 0x10f   :  { %v513_v48 = vsel %vm474_vm0, %v507_v39, 0.0 }
 0x110   :  { %v514_v51 = vadd.f32 %v513_v48, %v512_v34  ;;  %v482_v42 = vrot.slane %v481_v43, 4 }
 0x112   :  { %v515_v53 = vrot.slane %v514_v51, 4  ;;  %v483_v12 = vadd.f32 %v482_v42, %v481_v43 }
 0x114   :  { %v516_v25 = vadd.f32 %v515_v53, %v514_v51 }
 0x117   :  { %v708_v52 = vpop.f32.mrb[8].mxu0 }
 0x118   :  { %v709_v56 = vpop.f32.mrb[9].mxu0 }
 0x119   :  { %v752_v57 = vpop.f32.mrb[8].mxu1  ;;  %v710_v58 = vadd.f32 %v709_v56, %v708_v52  ;;  %v517_v52 = vrot.slane %v516_v25, 2 }
 0x11a   :  { %v753_v59 = vpop.f32.mrb[9].mxu1 }
 0x11b   :  { %v754_v60 = vadd.f32 %v753_v59, %v752_v57  ;;  %v367_v61 = vadd.f32 %v710_v58, %v1348_v1  ;;  %v711_v62 = vpop.f32.mrb[10].mxu0  ;;  %v518_v43 = vadd.f32 %v517_v52, %v516_v25 }
 0x11c   :  { %v712_v63 = vpop.f32.mrb[11].mxu0 }
 0x11d   :  { %v755_v0 = vpop.f32.mrb[10].mxu1  ;;  %v452_v2 = vadd.f32 %v754_v60, %v367_v61  ;;  %v713_v4 = vadd.f32 %v712_v63, %v711_v62 }
 0x11e   :  { %v756_v5 = vpop.f32.mrb[11].mxu1 }
 0x11f   :  { %v757_v6 = vadd.f32 %v756_v5, %v755_v0  ;;  %v1383_v9 = vmax.f32 %v452_v2, 0.0  ;;  %v372_v10 = vadd.f32 %v713_v4, %v1348_v1  ;;  %v714_v11 = vpop.f32.mrb[12].mxu0  ;;  %v519_v2 = vrot.slane %v518_v43, 1 }
 0x120   :  { %v715_v13 = vpop.f32.mrb[13].mxu0 }
 0x121   :  { %v758_v14 = vpop.f32.mrb[12].mxu1  ;;  %v457_v15 = vadd.f32 %v757_v6, %v372_v10  ;;  %v716_v18 = vadd.f32 %v715_v13, %v714_v11  ;;  %v521_v23 = vmul.f32 %v1383_v9, %v1383_v9  ;;  %v488_v29 = vsel %vm474_vm0, %v1383_v9, 0.0 }
 0x122   :  { %v759_v19 = vpop.f32.mrb[13].mxu1  ;;  %v520_v13 = vadd.f32 %v519_v2, %v518_v43 }
 0x123   :  { %v760_v20 = vadd.f32 %v759_v19, %v758_v14  ;;  %v1388_v24 = vmax.f32 %v457_v15, 0.0  ;;  %v377_v27 = vadd.f32 %v716_v18, %v1348_v1  ;;  %v717_v28 = vpop.f32.mrb[14].mxu0  ;;  %v525_v46 = vsel %vm474_vm0, %v521_v23, 0.0 }
 0x124   :  { %v718_v30 = vpop.f32.mrb[15].mxu0 }
 0x125   :  { %v761_v31 = vpop.f32.mrb[14].mxu1  ;;  %v489_v32 = vsel %vm474_vm0, %v1388_v24, 0.0  ;;  %v522_v35 = vmul.f32 %v1388_v24, %v1388_v24  ;;  %v462_v37 = vadd.f32 %v760_v20, %v377_v27  ;;  %v719_v40 = vadd.f32 %v718_v30, %v717_v28 }
 0x126   :  { %v762_v41 = vpop.f32.mrb[15].mxu1  ;;  %v490_v44 = vadd.f32 %v489_v32, %v488_v29  ;;  %v549_v29 = vlaneseq }
 0x127   :  { %v763_v45 = vadd.f32 %v762_v41, %v761_v31  ;;  %v526_v47 = vsel %vm474_vm0, %v522_v35, 0.0  ;;  %v1399_v49 = vmax.f32 %v462_v37, 0.0  ;;  %v382_v50 = vadd.f32 %v719_v40, %v1348_v1  ;;  %v544_v31 = vld [vmem:[%s1442_s4] sm:$0x1] }
 0x128   :  { %v527_v54 = vadd.f32 %v526_v47, %v525_v46  ;;  %v484_v1 = vrot.slane %v483_v12, 2  ;;  %v550_v30 = vshrl.u32 %v549_v29, 7  ;;  %v546_v40 = vld [vmem:[%s1443_s5] sm:$0x1] }
 0x129   :  { %v491_v3 = vsel %vm474_vm0, %v1399_v49, 0.0  ;;  %v523_v8 = vmul.f32 %v1399_v49, %v1399_v49  ;;  %v467_v7 = vadd.f32 %v763_v45, %v382_v50 }
 0x12a   :  { %v492_v16 = vadd.f32 %v491_v3, %v490_v44  ;;  %v485_v58 = vadd.f32 %v484_v1, %v483_v12  ;;  %v551_v32 = vsub.s32 0, %v550_v30 }
 0x12b   :  { %v528_v21 = vsel %vm474_vm0, %v523_v8, 0.0  ;;  %v473_v17 = vmax.f32 %v467_v7, 0.0 }
 0x12c   :  { %v529_v26 = vadd.f32 %v528_v21, %v527_v54  ;;  %v486_v63 = vrot.slane %v485_v58, 1 }
 0x12d   :  { %v493_v34 = vsel %vm474_vm0, %v473_v17, 0.0  ;;  %v524_v38 = vmul.f32 %v473_v17, %v473_v17 }
 0x12e   :  { %v494_v39 = vadd.f32 %v493_v34, %v492_v16  ;;  %v487_v6 = vadd.f32 %v486_v63, %v485_v58 }
 0x12f   :  { %v530_v48 = vsel %vm474_vm0, %v524_v38, 0.0 }
 0x130   :  { %v495_v56 = vrot.slane %v494_v39, 4  ;;  %v531_v57 = vadd.f32 %v530_v48, %v529_v26 }
 0x132   :  { %v496_v59 = vadd.f32 %v495_v56, %v494_v39  ;;  %v532_v60 = vrot.slane %v531_v57, 4 }
 0x134   :  { %v497_v61 = vrot.slane %v496_v59, 2  ;;  %v533_v62 = vadd.f32 %v532_v60, %v531_v57 }
 0x136   :  { %v498_v0 = vadd.f32 %v497_v61, %v496_v59  ;;  %v534_v51 = vrot.slane %v533_v62, 2 }
 0x138   :  { %v499_v4 = vrot.slane %v498_v0, 1  ;;  %v535_v5 = vadd.f32 %v534_v51, %v533_v62 }
 0x13a   :  { %v500_v10 = vadd.f32 %v499_v4, %v498_v0  ;;  %v536_v11 = vrot.slane %v535_v5, 1 }
 0x13c   :  { %v501_v14 = vadd.f32 %v500_v10, %v487_v6  ;;  %v537_v15 = vadd.f32 %v536_v11, %v535_v5 }
 0x13e   :  { %v503_v18 = vmul.f32 0.015625, %v501_v14  ;;  %v538_v19 = vadd.f32 %v537_v15, %v520_v13 }
 0x140   :  { %v539_v20 = vmul.f32 0.015625, %v538_v19  ;;  %v540_v23 = vmul.f32 %v503_v18, %v503_v18 }
 0x142   :  { %v541_v27 = vsub.f32 %v539_v20, %v540_v23 }
 0x144   :  { %v542_v28 = vadd.f32 1e-05, %v541_v27 }
 0x146   :  { %892 = vrsqrt.f32 %v542_v28 }
 0x150   :  { %v893_v35 = vpop.eup %892 }
 0x151   :  { %v545_v37 = vmul.f32 %v893_v35, %v544_v31 }
 0x153   :  { %v547_v41 = vmul.f32 %v545_v37, %v503_v18  ;;  %v552_v42 = vrot.slane %v545_v37, %v551_v32 }
 0x155   :  { %v548_v44 = vsub.f32 %v546_v40, %v547_v41  ;;  %v553_v45 = vmul.f32 %v552_v42, %v1351_v22  ;;  %v554_v46 = vmul.f32 %v552_v42, %v1356_v36  ;;  %v555_v47 = vmul.f32 %v552_v42, %v1367_v55 }
 0x156   :  { %v556_v50 = vmul.f32 %v552_v42, %v1375_v33  ;;  %v567_v53 = vmul.f32 %v552_v42, %v1383_v9  ;;  %v568_v54 = vmul.f32 %v552_v42, %v1388_v24  ;;  %v569_v3 = vmul.f32 %v552_v42, %v1399_v49 }
 0x157   :  { %v561_v8 = vrot.slane %v548_v44, %v551_v32  ;;  %v570_v7 = vmul.f32 %v552_v42, %v473_v17 }
 0x159   :  { %v563_v12 = vadd.f32 %v561_v8, %v553_v45  ;;  %v564_v16 = vadd.f32 %v561_v8, %v554_v46  ;;  %v565_v21 = vadd.f32 %v561_v8, %v555_v47  ;;  %v566_v25 = vadd.f32 %v561_v8, %v556_v50 }
 0x15a   :  { %v571_v26 = vadd.f32 %v567_v53, %v561_v8  ;;  %v572_v22 = vadd.f32 %v568_v54, %v561_v8  ;;  %v573_v34 = vadd.f32 %v569_v3, %v561_v8  ;;  %v574_v36 = vadd.f32 %v570_v7, %v561_v8 }
 0x15c   :  { %v575_v38 = vmax.f32 %v563_v12, %v571_v26  ;;  %v576_v55 = vmax.f32 %v564_v16, %v572_v22  ;;  %v577_v1 = vmax.f32 %v565_v21, %v573_v34  ;;  %v578_v33 = vmax.f32 %v566_v25, %v574_v36 }
 0x15e   :  { %579 = vst.msk [vmem:[%s1444_s6] sm:$0xff] %vm474_vm0, %v575_v38  ;;  %580 = vst.msk [vmem:[%s1444_s6 + $0x8] sm:$0xff] %vm474_vm0, %v576_v55 }
 0x15f   :  { %581 = vst.msk [vmem:[%s1444_s6 + $0x10] sm:$0xff] %vm474_vm0, %v577_v1  ;;  %582 = vst.msk [vmem:[%s1444_s6 + $0x18] sm:$0xff] %vm474_vm0, %v578_v33 }

// kernel: bearing_clip_forward.5
= control target key start
LH: loop header
LB: loop body
LE: loop exit
PB: predicated region body
PF: predicated region fallthrough
CT: control target
= control target key end

     0   :  { %s4937_s0 = inlined_call_operand.vmem [shape: f32[16,512], index: 0, kind: input, shape index: {}]   ;;  %s4938_s1 = inlined_call_operand.vmem [shape: f32[512,64], index: 1, kind: input, shape index: {}]   ;;  %s4939_s2 = inlined_call_operand.vmem [shape: f32[1,64], index: 2, kind: input, shape index: {}]   ;;  %s4940_s3 = inlined_call_operand.vmem [shape: f32[1,64], index: 3, kind: input, shape index: {}]   ;;  %s4941_s4 = inlined_call_operand.vmem [shape: f32[1,64], index: 4, kind: input, shape index: {}]   ;;  %s4942_s5 = inlined_call_operand.vmem [shape: f32[2,16], index: 5, kind: input, shape index: {}]   ;;  %s4943_s6 = inlined_call_operand.vmem [shape: f32[64,32], index: 6, kind: input, shape index: {}]   ;;  %s4944_s7 = inlined_call_operand.vmem [shape: f32[1,32], index: 7, kind: input, shape index: {}]   ;;  %s4945_s8 = inlined_call_operand.vmem [shape: f32[32,64], index: 8, kind: input, shape index: {}]   ;;  %s4946_s9 = inlined_call_operand.vmem [shape: f32[1,64], index: 9, kind: input, shape index: {}]   ;;  %s4947_s10 = inlined_call_operand.vmem [shape: f32[64,32], index: 10, kind: input, shape index: {}]   ;;  %s4948_s11 = inlined_call_operand.vmem [shape: f32[1,32], index: 11, kind: input, shape index: {}]   ;;  %s4949_s12 = inlined_call_operand.vmem [shape: f32[8,2,100], index: 12, kind: input, shape index: {}]   ;;  %s4950_s13 = inlined_call_operand.vmem [shape: f32[100,32], index: 13, kind: input, shape index: {}]   ;;  %s4951_s14 = inlined_call_operand.vmem [shape: f32[32,128], index: 14, kind: input, shape index: {}]   ;;  %s4952_s15 = inlined_call_operand.vmem [shape: f32[1,128], index: 15, kind: input, shape index: {}]   ;;  %s4953_s16 = inlined_call_operand.vmem [shape: f32[32,128], index: 16, kind: input, shape index: {}]   ;;  %s4954_s17 = inlined_call_operand.hbm [shape: f32[2,32], index: 17, kind: output, shape index: {0}]   ;;  %s4955_s18 = inlined_call_operand.hbm [shape: f32[2,32], index: 18, kind: output, shape index: {1}]  }
   0x1   :  { %4958 = sst [smem:[#allocation8_spill]] %s4937_s0 }
   0x2   :  { %4959 = sst [smem:[#allocation9_spill]] %s4938_s1 }
   0x3   :  { %4960 = sst [smem:[#allocation10_spill]] %s4939_s2 }
   0x4   :  { %24 = vsyncpa [#allocation3], 0  ;;  %s4961_s29 = sld [smem:[#allocation9_spill]]  ;;  %s4962_s30 = sld [smem:[#allocation8_spill]] }
   0xa   :  { %v84_v0 = vld [vmem:[%s4961_s29 + $0x80] sm:$0xff]  ;;  %v85_v1 = vld [vmem:[%s4961_s29 + $0x88] sm:$0xff]  ;;  %v86_v11 = vld [vmem:[%s4961_s29 + $0x90] sm:$0xff] }
   0xb   :  { %v68_v2 = vld [vmem:[%s4961_s29] sm:$0xff]  ;;  %v3576_v3 = vpack.c.bf16 %v85_v1, %v84_v0  ;;  %v69_v4 = vld [vmem:[%s4961_s29 + $0x8] sm:$0xff]  ;;  %v87_v13 = vld [vmem:[%s4961_s29 + $0x98] sm:$0xff] }
   0xc   :  { %v116_v5 = vld [vmem:[%s4961_s29 + $0x180] sm:$0xff]  ;;  %v117_v6 = vld [vmem:[%s4961_s29 + $0x188] sm:$0xff]  ;;  %v3578_v7 = vpack.c.bf16 %v69_v4, %v68_v2  ;;  %v70_v14 = vld [vmem:[%s4961_s29 + $0x10] sm:$0xff]  ;;  %v3580_v16 = vpack.c.bf16 %v87_v13, %v86_v11 }
   0xd   :  { %v3608_v8 = vpack.c.bf16 %v117_v6, %v116_v5  ;;  %v100_v9 = vld [vmem:[%s4961_s29 + $0x100] sm:$0xff]  ;;  %v101_v10 = vld [vmem:[%s4961_s29 + $0x108] sm:$0xff]  ;;  %3577 = vmatprep.subr.bf16.mxu0 %v3576_v3  ;;  %v71_v15 = vld [vmem:[%s4961_s29 + $0x18] sm:$0xff] }
   0xe   :  { %v3610_v12 = vpack.c.bf16 %v101_v10, %v100_v9  ;;  %3579 = vmatpush3.bf16.msra.mxu0 %v3578_v7  ;;  %v3582_v17 = vpack.c.bf16 %v71_v15, %v70_v14  ;;  %v118_v18 = vld [vmem:[%s4961_s29 + $0x190] sm:$0xff]  ;;  %v119_v19 = vld [vmem:[%s4961_s29 + $0x198] sm:$0xff]  ;;  %v88_v23 = vld [vmem:[%s4961_s29 + $0xa0] sm:$0xff] }
   0xf   :  { %3609 = vmatprep.subr.bf16.mxu1 %v3608_v8  ;;  %v102_v20 = vld [vmem:[%s4961_s29 + $0x110] sm:$0xff]  ;;  %v3612_v21 = vpack.c.bf16 %v119_v19, %v118_v18  ;;  %v103_v22 = vld [vmem:[%s4961_s29 + $0x118] sm:$0xff]  ;;  %v89_v24 = vld [vmem:[%s4961_s29 + $0xa8] sm:$0xff]  ;;  %3581 = vmatprep.subr.bf16.mxu0 %v3580_v16 }
  0x10   :  { %3611 = vmatpush3.bf16.msra.mxu1 %v3610_v12  ;;  %v3614_v25 = vpack.c.bf16 %v103_v22, %v102_v20  ;;  %v3584_v26 = vpack.c.bf16 %v89_v24, %v88_v23  ;;  %v72_v27 = vld [vmem:[%s4961_s29 + $0x20] sm:$0xff]  ;;  %v73_v28 = vld [vmem:[%s4961_s29 + $0x28] sm:$0xff]  ;;  %v90_v35 = vld [vmem:[%s4961_s29 + $0xb0] sm:$0xff] }
  0x11   :  { %v120_v29 = vld [vmem:[%s4961_s29 + $0x1a0] sm:$0xff]  ;;  %3613 = vmatprep.subr.bf16.mxu1 %v3612_v21  ;;  %v121_v30 = vld [vmem:[%s4961_s29 + $0x1a8] sm:$0xff]  ;;  %v3586_v33 = vpack.c.bf16 %v73_v28, %v72_v27  ;;  %v91_v36 = vld [vmem:[%s4961_s29 + $0xb8] sm:$0xff] }
  0x12   :  { %v104_v31 = vld [vmem:[%s4961_s29 + $0x120] sm:$0xff]  ;;  %v105_v32 = vld [vmem:[%s4961_s29 + $0x128] sm:$0xff]  ;;  %3583 = vmatpush3.bf16.msra.mxu0 %v3582_v17  ;;  %v3616_v34 = vpack.c.bf16 %v121_v30, %v120_v29  ;;  %v74_v37 = vld [vmem:[%s4961_s29 + $0x30] sm:$0xff]  ;;  %v3588_v39 = vpack.c.bf16 %v91_v36, %v90_v35 }
  0x13   :  { %3585 = vmatprep.subr.bf16.mxu0 %v3584_v26  ;;  %v3618_v38 = vpack.c.bf16 %v105_v32, %v104_v31  ;;  %v75_v40 = vld [vmem:[%s4961_s29 + $0x38] sm:$0xff]  ;;  %v122_v41 = vld [vmem:[%s4961_s29 + $0x1b0] sm:$0xff]  ;;  %v92_v46 = vld [vmem:[%s4961_s29 + $0xc0] sm:$0xff] }
  0x14   :  { %3615 = vmatpush3.bf16.msra.mxu1 %v3614_v25  ;;  %v123_v42 = vld [vmem:[%s4961_s29 + $0x1b8] sm:$0xff]  ;;  %v106_v44 = vld [vmem:[%s4961_s29 + $0x130] sm:$0xff]  ;;  %v93_v47 = vld [vmem:[%s4961_s29 + $0xc8] sm:$0xff]  ;;  %v3590_v48 = vpack.c.bf16 %v75_v40, %v74_v37 }
  0x15   :  { %3617 = vmatprep.subr.bf16.mxu1 %v3616_v34  ;;  %v3620_v43 = vpack.c.bf16 %v123_v42, %v122_v41  ;;  %v107_v45 = vld [vmem:[%s4961_s29 + $0x138] sm:$0xff]  ;;  %v124_v49 = vld [vmem:[%s4961_s29 + $0x1c0] sm:$0xff]  ;;  %v125_v50 = vld [vmem:[%s4961_s29 + $0x1c8] sm:$0xff]  ;;  %v3592_v52 = vpack.c.bf16 %v93_v47, %v92_v46 }
  0x16   :  { %3587 = vmatpush3.bf16.msra.mxu0 %v3586_v33  ;;  %v3622_v51 = vpack.c.bf16 %v107_v45, %v106_v44  ;;  %v76_v53 = vld [vmem:[%s4961_s29 + $0x40] sm:$0xff]  ;;  %v77_v54 = vld [vmem:[%s4961_s29 + $0x48] sm:$0xff]  ;;  %v3624_v56 = vpack.c.bf16 %v125_v50, %v124_v49  ;;  %v94_v58 = vld [vmem:[%s4961_s29 + $0xd0] sm:$0xff] }
  0x17   :  { %3589 = vmatprep.subr.bf16.mxu0 %v3588_v39  ;;  %v108_v55 = vld [vmem:[%s4961_s29 + $0x140] sm:$0xff]  ;;  %v109_v57 = vld [vmem:[%s4961_s29 + $0x148] sm:$0xff]  ;;  %v95_v59 = vld [vmem:[%s4961_s29 + $0xd8] sm:$0xff]  ;;  %v3594_v62 = vpack.c.bf16 %v77_v54, %v76_v53 }
  0x18   :  { %3619 = vmatpush3.bf16.msra.mxu1 %v3618_v38  ;;  %v126_v60 = vld [vmem:[%s4961_s29 + $0x1d0] sm:$0xff]  ;;  %v127_v61 = vld [vmem:[%s4961_s29 + $0x1d8] sm:$0xff]  ;;  %v3626_v63 = vpack.c.bf16 %v109_v57, %v108_v55  ;;  %v3596_v0 = vpack.c.bf16 %v95_v59, %v94_v58  ;;  %v96_v6 = vld [vmem:[%s4961_s29 + $0xe0] sm:$0xff] }
  0x19   :  { %3621 = vmatprep.subr.bf16.mxu1 %v3620_v43  ;;  %v78_v1 = vld [vmem:[%s4961_s29 + $0x50] sm:$0xff]  ;;  %v79_v2 = vld [vmem:[%s4961_s29 + $0x58] sm:$0xff]  ;;  %v3628_v4 = vpack.c.bf16 %v127_v61, %v126_v60  ;;  %v97_v7 = vld [vmem:[%s4961_s29 + $0xe8] sm:$0xff] }
  0x1a   :  { %3591 = vmatpush3.bf16.msra.mxu0 %v3590_v48  ;;  %v110_v3 = vld [vmem:[%s4961_s29 + $0x150] sm:$0xff]  ;;  %v111_v5 = vld [vmem:[%s4961_s29 + $0x158] sm:$0xff]  ;;  %v128_v8 = vld [vmem:[%s4961_s29 + $0x1e0] sm:$0xff]  ;;  %v3598_v10 = vpack.c.bf16 %v79_v2, %v78_v1  ;;  %v3600_v14 = vpack.c.bf16 %v97_v7, %v96_v6 }
  0x1b   :  { %3593 = vmatprep.subr.bf16.mxu0 %v3592_v52  ;;  %v129_v9 = vld [vmem:[%s4961_s29 + $0x1e8] sm:$0xff]  ;;  %v80_v11 = vld [vmem:[%s4961_s29 + $0x60] sm:$0xff]  ;;  %v3630_v13 = vpack.c.bf16 %v111_v5, %v110_v3  ;;  %v98_v19 = vld [vmem:[%s4961_s29 + $0xf0] sm:$0xff] }
  0x1c   :  { %3623 = vmatpush3.bf16.msra.mxu1 %v3622_v51  ;;  %v81_v12 = vld [vmem:[%s4961_s29 + $0x68] sm:$0xff]  ;;  %v112_v15 = vld [vmem:[%s4961_s29 + $0x160] sm:$0xff]  ;;  %v3632_v18 = vpack.c.bf16 %v129_v9, %v128_v8  ;;  %v99_v20 = vld [vmem:[%s4961_s29 + $0xf8] sm:$0xff] }
  0x1d   :  { %3625 = vmatprep.subr.bf16.mxu1 %v3624_v56  ;;  %v113_v16 = vld [vmem:[%s4961_s29 + $0x168] sm:$0xff]  ;;  %v63_v21 = vld [vmem:[%s4962_s30 + $0x18] sm:$0xff]  ;;  %v130_v22 = vld [vmem:[%s4961_s29 + $0x1f0] sm:$0xff]  ;;  %v3602_v24 = vpack.c.bf16 %v81_v12, %v80_v11 }
  0x1e   :  { %3595 = vmatpush3.bf16.msra.mxu0 %v3594_v62  ;;  %v61_v17 = vld [vmem:[%s4962_s30 + $0x8] sm:$0xff]  ;;  %v131_v23 = vld [vmem:[%s4961_s29 + $0x1f8] sm:$0xff]  ;;  %278 = vmatprep.mubr.f32.mxu1 %v63_v21 }
  0x1f   :  { %3597 = vmatprep.subr.bf16.mxu0 %v3596_v0  ;;  %203 = vmatprep.mubr.f32.mxu0 %v61_v17 }
  0x20   :  { %3627 = vmatpush3.bf16.msra.mxu1 %v3626_v63 }
  0x21   :  { %3629 = vmatprep.subr.bf16.mxu1 %v3628_v4 }
  0x22   :  { %3599 = vmatpush3.bf16.msra.mxu0 %v3598_v10 }
  0x23   :  { %25 = vsyncpa [#allocation5], 0  ;;  %3601 = vmatprep.subr.bf16.mxu0 %v3600_v14  ;;  %v3634_v25 = vpack.c.bf16 %v113_v16, %v112_v15  ;;  %v3604_v26 = vpack.c.bf16 %v99_v20, %v98_v19  ;;  %v82_v27 = vld [vmem:[%s4961_s29 + $0x70] sm:$0xff]  ;;  %v83_v28 = vld [vmem:[%s4961_s29 + $0x78] sm:$0xff]  ;;  %v3636_v29 = vpack.c.bf16 %v131_v23, %v130_v22  ;;  %v4066_v40 = vmov 0.0|0.0   ;;  %s4963_s22 = sld [smem:[#allocation10_spill]] }
  0x24   :  { %3631 = vmatpush3.bf16.msra.mxu1 %v3630_v13  ;;  %v114_v30 = vld [vmem:[%s4961_s29 + $0x170] sm:$0xff]  ;;  %v115_v31 = vld [vmem:[%s4961_s29 + $0x178] sm:$0xff]  ;;  %v3606_v32 = vpack.c.bf16 %v83_v28, %v82_v27  ;;  %v60_v34 = vld [vmem:[%s4962_s30] sm:$0xff]  ;;  %vm4067_vm0 = vmmov 0   ;;  %v4068_v41 = vmov 0.0   ;;  %vm291_vm1 = vcmask 523264  }
  0x25   :  { %3633 = vmatprep.subr.bf16.mxu1 %v3632_v18  ;;  %v3638_v33 = vpack.c.bf16 %v115_v31, %v114_v30  ;;  %v62_v35 = vld [vmem:[%s4962_s30 + $0x10] sm:$0xff]  ;;  %v65_v36 = vld [vmem:[%s4962_s30 + $0x28] sm:$0xff]  ;;  %v67_v37 = vld [vmem:[%s4962_s30 + $0x38] sm:$0xff]  ;;  %vm342_vm2 = vcmask 130048   ;;  %vm723_vm3 = vcmask 1043456   ;;  %vm719_vm4 = vcmask 818176  }
  0x26   :  { %3603 = vmatpush3.bf16.msra.mxu0 %v3602_v24  ;;  %v64_v38 = vld [vmem:[%s4962_s30 + $0x20] sm:$0xff]  ;;  %v66_v39 = vld [vmem:[%s4962_s30 + $0x30] sm:$0xff]  ;;  %v417_v43 = vld [vmem:[%s4943_s6 + $0x8] sm:$0xff]  ;;  %vm515_vm5 = vcmask 261120   ;;  %s4069_s19 = smov 64   ;;  %vm681_vm6 = vcmask 254976  }
  0x27   :  { %3605 = vmatprep.subr.bf16.mxu0 %v3604_v26  ;;  %v416_v42 = vld [vmem:[%s4943_s6] sm:$0xff]  ;;  %v418_v44 = vld [vmem:[%s4943_s6 + $0x10] sm:$0xff]  ;;  %v419_v46 = vld [vmem:[%s4943_s6 + $0x18] sm:$0xff] }
  0x28   :  { %3635 = vmatpush3.bf16.msra.mxu1 %v3634_v25  ;;  %v3644_v45 = vpack.c.bf16 %v417_v43, %v416_v42  ;;  %v3647_v47 = vpack.c.bf16 %v419_v46, %v418_v44  ;;  %v420_v48 = vld [vmem:[%s4943_s6 + $0x20] sm:$0xff]  ;;  %v421_v49 = vld [vmem:[%s4943_s6 + $0x28] sm:$0xff]  ;;  %v422_v51 = vld [vmem:[%s4943_s6 + $0x30] sm:$0xff] }
  0x29   :  { %3637 = vmatprep.subr.bf16.mxu1 %v3636_v29  ;;  %v3650_v50 = vpack.c.bf16 %v421_v49, %v420_v48  ;;  %v423_v52 = vld [vmem:[%s4943_s6 + $0x38] sm:$0xff]  ;;  %v2761_v55 = vld [vmem:[%s4963_s22] ss:$0 sm:$0xff] }
  0x2a   :  { %3607 = vmatpush3.bf16.msra.mxu0 %v3606_v32  ;;  %v3653_v53 = vpack.c.bf16 %v423_v52, %v422_v51  ;;  %v2763_v42 = vld [vmem:[%s4941_s4] ss:$0 sm:$0xff] }
  0x2b   :  { %3640 = vmatprep.subr.bf16.mxu0 %v4066_v40  ;;  %v341_v48 = vld [vmem:[%s4942_s5] sm:$0x3] }
  0x2c   :  { %3639 = vmatpush3.bf16.msra.mxu1 %v3638_v33  ;;  %v504_v49 = vld [vmem:[%s4945_s8] sm:$0xff] }
  0x2d   :  { %204 = vmatmul.mubr.f32.vlgmr.msra.gmra.mrb[0].mxu0 %v60_v34  ;;  %3643 = vmatprep.subr.bf16.mxu1 %v4066_v40  ;;  %v696_v52 = vld [vmem:[%s4950_s13] sm:$0xff] }
  0x2e   :  { %208 = vmatprep.mubr.f32.mxu0 %v65_v36 }
  0x2f   :  { %279 = vmatmul.mubr.f32.vlgmr.msra.gmra.mrb[0].mxu1 %v62_v35 }
  0x30   :  { %283 = vmatprep.mubr.f32.mxu1 %v67_v37  ;;  %3645 = vmatpush3.bf16.msra.mxu1 %v3644_v45  ;;  %v2762_v37 = vld [vmem:[%s4940_s3] ss:$0 sm:$0xff] }
  0x31   :  { %209 = vmatmul.mubr.f32.gmra.mrb[2].mxu0 %v64_v38  ;;  %3646 = vmatprep.subr.bf16.mxu1 %v4066_v40 }
  0x32   :  { %3116 = vmatprep.mubr.msk.f32.mxu0 %vm4067_vm0, %v4068_v41 }
  0x33   :  { %284 = vmatmul.mubr.f32.gmra.mrb[2].mxu1 %v66_v39 }
  0x34   :  { %3135 = vmatprep.mubr.msk.f32.mxu1 %vm4067_vm0, %v4068_v41  ;;  %3648 = vmatpush3.bf16.msra.mxu1 %v3647_v47 }
  0x35   :  { %3649 = vmatprep.subr.bf16.mxu1 %v4066_v40 }
  0x38   :  { %3651 = vmatpush3.bf16.msra.mxu1 %v3650_v50  ;;  %v505_v50 = vld [vmem:[%s4945_s8 + $0x8] sm:$0xff] }
  0x39   :  { %3652 = vmatprep.subr.bf16.mxu1 %v4066_v40  ;;  %v3656_v51 = vpack.c.bf16 %v505_v50, %v504_v49 }
  0x3c   :  { %3654 = vmatpush3.bf16.msra.mxu1 %v3653_v53  ;;  %v697_v53 = vld [vmem:[%s4950_s13 + $0x8] sm:$0xff] }
  0x3d   :  { %3673 = vmatprep.subr.bf16.mxu1 %v4066_v40 }
 0x100   :  { %v2850_v54 = vpop.f32.mrb[0].mxu0 }
 0x101   :  { %v2851_v56 = vpop.f32.mrb[1].mxu0 }
 0x102   :  { %v2888_v57 = vpop.f32.mrb[0].mxu1  ;;  %v2852_v58 = vadd.f32 %v2851_v56, %v2850_v54  ;;  %v4450_v54 = vpack.c.bf16 %v697_v53, %v696_v52  ;;  %v699_v56 = vld [vmem:[%s4950_s13 + $0x18] sm:$0xff]  ;;  %v4641_v52 = vld [vmem:[%s4952_s15] ss:$0 sm:$0xff] }
 0x103   :  { %v2889_v59 = vpop.f32.mrb[1].mxu1 }
 0x104   :  { %v2890_v60 = vadd.f32 %v2889_v59, %v2888_v57  ;;  %v206_v61 = vadd.f32 %v2852_v58, %v2761_v55  ;;  %v2853_v62 = vpop.f32.mrb[2].mxu0 }
 0x105   :  { %v2854_v63 = vpop.f32.mrb[3].mxu0 }
 0x106   :  { %v2891_v0 = vpop.f32.mrb[2].mxu1  ;;  %v281_v1 = vadd.f32 %v2890_v60, %v206_v61  ;;  %v2855_v2 = vadd.f32 %v2854_v63, %v2853_v62  ;;  %v700_v60 = vld [vmem:[%s4950_s13 + $0x20] sm:$0xff]  ;;  %v701_v61 = vld [vmem:[%s4950_s13 + $0x28] sm:$0xff]  ;;  %v506_v63 = vld [vmem:[%s4945_s8 + $0x10] sm:$0xff] }
 0x107   :  { %v2892_v3 = vpop.f32.mrb[3].mxu1  ;;  %v4472_v62 = vpack.c.bf16 %v701_v61, %v700_v60 }
 0x108   :  { %v2893_v4 = vadd.f32 %v2892_v3, %v2891_v0  ;;  %v289_v5 = vmax.f32 %v281_v1, 0.0  ;;  %v211_v6 = vadd.f32 %v2855_v2, %v2761_v55  ;;  %v698_v55 = vld [vmem:[%s4950_s13 + $0x10] sm:$0xff]  ;;  %v507_v0 = vld [vmem:[%s4945_s8 + $0x18] sm:$0xff]  ;;  %s4070_s8 = smov 32  }
 0x109   :  { %v4460_v59 = vpack.c.bf16 %v699_v56, %v698_v55  ;;  %v702_v1 = vld [vmem:[%s4950_s13 + $0x30] sm:$0xff]  ;;  %v3659_v2 = vpack.c.bf16 %v507_v0, %v506_v63  ;;  %v703_v3 = vld [vmem:[%s4950_s13 + $0x38] sm:$0xff] }
 0x10a   :  { %v286_v7 = vadd.f32 %v2893_v4, %v211_v6  ;;  %v303_v8 = vmul.f32 %v289_v5, %v289_v5  ;;  %v292_v10 = vsel %vm291_vm1, %v289_v5, 0.0  ;;  %v4489_v4 = vpack.c.bf16 %v703_v3, %v702_v1  ;;  %v705_v6 = vld [vmem:[%s4950_s13 + $0x48] sm:$0xff] }
 0x10c   :  { %v290_v9 = vmax.f32 %v286_v7, 0.0  ;;  %v305_v14 = vsel %vm291_vm1, %v303_v8, 0.0  ;;  %v706_v8 = vld [vmem:[%s4950_s13 + $0x50] sm:$0xff] }
 0x10e   :  { %v293_v11 = vsel %vm291_vm1, %v290_v9, 0.0  ;;  %v304_v12 = vmul.f32 %v290_v9, %v290_v9 }
 0x10f   :  { %v294_v13 = vadd.f32 %v293_v11, %v292_v10  ;;  %v4517_v11 = vld [vmem:[%s4950_s13 + $0x60] sm:$0xf] }
 0x110   :  { %v306_v15 = vsel %vm291_vm1, %v304_v12, 0.0  ;;  %v718_v12 = vld [vmem:[%s4949_s12] sm:$0x3] }
 0x111   :  { %v295_v16 = vrot.slane %v294_v13, 4  ;;  %v307_v17 = vadd.f32 %v306_v15, %v305_v14  ;;  %v591_v14 = vld [vmem:[%s4947_s10 + $0x8] sm:$0xff]  ;;  %v2765_v15 = vld [vmem:[%s4944_s7] ss:$0 sm:$0xff] }
 0x113   :  { %v296_v18 = vadd.f32 %v295_v16, %v294_v13  ;;  %v308_v19 = vrot.slane %v307_v17, 4  ;;  %v590_v13 = vld [vmem:[%s4947_s10] sm:$0xff] }
 0x115   :  { %v297_v20 = vrot.slane %v296_v18, 2  ;;  %v309_v21 = vadd.f32 %v308_v19, %v307_v17  ;;  %v3662_v17 = vpack.c.bf16 %v591_v14, %v590_v13 }
 0x117   :  { %v298_v22 = vadd.f32 %v297_v20, %v296_v18  ;;  %v310_v23 = vrot.slane %v309_v21, 2  ;;  %v592_v20 = vld [vmem:[%s4947_s10 + $0x10] sm:$0xff] }
 0x119   :  { %v299_v24 = vrot.slane %v298_v22, 1  ;;  %v311_v25 = vadd.f32 %v310_v23, %v309_v21  ;;  %v593_v21 = vld [vmem:[%s4947_s10 + $0x18] sm:$0xff]  ;;  %v594_v23 = vld [vmem:[%s4947_s10 + $0x20] sm:$0xff] }
 0x11b   :  { %v300_v26 = vadd.f32 %v299_v24, %v298_v22  ;;  %v312_v27 = vrot.slane %v311_v25, 1  ;;  %v3665_v22 = vpack.c.bf16 %v593_v21, %v592_v20  ;;  %v595_v24 = vld [vmem:[%s4947_s10 + $0x28] sm:$0xff] }
 0x11d   :  { %v302_v28 = vmul.f32 0.0625, %v300_v26  ;;  %v313_v29 = vadd.f32 %v312_v27, %v311_v25  ;;  %v3668_v25 = vpack.c.bf16 %v595_v24, %v594_v23  ;;  %v596_v26 = vld [vmem:[%s4947_s10 + $0x30] sm:$0xff]  ;;  %v597_v27 = vld [vmem:[%s4947_s10 + $0x38] sm:$0xff] }
 0x11f   :  { %v314_v30 = vmul.f32 0.0625, %v313_v29  ;;  %v315_v31 = vmul.f32 %v302_v28, %v302_v28  ;;  %v318_v32 = vsub.f32 %v290_v9, %v302_v28  ;;  %v317_v33 = vsub.f32 %v289_v5, %v302_v28  ;;  %v704_v5 = vld [vmem:[%s4950_s13 + $0x40] sm:$0xff]  ;;  %v707_v9 = vld [vmem:[%s4950_s13 + $0x58] sm:$0xff] }
 0x120   :  { %v4500_v7 = vpack.c.bf16 %v705_v6, %v704_v5  ;;  %v4509_v10 = vpack.c.bf16 %v707_v9, %v706_v8  ;;  %v3671_v28 = vpack.c.bf16 %v597_v27, %v596_v26  ;;  %v2782_v27 = vld [vmem:[%s4949_s12 + $0x4] sm:$0x3] }
 0x121   :  { %v316_v34 = vsub.f32 %v314_v30, %v315_v31  ;;  %v2767_v31 = vld [vmem:[%s4946_s9] ss:$0 sm:$0xff] }
 0x123   :  { %v319_v35 = vadd.f32 1e-05, %v316_v34 }
 0x125   :  { %3944 = vrsqrt.f32 %v319_v35 }
 0x12f   :  { %v3945_v36 = vpop.eup %3944 }
 0x130   :  { %v322_v38 = vmul.f32 %v3945_v36, %v318_v32  ;;  %v321_v39 = vmul.f32 %v3945_v36, %v317_v33  ;;  %v709_v32 = vld [vmem:[%s4951_s14] sm:$0xff]  ;;  %v710_v33 = vld [vmem:[%s4951_s14 + $0x8] sm:$0xff] }
 0x132   :  { %v330_v43 = vmul.f32 %v2762_v37, %v321_v39  ;;  %v331_v44 = vmul.f32 %v2762_v37, %v322_v38  ;;  %v4589_v37 = vpack.c.bf16 %v710_v33, %v709_v32  ;;  %v711_v39 = vld [vmem:[%s4951_s14 + $0x10] sm:$0xff] }
 0x134   :  { %v339_v45 = vadd.f32 %v2763_v42, %v330_v43  ;;  %v340_v46 = vadd.f32 %v2763_v42, %v331_v44  ;;  %v712_v42 = vld [vmem:[%s4951_s14 + $0x18] sm:$0xff]  ;;  %v714_v44 = vld [vmem:[%s4953_s16] sm:$0xff] }
 0x135   :  { %v4599_v43 = vpack.c.bf16 %v712_v42, %v711_v39 }
 0x136   :  { %v3641_v47 = vpack.c.bf16 %v340_v46, %v339_v45  ;;  %v715_v45 = vld [vmem:[%s4953_s16 + $0x8] sm:$0xff] }
 0x137   :  { %v4611_v46 = vpack.c.bf16 %v715_v45, %v714_v44 }
 0x138   :  { %3642 = vmatpush3.bf16.msra.mxu0 %v3641_v47  ;;  %v716_v47 = vld [vmem:[%s4953_s16 + $0x10] sm:$0xff] }
 0x139   :  { %3655 = vmatprep.subr.bf16.mxu0 %v4066_v40 }
 0x13b   :  { %3117 = vmatmul.mubr.msk.f32.vlgmr.msra.gmra.mrb[4].mxu0 %vm342_vm2, %v341_v48  ;;  %v717_v48 = vld [vmem:[%s4953_s16 + $0x18] sm:$0xff] }
 0x13c   :  { %3146 = vmatprep.mubr.msk.f32.mxu0 %vm4067_vm0, %v4068_v41  ;;  %3657 = vmatpush3.bf16.msra.mxu0 %v3656_v51  ;;  %v4622_v49 = vpack.c.bf16 %v717_v48, %v716_v47 }
 0x13d   :  { %3658 = vmatprep.subr.bf16.mxu0 %v4066_v40 }
 0x140   :  { %3660 = vmatpush3.bf16.msra.mxu0 %v3659_v2  ;;  %v2776_v2 = vld [vmem:[%s4949_s12 + $0x2] sm:$0x3] }
 0x141   :  { %3661 = vmatprep.subr.bf16.mxu0 %v4066_v40 }
 0x20e   :  { %v412_v57 = vpop.f32.mrb[4].mxu0 }
 0x20f   :  { %3136 = vmatmul.mubr.msk.f32.vlgmr.msra.gmra.mrb[4].mxu1 %vm291_vm1, %v412_v57  ;;  %v3118_v58 = vpop.f32.mrb[5].mxu0 }
 0x210   :  { %3675 = vmatpush3.bf16.msra.mxu1 %v4450_v54  ;;  %3194 = vmatprep.mubr.msk.f32.mxu1 %vm4067_vm0, %v4068_v41 }
 0x211   :  { %3676 = vmatprep.subr.bf16.mxu1 %v4066_v40 }
 0x214   :  { %3678 = vmatpush3.bf16.msra.mxu1 %v4460_v59 }
 0x215   :  { %3679 = vmatprep.subr.bf16.mxu1 %v4066_v40 }
 0x218   :  { %3681 = vmatpush3.bf16.msra.mxu1 %v4472_v62 }
 0x219   :  { %3682 = vmatprep.subr.bf16.mxu1 %v4066_v40 }
 0x21c   :  { %3684 = vmatpush3.bf16.msra.mxu1 %v4489_v4 }
 0x21d   :  { %3685 = vmatprep.subr.bf16.mxu1 %v4066_v40 }
 0x220   :  { %3687 = vmatpush3.bf16.msra.mxu1 %v4500_v7 }
 0x221   :  { %3688 = vmatprep.subr.bf16.mxu1 %v4066_v40 }
 0x224   :  { %3690 = vmatpush3.bf16.msra.mxu1 %v4509_v10 }
 0x225   :  { %3192 = vmatprep.subr.mxu1 %v4068_v41 }
 0x228   :  { %3193 = vmatpush3.msk.msra.mxu1 %vm723_vm3, %v4517_v11 }
 0x229   :  { %3195 = vmatmul.mubr.msk.f32.vlgmr.msra.gmra.mrb[6].mxu1 %vm719_vm4, %v718_v12  ;;  %3703 = vmatprep.subr.bf16.mxu1 %v4066_v40 }
 0x22a   :  { %3705 = vmatpush3.bf16.msra.mxu1 %v4450_v54  ;;  %3245 = vmatprep.mubr.msk.f32.mxu1 %vm4067_vm0, %v4068_v41 }
 0x22b   :  { %3706 = vmatprep.subr.bf16.mxu1 %v4066_v40 }
 0x22e   :  { %3708 = vmatpush3.bf16.msra.mxu1 %v4460_v59 }
 0x22f   :  { %3709 = vmatprep.subr.bf16.mxu1 %v4066_v40 }
 0x232   :  { %3711 = vmatpush3.bf16.msra.mxu1 %v4472_v62 }
 0x233   :  { %3712 = vmatprep.subr.bf16.mxu1 %v4066_v40 }
 0x236   :  { %3714 = vmatpush3.bf16.msra.mxu1 %v4489_v4 }
 0x237   :  { %3715 = vmatprep.subr.bf16.mxu1 %v4066_v40 }
 0x23a   :  { %3717 = vmatpush3.bf16.msra.mxu1 %v4500_v7 }
 0x23b   :  { %3718 = vmatprep.subr.bf16.mxu1 %v4066_v40 }
 0x23e   :  { %3720 = vmatpush3.bf16.msra.mxu1 %v4509_v10 }
 0x23f   :  { %3243 = vmatprep.subr.mxu1 %v4068_v41 }
 0x242   :  { %3244 = vmatpush3.msk.msra.mxu1 %vm723_vm3, %v4517_v11 }
 0x243   :  { %3751 = vmatprep.subr.bf16.mxu1 %v4066_v40  ;;  %3246 = vmatmul.mubr.msk.f32.vlgmr.msra.gmra.mrb[8].mxu1 %vm719_vm4, %v2776_v2 }
 0x244   :  { %3753 = vmatpush3.bf16.msra.mxu1 %v4589_v37  ;;  %3307 = vmatprep.mubr.msk.f32.mxu1 %vm4067_vm0, %v4068_v41 }
 0x245   :  { %3754 = vmatprep.subr.bf16.mxu1 %v4066_v40 }
 0x248   :  { %3756 = vmatpush3.bf16.msra.mxu1 %v4599_v43 }
 0x249   :  { %3757 = vmatprep.subr.bf16.mxu1 %v4066_v40 }
 0x2e2   :  { %v500_v16 = vpop.f32.mrb[4].mxu1 }
 0x2e3   :  { %v4552_v18 = vadd.f32 %v2765_v15, %v500_v16  ;;  %v3137_v19 = vpop.f32.mrb[5].mxu1 }
 0x2e5   :  { %3147 = vmatmul.mubr.msk.f32.vlgmr.msra.gmra.mrb[6].mxu0 %vm515_vm5, %v4552_v18 }
 0x2e6   :  { %3663 = vmatpush3.bf16.msra.mxu0 %v3662_v17  ;;  %3165 = vmatprep.mubr.msk.f32.mxu0 %vm4067_vm0, %v4068_v41 }
 0x2e7   :  { %3664 = vmatprep.subr.bf16.mxu0 %v4066_v40 }
 0x2ea   :  { %3666 = vmatpush3.bf16.msra.mxu0 %v3665_v22 }
 0x2eb   :  { %3667 = vmatprep.subr.bf16.mxu0 %v4066_v40 }
 0x2ee   :  { %3669 = vmatpush3.bf16.msra.mxu0 %v3668_v25 }
 0x2ef   :  { %3670 = vmatprep.subr.bf16.mxu0 %v4066_v40 }
 0x2f2   :  { %3672 = vmatpush3.bf16.msra.mxu0 %v3671_v28 }
 0x2f3   :  { %3691 = vmatprep.subr.bf16.mxu0 %v4066_v40 }
 0x2fc   :  { %v793_v29 = vpop.f32.mrb[6].mxu1 }
 0x2fd   :  { %v3196_v30 = vpop.f32.mrb[7].mxu1 }
 0x316   :  { %v1045_v9 = vpop.f32.mrb[8].mxu1 }
 0x317   :  { %v3247_v12 = vpop.f32.mrb[9].mxu1 }
 0x3b8   :  { %v585_v34 = vpop.f32.mrb[6].mxu0 }
 0x3b9   :  { %v586_v35 = vadd.f32 %v2767_v31, %v585_v34  ;;  %v3148_v36 = vpop.f32.mrb[7].mxu0 }
 0x3bb   :  { %v589_v38 = vmax.f32 %v586_v35, 0.0 }
 0x3bd   :  { %3166 = vmatmul.mubr.msk.f32.vlgmr.msra.gmra.mrb[8].mxu0 %vm291_vm1, %v589_v38 }
 0x3be   :  { %3693 = vmatpush3.bf16.msra.mxu0 %v4589_v37  ;;  %3205 = vmatprep.mubr.msk.f32.mxu0 %vm4067_vm0, %v4068_v41 }
 0x3bf   :  { %3694 = vmatprep.subr.bf16.mxu0 %v4066_v40 }
 0x3c2   :  { %3696 = vmatpush3.bf16.msra.mxu0 %v4599_v43 }
 0x3c3   :  { %3697 = vmatprep.subr.bf16.mxu0 %v4066_v40 }
 0x3c5   :  { %3206 = vmatmul.mubr.msk.f32.vlgmr.msra.gmra.mrb[10].mxu0 %vm515_vm5, %v793_v29 }
 0x3c6   :  { %3699 = vmatpush3.bf16.msra.mxu0 %v4611_v46  ;;  %3216 = vmatprep.mubr.msk.f32.mxu0 %vm4067_vm0, %v4068_v41 }
 0x3c7   :  { %3700 = vmatprep.subr.bf16.mxu0 %v4066_v40 }
 0x3ca   :  { %3702 = vmatpush3.bf16.msra.mxu0 %v4622_v49 }
 0x3cb   :  { %3721 = vmatprep.subr.bf16.mxu0 %v4066_v40 }
 0x3cd   :  { %3217 = vmatmul.mubr.f32.vlgmr.msra.gmra.mrb[10].mxu0 %v4068_v41 }
 0x3ce   :  { %3723 = vmatpush3.bf16.msra.mxu0 %v4589_v37  ;;  %3256 = vmatprep.mubr.msk.f32.mxu0 %vm4067_vm0, %v4068_v41 }
 0x3cf   :  { %3724 = vmatprep.subr.bf16.mxu0 %v4066_v40 }
 0x3d2   :  { %3726 = vmatpush3.bf16.msra.mxu0 %v4599_v43 }
 0x3d3   :  { %3727 = vmatprep.subr.bf16.mxu0 %v4066_v40 }
 0x3d5   :  { %3257 = vmatmul.mubr.msk.f32.vlgmr.msra.gmra.mrb[12].mxu0 %vm515_vm5, %v1045_v9 }
 0x3d6   :  { %3729 = vmatpush3.bf16.msra.mxu0 %v4611_v46  ;;  %3267 = vmatprep.mubr.msk.f32.mxu0 %vm4067_vm0, %v4068_v41 }
 0x3d7   :  { %3730 = vmatprep.subr.bf16.mxu0 %v4066_v40 }
 0x3da   :  { %3732 = vmatpush3.bf16.msra.mxu0 %v4622_v49 }
 0x3db   :  { %3733 = vmatprep.subr.bf16.mxu0 %v4066_v40 }
 0x490   :  { %v4636_v50 = vpop.f32.mrb[8].mxu0 }
 0x491   :  { %v3167_v51 = vpop.f32.mrb[9].mxu0 }
 0x4a0   :  { %v945_v53 = vpop.f32.mrb[10].mxu0 }
 0x4a1   :  { %v3913_v55 = vadd.f32 %v4641_v52, %v945_v53  ;;  %v3218_v56 = vpop.f32.mrb[11].mxu0 }
 0x4a2   :  { %v2788_v56 = vld [vmem:[%s4949_s12 + $0x6] sm:$0x3] }
 0x4a3   :  { %3946 = vtanh.f32 %v3913_v55  ;;  %v2775_v58 = vmul.f32 -1.442695, %v3913_v55 }
 0x4a5   :  { %3948 = vpow2.f32 %v2775_v58 }
 0x4ad   :  { %v3947_v57 = vpop.eup %3946 }
 0x4ae   :  { %959 = vrot.lane.b32.xlu0 %v3947_v57, %s4069_s19 }
 0x4af   :  { %v3949_v60 = vpop.eup %3948 }
 0x4b0   :  { %v953_v61 = vadd.f32 1.0, %v3949_v60 }
 0x4b2   :  { %3950 = vrcp.f32 %v953_v61 }
 0x4bc   :  { %v3951_v63 = vpop.eup %3950 }
 0x4bd   :  { %v957_v3 = vmul.f32 0.0, %v3951_v63 }
 0x520   :  { %v960_v0 = vpop.permute.xlu0 %959 }
 0x521   :  { %v962_v1 = vmul.f32 %v3951_v63, %v960_v0 }
 0x523   :  { %964 = vrot.lane.b32.xlu0 %v962_v1, %s4070_s8 }
 0x595   :  { %v965_v5 = vpop.permute.xlu0 %964 }
 0x596   :  { %v967_v6 = vadd.f32 %v965_v5, %v957_v3 }
 0x598   :  { %3952 = vtanh.f32 %v967_v6 }
 0x5a2   :  { %v3953_v8 = vpop.eup %3952 }
 0x5a3   :  { %970 = vrot.lane.b32.xlu1 %v3953_v8, %s4069_s19 }
 0x615   :  { %v971_v13 = vpop.permute.xlu1 %970 }
 0x616   :  { %v973_v14 = vmul.f32 %v3951_v63, %v971_v13 }
 0x618   :  { %1123 = vrot.lane.b32.xlu1 %v973_v14, %s4070_s8 }
 0x68a   :  { %v1124_v15 = vpop.permute.xlu1 %1123 }
 0x68b   :  { %3268 = vmatmul.mubr.msk.f32.vlgmr.msra.gmra.mrb[12].mxu0 %vm515_vm5, %v1124_v15 }
 0x68c   :  { %3735 = vmatpush3.bf16.msra.mxu0 %v4450_v54  ;;  %3296 = vmatprep.mubr.msk.f32.mxu0 %vm4067_vm0, %v4068_v41 }
 0x68d   :  { %3736 = vmatprep.subr.bf16.mxu0 %v4066_v40 }
 0x690   :  { %3738 = vmatpush3.bf16.msra.mxu0 %v4460_v59 }
 0x691   :  { %3739 = vmatprep.subr.bf16.mxu0 %v4066_v40 }
 0x694   :  { %3741 = vmatpush3.bf16.msra.mxu0 %v4472_v62 }
 0x695   :  { %3742 = vmatprep.subr.bf16.mxu0 %v4066_v40 }
 0x698   :  { %3744 = vmatpush3.bf16.msra.mxu0 %v4489_v4 }
 0x699   :  { %3745 = vmatprep.subr.bf16.mxu0 %v4066_v40 }
 0x69c   :  { %3747 = vmatpush3.bf16.msra.mxu0 %v4500_v7 }
 0x69d   :  { %3748 = vmatprep.subr.bf16.mxu0 %v4066_v40 }
 0x6a0   :  { %3750 = vmatpush3.bf16.msra.mxu0 %v4509_v10 }
 0x6a1   :  { %3294 = vmatprep.subr.mxu0 %v4068_v41 }
 0x6a4   :  { %3295 = vmatpush3.msk.msra.mxu0 %vm723_vm3, %v4517_v11 }
 0x6a5   :  { %3781 = vmatprep.subr.bf16.mxu0 %v4066_v40  ;;  %3297 = vmatmul.mubr.msk.f32.vlgmr.msra.gmra.mrb[14].mxu0 %vm719_vm4, %v2782_v27 }
 0x6a6   :  { %3783 = vmatpush3.bf16.msra.mxu0 %v4589_v37  ;;  %3358 = vmatprep.mubr.msk.f32.mxu0 %vm4067_vm0, %v4068_v41 }
 0x6a7   :  { %3784 = vmatprep.subr.bf16.mxu0 %v4066_v40 }
 0x6aa   :  { %3786 = vmatpush3.bf16.msra.mxu0 %v4599_v43 }
 0x6ab   :  { %3787 = vmatprep.subr.bf16.mxu0 %v4066_v40 }
 0x75e   :  { %v1193_v16 = vpop.f32.mrb[12].mxu0 }
 0x75f   :  { %v3914_v17 = vadd.f32 %v4641_v52, %v1193_v16  ;;  %v3269_v19 = vpop.f32.mrb[13].mxu0 }
 0x760   :  { %v2794_v19 = vld [vmem:[%s4949_s12 + $0x8] sm:$0x3] }
 0x761   :  { %3954 = vtanh.f32 %v3914_v17  ;;  %v2781_v21 = vmul.f32 -1.442695, %v3914_v17 }
 0x763   :  { %3956 = vpow2.f32 %v2781_v21 }
 0x76b   :  { %v3955_v20 = vpop.eup %3954 }
 0x76c   :  { %1207 = vrot.lane.b32.xlu0 %v3955_v20, %s4069_s19 }
 0x76d   :  { %v3957_v22 = vpop.eup %3956 }
 0x76e   :  { %v1201_v23 = vadd.f32 1.0, %v3957_v22 }
 0x770   :  { %3958 = vrcp.f32 %v1201_v23 }
 0x778   :  { %v1293_v32 = vpop.f32.mrb[14].mxu0 }
 0x779   :  { %3308 = vmatmul.mubr.msk.f32.vlgmr.msra.gmra.mrb[10].mxu1 %vm515_vm5, %v1293_v32  ;;  %v3298_v33 = vpop.f32.mrb[15].mxu0 }
 0x77a   :  { %v3959_v24 = vpop.eup %3958  ;;  %3759 = vmatpush3.bf16.msra.mxu1 %v4611_v46  ;;  %3318 = vmatprep.mubr.msk.f32.mxu1 %vm4067_vm0, %v4068_v41 }
 0x77b   :  { %v1205_v28 = vmul.f32 %v3959_v24, %v967_v6  ;;  %3760 = vmatprep.subr.bf16.mxu1 %v4066_v40 }
 0x77e   :  { %3762 = vmatpush3.bf16.msra.mxu1 %v4622_v49 }
 0x77f   :  { %3763 = vmatprep.subr.bf16.mxu1 %v4066_v40 }
 0x7de   :  { %v1208_v25 = vpop.permute.xlu0 %1207 }
 0x7df   :  { %v1210_v26 = vmul.f32 %v3959_v24, %v1208_v25 }
 0x7e1   :  { %1212 = vrot.lane.b32.xlu1 %v1210_v26, %s4070_s8 }
 0x853   :  { %v1213_v29 = vpop.permute.xlu1 %1212 }
 0x854   :  { %v1215_v30 = vadd.f32 %v1213_v29, %v1205_v28 }
 0x856   :  { %3960 = vtanh.f32 %v1215_v30 }
 0x860   :  { %v3961_v31 = vpop.eup %3960 }
 0x861   :  { %1218 = vrot.lane.b32.xlu0 %v3961_v31, %s4069_s19 }
 0x8d3   :  { %v1219_v34 = vpop.permute.xlu0 %1218 }
 0x8d4   :  { %v1221_v35 = vmul.f32 %v3959_v24, %v1219_v34 }
 0x8d6   :  { %1371 = vrot.lane.b32.xlu1 %v1221_v35, %s4070_s8 }
 0x948   :  { %v1372_v36 = vpop.permute.xlu1 %1371 }
 0x949   :  { %3319 = vmatmul.mubr.msk.f32.vlgmr.msra.gmra.mrb[10].mxu1 %vm515_vm5, %v1372_v36 }
 0x94a   :  { %3765 = vmatpush3.bf16.msra.mxu1 %v4450_v54  ;;  %3347 = vmatprep.mubr.msk.f32.mxu1 %vm4067_vm0, %v4068_v41 }
 0x94b   :  { %3766 = vmatprep.subr.bf16.mxu1 %v4066_v40 }
 0x94e   :  { %3768 = vmatpush3.bf16.msra.mxu1 %v4460_v59 }
 0x94f   :  { %3769 = vmatprep.subr.bf16.mxu1 %v4066_v40 }
 0x952   :  { %3771 = vmatpush3.bf16.msra.mxu1 %v4472_v62 }
 0x953   :  { %3772 = vmatprep.subr.bf16.mxu1 %v4066_v40 }
 0x956   :  { %3774 = vmatpush3.bf16.msra.mxu1 %v4489_v4 }
 0x957   :  { %3775 = vmatprep.subr.bf16.mxu1 %v4066_v40 }
 0x95a   :  { %3777 = vmatpush3.bf16.msra.mxu1 %v4500_v7 }
 0x95b   :  { %3778 = vmatprep.subr.bf16.mxu1 %v4066_v40 }
 0x95e   :  { %3780 = vmatpush3.bf16.msra.mxu1 %v4509_v10 }
 0x95f   :  { %3345 = vmatprep.subr.mxu1 %v4068_v41 }
 0x962   :  { %3346 = vmatpush3.msk.msra.mxu1 %vm723_vm3, %v4517_v11 }
 0x963   :  { %3811 = vmatprep.subr.bf16.mxu1 %v4066_v40  ;;  %3348 = vmatmul.mubr.msk.f32.vlgmr.msra.gmra.mrb[12].mxu1 %vm719_vm4, %v2788_v56 }
 0x964   :  { %3813 = vmatpush3.bf16.msra.mxu1 %v4589_v37  ;;  %3409 = vmatprep.mubr.msk.f32.mxu1 %vm4067_vm0, %v4068_v41 }
 0x965   :  { %3814 = vmatprep.subr.bf16.mxu1 %v4066_v40 }
 0x968   :  { %3816 = vmatpush3.bf16.msra.mxu1 %v4599_v43 }
 0x969   :  { %3817 = vmatprep.subr.bf16.mxu1 %v4066_v40 }
 0xa1c   :  { %v1441_v38 = vpop.f32.mrb[10].mxu1 }
 0xa1d   :  { %v3915_v39 = vadd.f32 %v4641_v52, %v1441_v38  ;;  %v3320_v42 = vpop.f32.mrb[11].mxu1 }
 0xa1e   :  { %v2800_v42 = vld [vmem:[%s4949_s12 + $0xa] sm:$0x3] }
 0xa1f   :  { %3962 = vtanh.f32 %v3915_v39  ;;  %v2787_v45 = vmul.f32 -1.442695, %v3915_v39 }
 0xa21   :  { %3964 = vpow2.f32 %v2787_v45 }
 0xa29   :  { %v3963_v44 = vpop.eup %3962 }
 0xa2a   :  { %1455 = vrot.lane.b32.xlu0 %v3963_v44, %s4069_s19 }
 0xa2b   :  { %v3965_v47 = vpop.eup %3964 }
 0xa2c   :  { %v1449_v48 = vadd.f32 1.0, %v3965_v47 }
 0xa2e   :  { %3966 = vrcp.f32 %v1449_v48 }
 0xa36   :  { %v1541_v63 = vpop.f32.mrb[12].mxu1 }
 0xa37   :  { %3359 = vmatmul.mubr.msk.f32.vlgmr.msra.gmra.mrb[16].mxu0 %vm515_vm5, %v1541_v63  ;;  %v3349_v0 = vpop.f32.mrb[13].mxu1 }
 0xa38   :  { %v3967_v51 = vpop.eup %3966  ;;  %3789 = vmatpush3.bf16.msra.mxu0 %v4611_v46  ;;  %3369 = vmatprep.mubr.msk.f32.mxu0 %vm4067_vm0, %v4068_v41 }
 0xa39   :  { %v1453_v57 = vmul.f32 %v3967_v51, %v1215_v30  ;;  %3790 = vmatprep.subr.bf16.mxu0 %v4066_v40 }
 0xa3c   :  { %3792 = vmatpush3.bf16.msra.mxu0 %v4622_v49 }
 0xa3d   :  { %3793 = vmatprep.subr.bf16.mxu0 %v4066_v40 }
 0xa9c   :  { %v1456_v53 = vpop.permute.xlu0 %1455 }
 0xa9d   :  { %v1458_v55 = vmul.f32 %v3967_v51, %v1456_v53 }
 0xa9f   :  { %1460 = vrot.lane.b32.xlu1 %v1458_v55, %s4070_s8 }
 0xb11   :  { %v1461_v58 = vpop.permute.xlu1 %1460 }
 0xb12   :  { %v1463_v60 = vadd.f32 %v1461_v58, %v1453_v57 }
 0xb14   :  { %3968 = vtanh.f32 %v1463_v60 }
 0xb1e   :  { %v3969_v61 = vpop.eup %3968 }
 0xb1f   :  { %1466 = vrot.lane.b32.xlu0 %v3969_v61, %s4069_s19 }
 0xb91   :  { %v1467_v1 = vpop.permute.xlu0 %1466 }
 0xb92   :  { %v1469_v2 = vmul.f32 %v3967_v51, %v1467_v1 }
 0xb94   :  { %1619 = vrot.lane.b32.xlu1 %v1469_v2, %s4070_s8 }
 0xc06   :  { %v1620_v3 = vpop.permute.xlu1 %1619 }
 0xc07   :  { %3370 = vmatmul.mubr.msk.f32.vlgmr.msra.gmra.mrb[16].mxu0 %vm515_vm5, %v1620_v3 }
 0xc08   :  { %3795 = vmatpush3.bf16.msra.mxu0 %v4450_v54  ;;  %3398 = vmatprep.mubr.msk.f32.mxu0 %vm4067_vm0, %v4068_v41 }
 0xc09   :  { %3796 = vmatprep.subr.bf16.mxu0 %v4066_v40 }
 0xc0c   :  { %3798 = vmatpush3.bf16.msra.mxu0 %v4460_v59 }
 0xc0d   :  { %3799 = vmatprep.subr.bf16.mxu0 %v4066_v40 }
 0xc10   :  { %3801 = vmatpush3.bf16.msra.mxu0 %v4472_v62 }
 0xc11   :  { %3802 = vmatprep.subr.bf16.mxu0 %v4066_v40 }
 0xc14   :  { %3804 = vmatpush3.bf16.msra.mxu0 %v4489_v4 }
 0xc15   :  { %3805 = vmatprep.subr.bf16.mxu0 %v4066_v40 }
 0xc18   :  { %3807 = vmatpush3.bf16.msra.mxu0 %v4500_v7 }
 0xc19   :  { %3808 = vmatprep.subr.bf16.mxu0 %v4066_v40 }
 0xc1c   :  { %3810 = vmatpush3.bf16.msra.mxu0 %v4509_v10 }
 0xc1d   :  { %3396 = vmatprep.subr.mxu0 %v4068_v41 }
 0xc20   :  { %3397 = vmatpush3.msk.msra.mxu0 %vm723_vm3, %v4517_v11 }
 0xc21   :  { %3841 = vmatprep.subr.bf16.mxu0 %v4066_v40  ;;  %3399 = vmatmul.mubr.msk.f32.vlgmr.msra.gmra.mrb[18].mxu0 %vm719_vm4, %v2794_v19 }
 0xc22   :  { %3843 = vmatpush3.bf16.msra.mxu0 %v4589_v37  ;;  %3460 = vmatprep.mubr.msk.f32.mxu0 %vm4067_vm0, %v4068_v41 }
 0xc23   :  { %3844 = vmatprep.subr.bf16.mxu0 %v4066_v40 }
 0xc26   :  { %3846 = vmatpush3.bf16.msra.mxu0 %v4599_v43 }
 0xc27   :  { %3847 = vmatprep.subr.bf16.mxu0 %v4066_v40 }
 0xcda   :  { %v1689_v5 = vpop.f32.mrb[16].mxu0 }
 0xcdb   :  { %v3916_v6 = vadd.f32 %v4641_v52, %v1689_v5  ;;  %v3371_v8 = vpop.f32.mrb[17].mxu0 }
 0xcdc   :  { %v2806_v8 = vld [vmem:[%s4949_s12 + $0xc] sm:$0x3] }
 0xcdd   :  { %3970 = vtanh.f32 %v3916_v6  ;;  %v2793_v12 = vmul.f32 -1.442695, %v3916_v6 }
 0xcdf   :  { %3972 = vpow2.f32 %v2793_v12 }
 0xce7   :  { %v3971_v9 = vpop.eup %3970 }
 0xce8   :  { %1703 = vrot.lane.b32.xlu0 %v3971_v9, %s4069_s19 }
 0xce9   :  { %v3973_v13 = vpop.eup %3972 }
 0xcea   :  { %v1697_v14 = vadd.f32 1.0, %v3973_v13 }
 0xcec   :  { %3974 = vrcp.f32 %v1697_v14 }
 0xcf4   :  { %v1789_v24 = vpop.f32.mrb[18].mxu0 }
 0xcf5   :  { %3410 = vmatmul.mubr.msk.f32.vlgmr.msra.gmra.mrb[14].mxu1 %vm515_vm5, %v1789_v24  ;;  %v3400_v25 = vpop.f32.mrb[19].mxu0 }
 0xcf6   :  { %v3975_v15 = vpop.eup %3974  ;;  %3819 = vmatpush3.bf16.msra.mxu1 %v4611_v46  ;;  %3420 = vmatprep.mubr.msk.f32.mxu1 %vm4067_vm0, %v4068_v41 }
 0xcf7   :  { %v1701_v20 = vmul.f32 %v3975_v15, %v1463_v60  ;;  %3820 = vmatprep.subr.bf16.mxu1 %v4066_v40 }
 0xcfa   :  { %3822 = vmatpush3.bf16.msra.mxu1 %v4622_v49 }
 0xcfb   :  { %3823 = vmatprep.subr.bf16.mxu1 %v4066_v40 }
 0xd5a   :  { %v1704_v16 = vpop.permute.xlu0 %1703 }
 0xd5b   :  { %v1706_v17 = vmul.f32 %v3975_v15, %v1704_v16 }
 0xd5d   :  { %1708 = vrot.lane.b32.xlu1 %v1706_v17, %s4070_s8 }
 0xdcf   :  { %v1709_v21 = vpop.permute.xlu1 %1708 }
 0xdd0   :  { %v1711_v22 = vadd.f32 %v1709_v21, %v1701_v20 }
 0xdd2   :  { %3976 = vtanh.f32 %v1711_v22 }
 0xddc   :  { %v3977_v23 = vpop.eup %3976 }
 0xddd   :  { %1714 = vrot.lane.b32.xlu0 %v3977_v23, %s4069_s19 }
 0xe4f   :  { %v1715_v26 = vpop.permute.xlu0 %1714 }
 0xe50   :  { %v1717_v27 = vmul.f32 %v3975_v15, %v1715_v26 }
 0xe52   :  { %1867 = vrot.lane.b32.xlu1 %v1717_v27, %s4070_s8 }
 0xec4   :  { %v1868_v28 = vpop.permute.xlu1 %1867 }
 0xec5   :  { %3421 = vmatmul.mubr.msk.f32.vlgmr.msra.gmra.mrb[14].mxu1 %vm515_vm5, %v1868_v28 }
 0xec6   :  { %3825 = vmatpush3.bf16.msra.mxu1 %v4450_v54  ;;  %3449 = vmatprep.mubr.msk.f32.mxu1 %vm4067_vm0, %v4068_v41 }
 0xec7   :  { %3826 = vmatprep.subr.bf16.mxu1 %v4066_v40 }
 0xeca   :  { %3828 = vmatpush3.bf16.msra.mxu1 %v4460_v59 }
 0xecb   :  { %3829 = vmatprep.subr.bf16.mxu1 %v4066_v40 }
 0xece   :  { %3831 = vmatpush3.bf16.msra.mxu1 %v4472_v62 }
 0xecf   :  { %3832 = vmatprep.subr.bf16.mxu1 %v4066_v40 }
 0xed2   :  { %3834 = vmatpush3.bf16.msra.mxu1 %v4489_v4 }
 0xed3   :  { %3835 = vmatprep.subr.bf16.mxu1 %v4066_v40 }
 0xed6   :  { %3837 = vmatpush3.bf16.msra.mxu1 %v4500_v7 }
 0xed7   :  { %3838 = vmatprep.subr.bf16.mxu1 %v4066_v40 }
 0xeda   :  { %3840 = vmatpush3.bf16.msra.mxu1 %v4509_v10 }
 0xedb   :  { %3447 = vmatprep.subr.mxu1 %v4068_v41 }
 0xede   :  { %3448 = vmatpush3.msk.msra.mxu1 %vm723_vm3, %v4517_v11 }
 0xedf   :  { %3871 = vmatprep.subr.bf16.mxu1 %v4066_v40  ;;  %3450 = vmatmul.mubr.msk.f32.vlgmr.msra.gmra.mrb[16].mxu1 %vm719_vm4, %v2800_v42 }
 0xee0   :  { %3873 = vmatpush3.bf16.msra.mxu1 %v4589_v37  ;;  %3511 = vmatprep.mubr.msk.f32.mxu1 %vm4067_vm0, %v4068_v41 }
 0xee1   :  { %3874 = vmatprep.subr.bf16.mxu1 %v4066_v40 }
 0xee4   :  { %3876 = vmatpush3.bf16.msra.mxu1 %v4599_v43 }
 0xee5   :  { %3877 = vmatprep.subr.bf16.mxu1 %v4066_v40 }
 0xf98   :  { %v1937_v29 = vpop.f32.mrb[14].mxu1 }
 0xf99   :  { %v3917_v30 = vadd.f32 %v4641_v52, %v1937_v29  ;;  %v3422_v31 = vpop.f32.mrb[15].mxu1 }
 0xf9b   :  { %3978 = vtanh.f32 %v3917_v30  ;;  %v2799_v33 = vmul.f32 -1.442695, %v3917_v30 }
 0xf9d   :  { %3980 = vpow2.f32 %v2799_v33 }
 0xfa5   :  { %v3979_v32 = vpop.eup %3978 }
 0xfa6   :  { %1951 = vrot.lane.b32.xlu0 %v3979_v32, %s4069_s19 }
 0xfa7   :  { %v3981_v34 = vpop.eup %3980 }
 0xfa8   :  { %v1945_v35 = vadd.f32 1.0, %v3981_v34 }
 0xfaa   :  { %3982 = vrcp.f32 %v1945_v35 }
 0xfb2   :  { %v2037_v51 = vpop.f32.mrb[16].mxu1 }
 0xfb3   :  { %3461 = vmatmul.mubr.msk.f32.vlgmr.msra.gmra.mrb[20].mxu0 %vm515_vm5, %v2037_v51  ;;  %v3451_v53 = vpop.f32.mrb[17].mxu1  ;;  %v671_v51 = vadd.f32 %v4636_v50, %v4552_v18 }
 0xfb4   :  { %v3983_v36 = vpop.eup %3982  ;;  %3849 = vmatpush3.bf16.msra.mxu0 %v4611_v46  ;;  %3471 = vmatprep.mubr.msk.f32.mxu0 %vm4067_vm0, %v4068_v41  ;;  %v2770_v53 = vld [vmem:[%s4948_s11] ss:$0 sm:$0xff]  ;;  %s4071_s11 = smov [#allocation2]  }
 0xfb5   :  { %v1949_v44 = vmul.f32 %v3983_v36, %v1711_v22  ;;  %3850 = vmatprep.subr.bf16.mxu0 %v4066_v40  ;;  %s2739_s3 = sshll.u32 %s4071_s11, 4  ;;  %s2740_s3 = int_to_ptr.vmem [resolvable:$true] %s2739_s3 }
 0xfb6   :  { %s4018_s29 = scalar_lea.vmem %s2740_s3, 32  ;;  %p4023_p1 = scmp.lt.s32.totalorder %s2740_s3, %s2740_s3 }
 0xfb7   :  { %p4019_p0 = scmp.ne.s32.totalorder %s2740_s3, %s4018_s29  ;;  %p4024_p2 = scmp.lt.s32.totalorder %s4018_s29, %s4018_s29 }
 0xfb8   :  { %3852 = vmatpush3.bf16.msra.mxu0 %v4622_v49 }
 0xfb9   :  { %3853 = vmatprep.subr.bf16.mxu0 %v4066_v40  ;;  %p4025_p3 = por %p4024_p2, %p4023_p1 }
 0xfbb   :  { %p4026_p4 = pnand %p4025_p3, %p4019_p0 }
0x1018   :  { %v1952_v38 = vpop.permute.xlu0 %1951 }
0x1019   :  { %v1954_v39 = vmul.f32 %v3983_v36, %v1952_v38 }
0x101b   :  { %1956 = vrot.lane.b32.xlu1 %v1954_v39, %s4070_s8 }
0x108d   :  { %v1957_v45 = vpop.permute.xlu1 %1956 }
0x108e   :  { %v1959_v47 = vadd.f32 %v1957_v45, %v1949_v44 }
0x1090   :  { %3984 = vtanh.f32 %v1959_v47 }
0x109a   :  { %v3985_v48 = vpop.eup %3984 }
0x109b   :  { %1962 = vrot.lane.b32.xlu0 %v3985_v48, %s4069_s19 }
0x110d   :  { %v1963_v55 = vpop.permute.xlu0 %1962 }
0x110e   :  { %v1965_v56 = vmul.f32 %v3983_v36, %v1963_v55  ;;  %v679_v55 = vadd.f32 %v2770_v53, %v671_v51 }
0x1110   :  { %2115 = vrot.lane.b32.xlu1 %v1965_v56, %s4070_s8  ;;  %v680_v56 = vmul.f32 %v679_v55, %v679_v55 }
0x1182   :  { %v2116_v57 = vpop.permute.xlu1 %2115 }
0x1183   :  { %3472 = vmatmul.mubr.msk.f32.vlgmr.msra.gmra.mrb[20].mxu0 %vm515_vm5, %v2116_v57  ;;  %v682_v57 = vsel %vm681_vm6, %v680_v56, 0.0 }
0x1184   :  { %3855 = vmatpush3.bf16.msra.mxu0 %v4450_v54  ;;  %3500 = vmatprep.mubr.msk.f32.mxu0 %vm4067_vm0, %v4068_v41 }
0x1185   :  { %3856 = vmatprep.subr.bf16.mxu0 %v4066_v40 }
0x1188   :  { %3858 = vmatpush3.bf16.msra.mxu0 %v4460_v59 }
0x1189   :  { %3859 = vmatprep.subr.bf16.mxu0 %v4066_v40 }
0x118c   :  { %3861 = vmatpush3.bf16.msra.mxu0 %v4472_v62 }
0x118d   :  { %3862 = vmatprep.subr.bf16.mxu0 %v4066_v40 }
0x1190   :  { %3864 = vmatpush3.bf16.msra.mxu0 %v4489_v4 }
0x1191   :  { %3865 = vmatprep.subr.bf16.mxu0 %v4066_v40 }
0x1194   :  { %3867 = vmatpush3.bf16.msra.mxu0 %v4500_v7 }
0x1195   :  { %3868 = vmatprep.subr.bf16.mxu0 %v4066_v40 }
0x1198   :  { %3870 = vmatpush3.bf16.msra.mxu0 %v4509_v10 }
0x1199   :  { %3498 = vmatprep.subr.mxu0 %v4068_v41 }
0x119c   :  { %3499 = vmatpush3.msk.msra.mxu0 %vm723_vm3, %v4517_v11 }
0x119d   :  { %3901 = vmatprep.subr.bf16.mxu0 %v4066_v40  ;;  %3501 = vmatmul.mubr.msk.f32.vlgmr.msra.gmra.mrb[22].mxu0 %vm719_vm4, %v2806_v8 }
0x119e   :  { %3903 = vmatpush3.bf16.msra.mxu0 %v4589_v37  ;;  %3562 = vmatprep.mubr.msk.f32.mxu0 %vm4067_vm0, %v4068_v41 }
0x119f   :  { %3904 = vmatprep.subr.bf16.mxu0 %v4066_v40 }
0x11a2   :  { %3906 = vmatpush3.bf16.msra.mxu0 %v4599_v43 }
0x11a3   :  { %3907 = vmatprep.subr.bf16.mxu0 %v4066_v40 }
0x1256   :  { %v2185_v58 = vpop.f32.mrb[20].mxu0 }
0x1257   :  { %v3918_v60 = vadd.f32 %v4641_v52, %v2185_v58  ;;  %v3473_v61 = vpop.f32.mrb[21].mxu0 }
0x1259   :  { %3986 = vtanh.f32 %v3918_v60  ;;  %v2805_v0 = vmul.f32 -1.442695, %v3918_v60 }
0x125b   :  { %3988 = vpow2.f32 %v2805_v0 }
0x1263   :  { %v3987_v63 = vpop.eup %3986 }
0x1264   :  { %2199 = vrot.lane.b32.xlu0 %v3987_v63, %s4069_s19 }
0x1265   :  { %v3989_v1 = vpop.eup %3988 }
0x1266   :  { %v2193_v2 = vadd.f32 1.0, %v3989_v1 }
0x1268   :  { %3990 = vrcp.f32 %v2193_v2 }
0x1270   :  { %v2285_v15 = vpop.f32.mrb[22].mxu0 }
0x1271   :  { %3512 = vmatmul.mubr.msk.f32.vlgmr.msra.gmra.mrb[18].mxu1 %vm515_vm5, %v2285_v15  ;;  %v3502_v37 = vpop.f32.mrb[23].mxu0 }
0x1272   :  { %v3991_v3 = vpop.eup %3990  ;;  %3879 = vmatpush3.bf16.msra.mxu1 %v4611_v46  ;;  %3522 = vmatprep.mubr.msk.f32.mxu1 %vm4067_vm0, %v4068_v41 }
0x1273   :  { %v2197_v9 = vmul.f32 %v3991_v3, %v1959_v47  ;;  %3880 = vmatprep.subr.bf16.mxu1 %v4066_v40 }
0x1276   :  { %3882 = vmatpush3.bf16.msra.mxu1 %v4622_v49 }
0x1277   :  { %3883 = vmatprep.subr.bf16.mxu1 %v4066_v40 }
0x12d6   :  { %v2200_v5 = vpop.permute.xlu0 %2199 }
0x12d7   :  { %v2202_v6 = vmul.f32 %v3991_v3, %v2200_v5 }
0x12d9   :  { %2204 = vrot.lane.b32.xlu1 %v2202_v6, %s4070_s8 }
0x134b   :  { %v2205_v12 = vpop.permute.xlu1 %2204 }
0x134c   :  { %v2207_v13 = vadd.f32 %v2205_v12, %v2197_v9 }
0x134e   :  { %3992 = vtanh.f32 %v2207_v13 }
0x1358   :  { %v3993_v14 = vpop.eup %3992 }
0x1359   :  { %2210 = vrot.lane.b32.xlu0 %v3993_v14, %s4069_s19 }
0x13cb   :  { %v2211_v43 = vpop.permute.xlu0 %2210 }
0x13cc   :  { %v2213_v16 = vmul.f32 %v3991_v3, %v2211_v43 }
0x13ce   :  { %2363 = vrot.lane.b32.xlu1 %v2213_v16, %s4070_s8 }
0x1440   :  { %v2364_v17 = vpop.permute.xlu1 %2363 }
0x1441   :  { %3523 = vmatmul.mubr.msk.f32.vlgmr.msra.gmra.mrb[18].mxu1 %vm515_vm5, %v2364_v17 }
0x1442   :  { %3885 = vmatpush3.bf16.msra.mxu1 %v4450_v54  ;;  %3551 = vmatprep.mubr.msk.f32.mxu1 %vm4067_vm0, %v4068_v41 }
0x1443   :  { %3886 = vmatprep.subr.bf16.mxu1 %v4066_v40 }
0x1446   :  { %3888 = vmatpush3.bf16.msra.mxu1 %v4460_v59 }
0x1447   :  { %3889 = vmatprep.subr.bf16.mxu1 %v4066_v40 }
0x144a   :  { %3891 = vmatpush3.bf16.msra.mxu1 %v4472_v62 }
0x144b   :  { %3892 = vmatprep.subr.bf16.mxu1 %v4066_v40 }
0x144e   :  { %3894 = vmatpush3.bf16.msra.mxu1 %v4489_v4 }
0x144f   :  { %3895 = vmatprep.subr.bf16.mxu1 %v4066_v40 }
0x1452   :  { %3897 = vmatpush3.bf16.msra.mxu1 %v4500_v7 }
0x1453   :  { %3898 = vmatprep.subr.bf16.mxu1 %v4066_v40 }
0x1456   :  { %3900 = vmatpush3.bf16.msra.mxu1 %v4509_v10 }
0x1457   :  { %3549 = vmatprep.subr.mxu1 %v4068_v41 }
0x145a   :  { %3550 = vmatpush3.msk.msra.mxu1 %vm723_vm3, %v4517_v11  ;;  %v2812_v11 = vld [vmem:[%s4949_s12 + $0xe] sm:$0x3] }
0x145b   :  { %3552 = vmatmul.mubr.msk.f32.vlgmr.msra.gmra.mrb[20].mxu1 %vm719_vm4, %v2812_v11 }
0x1514   :  { %v2433_v54 = vpop.f32.mrb[18].mxu1 }
0x1515   :  { %v3919_v59 = vadd.f32 %v4641_v52, %v2433_v54  ;;  %v3524_v62 = vpop.f32.mrb[19].mxu1 }
0x1517   :  { %3994 = vtanh.f32 %v3919_v59  ;;  %v2811_v4 = vmul.f32 -1.442695, %v3919_v59 }
0x1519   :  { %3996 = vpow2.f32 %v2811_v4 }
0x1521   :  { %v3995_v19 = vpop.eup %3994 }
0x1522   :  { %2447 = vrot.lane.b32.xlu0 %v3995_v19, %s4069_s19 }
0x1523   :  { %v3997_v7 = vpop.eup %3996 }
0x1524   :  { %v2441_v20 = vadd.f32 1.0, %v3997_v7 }
0x1526   :  { %3998 = vrcp.f32 %v2441_v20 }
0x152e   :  { %v2533_v27 = vpop.f32.mrb[20].mxu1 }
0x152f   :  { %3563 = vmatmul.mubr.msk.f32.vlgmr.msra.gmra.mrb[24].mxu0 %vm515_vm5, %v2533_v27  ;;  %v3553_v28 = vpop.f32.mrb[21].mxu1 }
0x1530   :  { %v3999_v21 = vpop.eup %3998  ;;  %3909 = vmatpush3.bf16.msra.mxu0 %v4611_v46  ;;  %3573 = vmatprep.mubr.msk.f32.mxu0 %vm4067_vm0, %v4068_v41 }
0x1531   :  { %v2445_v23 = vmul.f32 %v3999_v21, %v2207_v13  ;;  %3910 = vmatprep.subr.bf16.mxu0 %v4066_v40 }
0x1534   :  { %3912 = vmatpush3.bf16.msra.mxu0 %v4622_v49 }
0x1594   :  { %v2448_v10 = vpop.permute.xlu0 %2447 }
0x1595   :  { %v2450_v22 = vmul.f32 %v3999_v21, %v2448_v10 }
0x1597   :  { %2452 = vrot.lane.b32.xlu1 %v2450_v22, %s4070_s8 }
0x1609   :  { %v2453_v24 = vpop.permute.xlu1 %2452 }
0x160a   :  { %v2455_v25 = vadd.f32 %v2453_v24, %v2445_v23 }
0x160c   :  { %4000 = vtanh.f32 %v2455_v25 }
0x1616   :  { %v4001_v26 = vpop.eup %4000 }
0x1617   :  { %2458 = vrot.lane.b32.xlu0 %v4001_v26, %s4069_s19 }
0x1689   :  { %v2459_v29 = vpop.permute.xlu0 %2458 }
0x168a   :  { %v2461_v30 = vmul.f32 %v3999_v21, %v2459_v29 }
0x168c   :  { %2611 = vrot.lane.b32.xlu1 %v2461_v30, %s4070_s8 }
0x16fe   :  { %v2612_v31 = vpop.permute.xlu1 %2611 }
0x16ff   :  { %3574 = vmatmul.mubr.msk.f32.vlgmr.msra.gmra.mrb[24].mxu0 %vm515_vm5, %v2612_v31 }
0x17d2   :  { %v2681_v32 = vpop.f32.mrb[24].mxu0 }
0x17d3   :  { %v3920_v33 = vadd.f32 %v4641_v52, %v2681_v32  ;;  %v3575_v34 = vpop.f32.mrb[25].mxu0 }
0x17d5   :  { %4002 = vtanh.f32 %v3920_v33  ;;  %v2817_v41 = vmul.f32 -1.442695, %v3920_v33 }
0x17d7   :  { %4004 = vpow2.f32 %v2817_v41 }
0x17df   :  { %v4003_v46 = vpop.eup %4002 }
0x17e0   :  { %2695 = vrot.lane.b32.xlu0 %v4003_v46, %s4069_s19 }
0x17e1   :  { %v4005_v40 = vpop.eup %4004 }
0x17e2   :  { %v2689_v35 = vadd.f32 1.0, %v4005_v40 }
0x17e4   :  { %4006 = vrcp.f32 %v2689_v35 }
0x17ee   :  { %v4007_v49 = vpop.eup %4006 }
0x17ef   :  { %v2693_v39 = vmul.f32 %v4007_v49, %v2455_v25 }
0x1852   :  { %v2696_v36 = vpop.permute.xlu0 %2695 }
0x1853   :  { %v2698_v38 = vmul.f32 %v4007_v49, %v2696_v36 }
0x1855   :  { %2700 = vrot.lane.b32.xlu1 %v2698_v38, %s4070_s8 }
0x18c7   :  { %v2701_v42 = vpop.permute.xlu1 %2700 }
0x18c8   :  { %v2703_v44 = vadd.f32 %v2701_v42, %v2693_v39 }
0x18ca   :  { %4008 = vtanh.f32 %v2703_v44 }
0x18d4   :  { %v4009_v52 = vpop.eup %4008 }
0x18d5   :  { %2706 = vrot.lane.b32.xlu0 %v4009_v52, %s4069_s19 }
0x1947   :  { %v2707_v45 = vpop.permute.xlu0 %2706 }
0x1948   :  { %v2709_v47 = vmul.f32 %v4007_v49, %v2707_v45 }
0x194a   :  { %v2710_v48 = vmul.f32 %v2709_v47, %v2709_v47 }
0x194c   :  { %2712 = vrot.lane.b32.xlu1 %v2710_v48, %s4070_s8 }
0x1970   :  { %683 = vadd.xlane.f32.xlu1 %v682_v57 }
0x19be   :  { %v2713_v58 = vpop.permute.xlu1 %2712 }
0x19bf   :  { %v2715_v60 = vsel %vm681_vm6, %v2713_v58, 0.0 }
0x19c0   :  { %2716 = vadd.xlane.f32.xlu0 %v2715_v60 }
0x19fd   :  { %v684_v61 = vpop.xlane.xlu1 %683 }
0x19fe   :  { %4010 = vrsqrt.f32 %v684_v61  ;;  %vm687_vm7 = vcmp.eq.f32.partialorder %v684_v61, inf  ;;  %v690_v18 = vand.u32 2147483648, %v684_v61  ;;  %vm689_vm8 = vcmp.eq.f32.partialorder %v684_v61, 0.0 }
0x1a08   :  { %v4011_v63 = vpop.eup %4010 }
0x1a09   :  { %v686_v0 = vmul.f32 %v4011_v63, %v684_v61 }
0x1a0b   :  { %v688_v50 = vsel %vm687_vm7, %v684_v61, %v686_v0 }
0x1a0c   :  { %v691_v1 = vsel %vm689_vm8, %v690_v18, %v688_v50 }
0x1a0d   :  { %v692_v2 = vmax.f32 %v691_v1, 1e-12 }
0x1a0f   :  { %4012 = vrcp.f32 %v692_v2 }
0x1a19   :  { %v4013_v3 = vpop.eup %4012 }
0x1a1a   :  { %v694_v5 = vmul.f32 %v4013_v3, %v679_v55 }
0x1a1c   :  { %695 = vst.msk [vmem:[#allocation2] sm:$0x3] %vm681_vm6, %v694_v5 }
0x1a4d   :  { %v2717_v6 = vpop.xlane.xlu0 %2716 }
0x1a4e   :  { %4014 = vrsqrt.f32 %v2717_v6  ;;  %vm2720_vm9 = vcmp.eq.f32.partialorder %v2717_v6, inf  ;;  %v2723_v12 = vand.u32 2147483648, %v2717_v6  ;;  %vm2722_vm10 = vcmp.eq.f32.partialorder %v2717_v6, 0.0 }
0x1a58   :  { %v4015_v8 = vpop.eup %4014 }
0x1a59   :  { %v2719_v9 = vmul.f32 %v4015_v8, %v2717_v6 }
0x1a5b   :  { %v2721_v13 = vsel %vm2720_vm9, %v2717_v6, %v2719_v9 }
0x1a5c   :  { %v2724_v14 = vsel %vm2722_vm10, %v2723_v12, %v2721_v13 }
0x1a5d   :  { %v2725_v15 = vmax.f32 %v2724_v14, 1e-12 }
0x1a5f   :  { %4016 = vrcp.f32 %v2725_v15 }
0x1a60   :  { %4029 = shalt.err (!%p4026_p4)
}
0x1a61   :  { %s4030_s14 = scalar_lea.hbm %s4954_s17, 32 }
0x1a62   :  { %p4031_p5 = scmp.ne.s32.totalorder %s4954_s17, %s4030_s14  ;;  %p4034_p6 = scmp.lt.u32.totalorder %s4030_s14, %s4954_s17 }
0x1a64   :  { %p4036_p7 = pnand %p4034_p6, %p4031_p5 }
0x1a66   :  { %4039 = shalt.err (!%p4036_p7)
}
0x1a67   :  { %2742 = dma.vmem_to_hbm [thread:$0]  %s2740_s3, 32, %s4954_s17, [#allocation3]  }
0x1a68   :  { %s4072_s15 = smov [#allocation4]  }
0x1a69   :  { %v4017_v37 = vpop.eup %4016  ;;  %s2749_s1 = sshll.u32 %s4072_s15, 4  ;;  %s2750_s1 = int_to_ptr.vmem [resolvable:$true] %s2749_s1 }
0x1a6a   :  { %v2727_v43 = vmul.f32 %v4017_v37, %v2709_v47  ;;  %s4040_s20 = scalar_lea.vmem %s2750_s1, 32  ;;  %p4045_p9 = scmp.lt.s32.totalorder %s2750_s1, %s2750_s1 }
0x1a6b   :  { %p4041_p8 = scmp.ne.s32.totalorder %s2750_s1, %s4040_s20  ;;  %p4046_p10 = scmp.lt.s32.totalorder %s4040_s20, %s4040_s20 }
0x1a6c   :  { %2729 = vrot.lane.b32.xlu0 %v2727_v43, %s4070_s8 }
0x1a6d   :  { %p4047_p11 = por %p4046_p10, %p4045_p9 }
0x1a6f   :  { %p4048_p12 = pnand %p4047_p11, %p4041_p8 }
0x1ade   :  { %v2730_v16 = vpop.permute.xlu0 %2729 }
0x1adf   :  { %2732 = vst.msk [vmem:[#allocation4] sm:$0x3] %vm681_vm6, %v2730_v16 }
0x1ae0   :  { %4051 = shalt.err (!%p4048_p12)
}
0x1ae1   :  { %s4052_s17 = scalar_lea.hbm %s4955_s18, 32 }
0x1ae2   :  { %p4053_p13 = scmp.ne.s32.totalorder %s4955_s18, %s4052_s17  ;;  %p4056_p0 = scmp.lt.u32.totalorder %s4052_s17, %s4955_s18 }
0x1ae4   :  { %p4058_p1 = pnand %p4056_p0, %p4053_p13 }
0x1ae6   :  { %4061 = shalt.err (!%p4058_p1)
}
0x1ae7   :  { %2752 = dma.vmem_to_hbm [thread:$0]  %s2750_s1, 32, %s4955_s18, [#allocation5]  }
0x1ae8   :  { %4062 = dma.done.wait [#allocation3], 32  }
0x1ae9   :  { %4063 = vsyncadd [#allocation3], 4294967264 }
0x1aea   :  { %4064 = dma.done.wait [#allocation5], 32  }
0x1aeb   :  { %4065 = vsyncadd [#allocation5], 4294967264 }
0x1aec   :  { %2759 = vsyncpa [#allocation3], 1 }
0x1aed   :  { %2760 = vsyncpa [#allocation5], 1 }

</bundles_post_ra>
